<compile_context>
chip_gen: v7x
topology: tpu7x:2x2x1
jax: 0.10.0
libtpu: 0.0.40
codegen_flags: <defaults>
</compile_context>

<pallas_src>
import functools

import jax
import jax.numpy as jnp
from jax.experimental import pallas as pl
from jax.experimental.pallas import tpu as pltpu


MATMUL_DTYPE = jnp.bfloat16  # MXU operand dtype; accumulation is always f32.


# ----------------------------------------------------------------------------
# Plain-JAX glue: "same" padding + patch extraction (im2col).
# Rows ordered (b, y, x); columns ordered (dy, dx, c).
# ----------------------------------------------------------------------------
def im2col(x_nhwc, kh, kw):
    b, h, w, c = x_nhwc.shape
    ph, pw = kh // 2, kw // 2
    xp = jnp.pad(x_nhwc, ((0, 0), (ph, ph), (pw, pw), (0, 0)))
    cols = [xp[:, dy:dy + h, dx:dx + w, :]
            for dy in range(kh) for dx in range(kw)]
    return jnp.concatenate(cols, axis=-1).reshape(b * h * w, kh * kw * c)


# ----------------------------------------------------------------------------
# Parameter initialization (deterministic; mirrors nn.Conv2d semantics).
# Per layer: wx (K*K*Cin, 4*Chid) bf16, wh (K*K*Chid, 4*Chid) bf16,
# bias (1, 4*Chid) f32 (conv_x bias + conv_h bias combined).
# Gate order along the 4*Chid lane axis is (i, f, o, g), matching the PyTorch
# ConvLSTMCell split of the conv output channels.
# ----------------------------------------------------------------------------
def init_params(key, input_dim, hidden_dims, kernel_size=3):
    kk = kernel_size * kernel_size
    params = []
    cin = input_dim
    for layer, chid in enumerate(hidden_dims):
        k = jax.random.fold_in(key, layer)
        k_wx, k_wh, k_bx, k_bh = jax.random.split(k, 4)
        wx = 0.1 * jax.random.normal(k_wx, (kk * cin, 4 * chid), jnp.float32)
        wh = 0.1 * jax.random.normal(k_wh, (kk * chid, 4 * chid), jnp.float32)
        bias = 0.1 * (jax.random.normal(k_bx, (4 * chid,), jnp.float32)
                      + jax.random.normal(k_bh, (4 * chid,), jnp.float32))
        params.append((wx.astype(MATMUL_DTYPE), wh.astype(MATMUL_DTYPE),
                       bias.reshape(1, 4 * chid)))
        cin = chid
    return tuple(params)


# ----------------------------------------------------------------------------
# Fused Pallas forward: one pallas_call over grid=(T,), all layers per step.
# ----------------------------------------------------------------------------
def _build_pallas_forward(input_dim, hidden_dims, kernel_size, T, B, H, W):
    ksz = kernel_size
    kk = ksz * ksz
    pad = ksz // 2
    L = len(hidden_dims)
    N = B * H * W
    Hp, Wp = H + 2 * pad, W + 2 * pad
    chid_last = hidden_dims[-1]
    n_bufs = 1 if L == 1 else L - 1

    # Where layer l's recurrent h lives: (buffer index, channel lo, channel hi).
    # For L > 1, buffer b (b = 0..L-2) holds [h^{b} | h^{b+1}] channel-adjacent.
    def h_home(l):
        if L == 1 or l == 0:
            return 0, 0, hidden_dims[0]
        return l - 1, hidden_dims[l - 1], hidden_dims[l - 1] + hidden_dims[l]

    def kernel(*refs):
        idx = 0
        xp_ref = refs[idx]; idx += 1
        wx0_ref, wh0_ref, b0_ref = refs[idx:idx + 3]; idx += 3
        w_refs, b_refs = [], []
        for _ in range(1, L):
            w_refs.append(refs[idx]); b_refs.append(refs[idx + 1]); idx += 2
        hseq_ref = refs[idx]; clast_ref = refs[idx + 1]; idx += 2
        buf_refs = list(refs[idx:idx + n_bufs]); idx += n_bufs
        c_refs = list(refs[idx:idx + L])

        t = pl.program_id(0)

        @pl.when(t == 0)
        def _init():
            for r in buf_refs:
                r[...] = jnp.zeros_like(r)
            for r in c_refs:
                r[...] = jnp.zeros_like(r)

        def conv_taps(pad_vals, w_taps_ref, acc):
            # pad_vals: (B, Hp, Wp, Cin) f32 zero-padded state(s).
            # w_taps_ref: (kk, Cin, 4*Chid) bf16.  acc broadcasts to (N, 4*Chid).
            cin = pad_vals.shape[-1]
            for tap in range(kk):
                dy, dx = divmod(tap, ksz)
                sl = pad_vals[:, dy:dy + H, dx:dx + W, :]
                sl = sl.reshape(N, cin).astype(MATMUL_DTYPE)
                acc = acc + jnp.dot(sl, w_taps_ref[tap],
                                    preferred_element_type=jnp.float32)
            return acc

        for l in range(L):
            chid = hidden_dims[l]
            if l == 0:
                # Streamed, pre-im2col'd input frame: one fused 128-lane matmul,
                # then 9-tap hidden conv on this layer's padded h_{t-1}.
                pre = jnp.dot(xp_ref[0], wx0_ref[...],
                              preferred_element_type=jnp.float32) + b0_ref[...]
                bi, c0, c1 = h_home(0)
                pre = conv_taps(buf_refs[bi][:, :, :, c0:c1], wh0_ref, pre)
            else:
                # Fused input+hidden conv: buffer l-1 holds [h^{l-1}_t | h^l_{t-1}]
                # adjacent on the channel axis; weights stacked on K.
                pre = conv_taps(buf_refs[l - 1][...], w_refs[l - 1],
                                b_refs[l - 1][...])

            i = jax.nn.sigmoid(pre[:, 0 * chid:1 * chid])
            f = jax.nn.sigmoid(pre[:, 1 * chid:2 * chid])
            o = jax.nn.sigmoid(pre[:, 2 * chid:3 * chid])
            g = jnp.tanh(pre[:, 3 * chid:4 * chid])
            c_new = f * c_refs[l][...] + i * g
            h_new = o * jnp.tanh(c_new)
            c_refs[l][...] = c_new

            # Write the interior of the padded state; the zero ring is untouched.
            h4 = h_new.reshape(B, H, W, chid)
            bi, c0, c1 = h_home(l)
            buf_refs[bi][:, pad:pad + H, pad:pad + W, c0:c1] = h4
            if 0 < l < L - 1:
                # Intermediate layers also feed the next layer's fused buffer.
                buf_refs[l][:, pad:pad + H, pad:pad + W, 0:chid] = h4

            if l == L - 1:
                hseq_ref[0] = h_new        # per-step output block (time axis)
                clast_ref[...] = c_new     # same block every step; last write wins

    # ---- specs -------------------------------------------------------------
    chid0 = hidden_dims[0]
    in_specs = [pl.BlockSpec((1, N, kk * input_dim), lambda t: (t, 0, 0)),
                pl.BlockSpec((kk * input_dim, 4 * chid0), lambda t: (0, 0)),
                pl.BlockSpec((kk, chid0, 4 * chid0), lambda t: (0, 0, 0)),
                pl.BlockSpec((1, 4 * chid0), lambda t: (0, 0))]
    for l in range(1, L):
        cin_comb = hidden_dims[l - 1] + hidden_dims[l]
        chid = hidden_dims[l]
        in_specs.append(pl.BlockSpec((kk, cin_comb, 4 * chid),
                                     lambda t: (0, 0, 0)))
        in_specs.append(pl.BlockSpec((1, 4 * chid), lambda t: (0, 0)))

    out_specs = (pl.BlockSpec((1, N, chid_last), lambda t: (t, 0, 0)),
                 pl.BlockSpec((N, chid_last), lambda t: (0, 0)))
    out_shape = (jax.ShapeDtypeStruct((T, N, chid_last), jnp.float32),
                 jax.ShapeDtypeStruct((N, chid_last), jnp.float32))

    scratch_shapes = []
    if L == 1:
        scratch_shapes.append(pltpu.VMEM((B, Hp, Wp, hidden_dims[0]), jnp.float32))
    else:
        for l in range(1, L):
            scratch_shapes.append(
                pltpu.VMEM((B, Hp, Wp, hidden_dims[l - 1] + hidden_dims[l]),
                           jnp.float32))
    for chid in hidden_dims:
        scratch_shapes.append(pltpu.VMEM((N, chid), jnp.float32))

    grid_spec = pltpu.PrefetchScalarGridSpec(
        num_scalar_prefetch=0,
        grid=(T,),
        in_specs=in_specs,
        out_specs=out_specs,
        scratch_shapes=scratch_shapes,
    )
    return pl.pallas_call(
        kernel,
        out_shape=out_shape,
        grid_spec=grid_spec,
        compiler_params=pltpu.CompilerParams(
            dimension_semantics=("arbitrary",)),  # sequential recurrence over T
    )


def _pack_params(params, input_dim, hidden_dims, kernel_size):
    """Flatten per-layer params into the order the kernel expects.

    Layer 0: wx flat (kk*Cin, 4*Chid), wh per-tap (kk, Chid, 4*Chid), bias.
    Layer l>0: per-tap [wx; wh] stacked on K -> (kk, C_{l-1}+C_l, 4*C_l), bias.
    """
    kk = kernel_size * kernel_size
    flat = []
    cin = input_dim
    for l, (wx, wh, b) in enumerate(params):
        chid = hidden_dims[l]
        wh_t = wh.reshape(kk, chid, 4 * chid)
        if l == 0:
            flat.extend([wx, wh_t, b])
        else:
            wx_t = wx.reshape(kk, cin, 4 * chid)
            flat.extend([jnp.concatenate([wx_t, wh_t], axis=1), b])
        cin = chid
    return flat


# ----------------------------------------------------------------------------
# Full ConvLSTM forward (batch_first=False, return_all_layers=False, bias=True).
# Input x: (T, B, Cin, H, W).  Returns:
#   layer_output (B, T, Chid, H, W), (h_last, c_last) each (B, Chid, H, W),
# for the last layer only — matching the PyTorch module's defaults.
# ----------------------------------------------------------------------------
@functools.partial(jax.jit, static_argnums=(2, 3))
def convlstm_forward(x_tbchw, params, hidden_dims, kernel_size=3):
    T, B, cin, H, W = x_tbchw.shape
    chid_last = hidden_dims[-1]
    N = B * H * W

    x_nhwc = jnp.transpose(x_tbchw, (0, 1, 3, 4, 2))            # (T, B, H, W, C)
    xp_all = im2col(x_nhwc.reshape(T * B, H, W, cin), kernel_size, kernel_size)
    xp_all = xp_all.reshape(T, N, kernel_size * kernel_size * cin)
    xp_all = xp_all.astype(MATMUL_DTYPE)                        # stream in bf16

    fwd = _build_pallas_forward(cin, tuple(hidden_dims), kernel_size, T, B, H, W)
    flat_args = [xp_all] + _pack_params(params, cin, hidden_dims, kernel_size)
    hseq, c_flat = fwd(*flat_args)

    layer_out = hseq.reshape(T, B, H, W, chid_last).transpose(1, 0, 4, 2, 3)
    h_last = layer_out[:, -1]
    c_last = c_flat.reshape(B, H, W, chid_last).transpose(0, 3, 1, 2)
    return layer_out, (h_last, c_last)


# ----------------------------------------------------------------------------
# Pure-JAX reference (same math: bf16 matmul operands, f32 state / gates).
# ----------------------------------------------------------------------------
def reference_forward(x_tbchw, params, hidden_dims, kernel_size=3):
    T, B, cin, H, W = x_tbchw.shape
    kk = kernel_size * kernel_size
    N = B * H * W
    cur = jnp.transpose(x_tbchw, (0, 1, 3, 4, 2))               # (T, B, H, W, C)
    last_h = last_c = None
    for layer, (wx, wh, bias) in enumerate(params):
        chid = hidden_dims[layer]
        h = jnp.zeros((B, H, W, chid), jnp.float32)
        c = jnp.zeros((N, chid), jnp.float32)
        outs = []
        for t in range(T):
            xp = im2col(cur[t], kernel_size, kernel_size).astype(MATMUL_DTYPE)
            hp = im2col(h, kernel_size, kernel_size).astype(MATMUL_DTYPE)
            pre = (jnp.dot(xp, wx, preferred_element_type=jnp.float32)
                   + jnp.dot(hp, wh, preferred_element_type=jnp.float32)
                   + bias)
            i = jax.nn.sigmoid(pre[:, 0 * chid:1 * chid])
            f = jax.nn.sigmoid(pre[:, 1 * chid:2 * chid])
            o = jax.nn.sigmoid(pre[:, 2 * chid:3 * chid])
            g = jnp.tanh(pre[:, 3 * chid:4 * chid])
            c = f * c + i * g
            h = (o * jnp.tanh(c)).reshape(B, H, W, chid)
            outs.append(h)
        cur = jnp.stack(outs, axis=0)
        last_h, last_c = h, c
    chid = hidden_dims[-1]
    layer_out = jnp.transpose(cur, (1, 0, 4, 2, 3))
    h_last = jnp.transpose(last_h, (0, 3, 1, 2))
    c_last = last_c.reshape(B, H, W, chid).transpose(0, 3, 1, 2)
    return layer_out, (h_last, c_last)


if __name__ == "__main__":
    # Module config: input_size=(8, 8), input_dim=4, hidden_dim=32,
    # kernel_size=3, num_layers=2, batch_first=False, bias=True,
    # return_all_layers=False.  Sequence length 4, batch 2.
    T, B, CIN, H, W = 4, 2, 4, 8, 8
    HIDDEN = (32, 32)
    KSIZE = 3

    key = jax.random.PRNGKey(0)
    k_x, k_p = jax.random.split(key)
    x = jax.random.normal(k_x, (T, B, CIN, H, W), jnp.float32)
    params = init_params(k_p, CIN, HIDDEN, KSIZE)

    layer_out, (h_last, c_last) = convlstm_forward(x, params, HIDDEN, KSIZE)
    jax.block_until_ready((layer_out, h_last, c_last))

    ref_out, (ref_h, ref_c) = reference_forward(x, params, HIDDEN, KSIZE)

    assert layer_out.shape == (B, T, HIDDEN[-1], H, W)
    assert h_last.shape == (B, HIDDEN[-1], H, W)
    assert c_last.shape == (B, HIDDEN[-1], H, W)
    assert jnp.allclose(layer_out, ref_out, atol=2e-3, rtol=2e-3)
    assert jnp.allclose(h_last, ref_h, atol=2e-3, rtol=2e-3)
    assert jnp.allclose(c_last, ref_c, atol=2e-3, rtol=2e-3)

    print("KERNEL_OK")
</pallas_src>

<mosaic_0001>
module attributes {stable_mosaic.version = 11 : i64} {
  func.func @kernel(%arg0: i32, %arg1: memref<1x128x36xbf16, #tpu.memory_space<vmem>>, %arg2: memref<36x128xbf16, #tpu.memory_space<vmem>>, %arg3: memref<9x32x128xbf16, #tpu.memory_space<vmem>>, %arg4: memref<1x128xf32, #tpu.memory_space<vmem>>, %arg5: memref<9x64x128xbf16, #tpu.memory_space<vmem>>, %arg6: memref<1x128xf32, #tpu.memory_space<vmem>>, %arg7: memref<1x128x32xf32, #tpu.memory_space<vmem>>, %arg8: memref<128x32xf32, #tpu.memory_space<vmem>>, %arg9: memref<2x10x10x64xf32, #tpu.memory_space<vmem>>, %arg10: memref<128x32xf32, #tpu.memory_space<vmem>>, %arg11: memref<128x32xf32, #tpu.memory_space<vmem>>) attributes {dimension_semantics = [#tpu.dimension_semantics<arbitrary>], iteration_bounds = array<i64: 4>, scalar_prefetch = 0 : i64, scratch_operands = 3 : i64, tpu.core_type = #tpu.core_type<tc>, window_params = [{transform_indices = @transform_0, window_bounds = array<i64: 1, 128, 36>}, {pipeline_mode = #tpu.pipeline_mode<synchronous>, transform_indices = @transform_1, window_bounds = array<i64: 36, 128>}, {pipeline_mode = #tpu.pipeline_mode<synchronous>, transform_indices = @transform_2, window_bounds = array<i64: 9, 32, 128>}, {pipeline_mode = #tpu.pipeline_mode<synchronous>, transform_indices = @transform_3, window_bounds = array<i64: 1, 128>}, {pipeline_mode = #tpu.pipeline_mode<synchronous>, transform_indices = @transform_4, window_bounds = array<i64: 9, 64, 128>}, {pipeline_mode = #tpu.pipeline_mode<synchronous>, transform_indices = @transform_5, window_bounds = array<i64: 1, 128>}, {transform_indices = @transform_6, window_bounds = array<i64: 1, 128, 32>}, {pipeline_mode = #tpu.pipeline_mode<synchronous>, transform_indices = @transform_7, window_bounds = array<i64: 128, 32>}]} {
    %c0_i32 = arith.constant 0 : i32
    %0 = arith.cmpi eq, %arg0, %c0_i32 : i32
    %1 = arith.extui %0 : i1 to i32
    %c0_i32_0 = arith.constant 0 : i32
    %2 = arith.cmpi ne, %1, %c0_i32_0 : i32
    scf.if %2 {
      %cst_107 = arith.constant 0.000000e+00 : f32
      %202 = vector.broadcast %cst_107 : f32 to vector<2x10x10x64xf32>
      %c0_108 = arith.constant 0 : index
      %c0_109 = arith.constant 0 : index
      %c0_110 = arith.constant 0 : index
      %c0_111 = arith.constant 0 : index
      %203 = vector.load %arg9[%c0_108, %c0_109, %c0_110, %c0_111] : memref<2x10x10x64xf32, #tpu.memory_space<vmem>>, vector<2x10x10x64xf32>
      tpu.vector_store %arg9[%c0_108, %c0_109, %c0_110, %c0_111], %202 {strides = array<i32>} : memref<2x10x10x64xf32, #tpu.memory_space<vmem>>, vector<2x10x10x64xf32>,
      %cst_112 = arith.constant 0.000000e+00 : f32
      %204 = vector.broadcast %cst_112 : f32 to vector<128x32xf32>
      %c0_113 = arith.constant 0 : index
      %c0_114 = arith.constant 0 : index
      %205 = vector.load %arg10[%c0_113, %c0_114] : memref<128x32xf32, #tpu.memory_space<vmem>>, vector<128x32xf32>
      tpu.vector_store %arg10[%c0_113, %c0_114], %204 {strides = array<i32>} : memref<128x32xf32, #tpu.memory_space<vmem>>, vector<128x32xf32>,
      %cst_115 = arith.constant 0.000000e+00 : f32
      %206 = vector.broadcast %cst_115 : f32 to vector<128x32xf32>
      %c0_116 = arith.constant 0 : index
      %c0_117 = arith.constant 0 : index
      %207 = vector.load %arg11[%c0_116, %c0_117] : memref<128x32xf32, #tpu.memory_space<vmem>>, vector<128x32xf32>
      tpu.vector_store %arg11[%c0_116, %c0_117], %206 {strides = array<i32>} : memref<128x32xf32, #tpu.memory_space<vmem>>, vector<128x32xf32>,
    } else {
    }
    %c0 = arith.constant 0 : index
    %c0_1 = arith.constant 0 : index
    %c0_2 = arith.constant 0 : index
    %3 = vector.load %arg1[%c0, %c0_1, %c0_2] : memref<1x128x36xbf16, #tpu.memory_space<vmem>>, vector<1x128x36xbf16>
    %4 = vector.shape_cast %3 : vector<1x128x36xbf16> to vector<128x36xbf16>
    %c0_3 = arith.constant 0 : index
    %c0_4 = arith.constant 0 : index
    %5 = vector.load %arg2[%c0_3, %c0_4] : memref<36x128xbf16, #tpu.memory_space<vmem>>, vector<36x128xbf16>
    %cst = arith.constant dense<0.000000e+00> : vector<128x128xf32>
    %6 = tpu.matmul %4, %5, %cst {dimension_numbers = #tpu.dot_dimension_numbers<[1], [0], [0], [1], [0, 0, 1, 1], [], []>} : vector<128x36xbf16>, vector<36x128xbf16>, vector<128x128xf32> -> vector<128x128xf32>
    %c0_5 = arith.constant 0 : index
    %c0_6 = arith.constant 0 : index
    %7 = vector.load %arg4[%c0_5, %c0_6] : memref<1x128xf32, #tpu.memory_space<vmem>>, vector<1x128xf32>
    %8 = vector.broadcast %7 : vector<1x128xf32> to vector<128x128xf32>
    %9 = arith.addf %6, %8 : vector<128x128xf32>
    %c0_7 = arith.constant 0 : index
    %c0_8 = arith.constant 0 : index
    %c0_9 = arith.constant 0 : index
    %c0_10 = arith.constant 0 : index
    %10 = vector.load %arg9[%c0_7, %c0_8, %c0_9, %c0_10] : memref<2x10x10x64xf32, #tpu.memory_space<vmem>>, vector<2x10x10x32xf32>
    %11 = vector.extract_strided_slice %10 {offsets = [0, 0, 0, 0], sizes = [2, 8, 8, 32], strides = [1, 1, 1, 1]} : vector<2x10x10x32xf32> to vector<2x8x8x32xf32>
    %12 = vector.shape_cast %11 : vector<2x8x8x32xf32> to vector<128x32xf32>
    %13 = arith.truncf %12 : vector<128x32xf32> to vector<128x32xbf16>
    %c0_11 = arith.constant 0 : index
    %c0_12 = arith.constant 0 : index
    %c0_13 = arith.constant 0 : index
    %14 = vector.load %arg3[%c0_11, %c0_12, %c0_13] : memref<9x32x128xbf16, #tpu.memory_space<vmem>>, vector<1x32x128xbf16>
    %15 = vector.shape_cast %14 : vector<1x32x128xbf16> to vector<32x128xbf16>
    %cst_14 = arith.constant dense<0.000000e+00> : vector<128x128xf32>
    %16 = tpu.matmul %13, %15, %cst_14 {dimension_numbers = #tpu.dot_dimension_numbers<[1], [0], [0], [1], [0, 0, 1, 1], [], []>} : vector<128x32xbf16>, vector<32x128xbf16>, vector<128x128xf32> -> vector<128x128xf32>
    %17 = arith.addf %9, %16 : vector<128x128xf32>
    %18 = vector.extract_strided_slice %10 {offsets = [0, 0, 1, 0], sizes = [2, 8, 8, 32], strides = [1, 1, 1, 1]} : vector<2x10x10x32xf32> to vector<2x8x8x32xf32>
    %19 = vector.shape_cast %18 : vector<2x8x8x32xf32> to vector<128x32xf32>
    %20 = arith.truncf %19 : vector<128x32xf32> to vector<128x32xbf16>
    %c1 = arith.constant 1 : index
    %c0_15 = arith.constant 0 : index
    %c0_16 = arith.constant 0 : index
    %21 = vector.load %arg3[%c1, %c0_15, %c0_16] : memref<9x32x128xbf16, #tpu.memory_space<vmem>>, vector<1x32x128xbf16>
    %22 = vector.shape_cast %21 : vector<1x32x128xbf16> to vector<32x128xbf16>
    %cst_17 = arith.constant dense<0.000000e+00> : vector<128x128xf32>
    %23 = tpu.matmul %20, %22, %cst_17 {dimension_numbers = #tpu.dot_dimension_numbers<[1], [0], [0], [1], [0, 0, 1, 1], [], []>} : vector<128x32xbf16>, vector<32x128xbf16>, vector<128x128xf32> -> vector<128x128xf32>
    %24 = arith.addf %17, %23 : vector<128x128xf32>
    %25 = vector.extract_strided_slice %10 {offsets = [0, 0, 2, 0], sizes = [2, 8, 8, 32], strides = [1, 1, 1, 1]} : vector<2x10x10x32xf32> to vector<2x8x8x32xf32>
    %26 = vector.shape_cast %25 : vector<2x8x8x32xf32> to vector<128x32xf32>
    %27 = arith.truncf %26 : vector<128x32xf32> to vector<128x32xbf16>
    %c2 = arith.constant 2 : index
    %c0_18 = arith.constant 0 : index
    %c0_19 = arith.constant 0 : index
    %28 = vector.load %arg3[%c2, %c0_18, %c0_19] : memref<9x32x128xbf16, #tpu.memory_space<vmem>>, vector<1x32x128xbf16>
    %29 = vector.shape_cast %28 : vector<1x32x128xbf16> to vector<32x128xbf16>
    %cst_20 = arith.constant dense<0.000000e+00> : vector<128x128xf32>
    %30 = tpu.matmul %27, %29, %cst_20 {dimension_numbers = #tpu.dot_dimension_numbers<[1], [0], [0], [1], [0, 0, 1, 1], [], []>} : vector<128x32xbf16>, vector<32x128xbf16>, vector<128x128xf32> -> vector<128x128xf32>
    %31 = arith.addf %24, %30 : vector<128x128xf32>
    %32 = vector.extract_strided_slice %10 {offsets = [0, 1, 0, 0], sizes = [2, 8, 8, 32], strides = [1, 1, 1, 1]} : vector<2x10x10x32xf32> to vector<2x8x8x32xf32>
    %33 = vector.shape_cast %32 : vector<2x8x8x32xf32> to vector<128x32xf32>
    %34 = arith.truncf %33 : vector<128x32xf32> to vector<128x32xbf16>
    %c3 = arith.constant 3 : index
    %c0_21 = arith.constant 0 : index
    %c0_22 = arith.constant 0 : index
    %35 = vector.load %arg3[%c3, %c0_21, %c0_22] : memref<9x32x128xbf16, #tpu.memory_space<vmem>>, vector<1x32x128xbf16>
    %36 = vector.shape_cast %35 : vector<1x32x128xbf16> to vector<32x128xbf16>
    %cst_23 = arith.constant dense<0.000000e+00> : vector<128x128xf32>
    %37 = tpu.matmul %34, %36, %cst_23 {dimension_numbers = #tpu.dot_dimension_numbers<[1], [0], [0], [1], [0, 0, 1, 1], [], []>} : vector<128x32xbf16>, vector<32x128xbf16>, vector<128x128xf32> -> vector<128x128xf32>
    %38 = arith.addf %31, %37 : vector<128x128xf32>
    %39 = vector.extract_strided_slice %10 {offsets = [0, 1, 1, 0], sizes = [2, 8, 8, 32], strides = [1, 1, 1, 1]} : vector<2x10x10x32xf32> to vector<2x8x8x32xf32>
    %40 = vector.shape_cast %39 : vector<2x8x8x32xf32> to vector<128x32xf32>
    %41 = arith.truncf %40 : vector<128x32xf32> to vector<128x32xbf16>
    %c4 = arith.constant 4 : index
    %c0_24 = arith.constant 0 : index
    %c0_25 = arith.constant 0 : index
    %42 = vector.load %arg3[%c4, %c0_24, %c0_25] : memref<9x32x128xbf16, #tpu.memory_space<vmem>>, vector<1x32x128xbf16>
    %43 = vector.shape_cast %42 : vector<1x32x128xbf16> to vector<32x128xbf16>
    %cst_26 = arith.constant dense<0.000000e+00> : vector<128x128xf32>
    %44 = tpu.matmul %41, %43, %cst_26 {dimension_numbers = #tpu.dot_dimension_numbers<[1], [0], [0], [1], [0, 0, 1, 1], [], []>} : vector<128x32xbf16>, vector<32x128xbf16>, vector<128x128xf32> -> vector<128x128xf32>
    %45 = arith.addf %38, %44 : vector<128x128xf32>
    %46 = vector.extract_strided_slice %10 {offsets = [0, 1, 2, 0], sizes = [2, 8, 8, 32], strides = [1, 1, 1, 1]} : vector<2x10x10x32xf32> to vector<2x8x8x32xf32>
    %47 = vector.shape_cast %46 : vector<2x8x8x32xf32> to vector<128x32xf32>
    %48 = arith.truncf %47 : vector<128x32xf32> to vector<128x32xbf16>
    %c5 = arith.constant 5 : index
    %c0_27 = arith.constant 0 : index
    %c0_28 = arith.constant 0 : index
    %49 = vector.load %arg3[%c5, %c0_27, %c0_28] : memref<9x32x128xbf16, #tpu.memory_space<vmem>>, vector<1x32x128xbf16>
    %50 = vector.shape_cast %49 : vector<1x32x128xbf16> to vector<32x128xbf16>
    %cst_29 = arith.constant dense<0.000000e+00> : vector<128x128xf32>
    %51 = tpu.matmul %48, %50, %cst_29 {dimension_numbers = #tpu.dot_dimension_numbers<[1], [0], [0], [1], [0, 0, 1, 1], [], []>} : vector<128x32xbf16>, vector<32x128xbf16>, vector<128x128xf32> -> vector<128x128xf32>
    %52 = arith.addf %45, %51 : vector<128x128xf32>
    %53 = vector.extract_strided_slice %10 {offsets = [0, 2, 0, 0], sizes = [2, 8, 8, 32], strides = [1, 1, 1, 1]} : vector<2x10x10x32xf32> to vector<2x8x8x32xf32>
    %54 = vector.shape_cast %53 : vector<2x8x8x32xf32> to vector<128x32xf32>
    %55 = arith.truncf %54 : vector<128x32xf32> to vector<128x32xbf16>
    %c6 = arith.constant 6 : index
    %c0_30 = arith.constant 0 : index
    %c0_31 = arith.constant 0 : index
    %56 = vector.load %arg3[%c6, %c0_30, %c0_31] : memref<9x32x128xbf16, #tpu.memory_space<vmem>>, vector<1x32x128xbf16>
    %57 = vector.shape_cast %56 : vector<1x32x128xbf16> to vector<32x128xbf16>
    %cst_32 = arith.constant dense<0.000000e+00> : vector<128x128xf32>
    %58 = tpu.matmul %55, %57, %cst_32 {dimension_numbers = #tpu.dot_dimension_numbers<[1], [0], [0], [1], [0, 0, 1, 1], [], []>} : vector<128x32xbf16>, vector<32x128xbf16>, vector<128x128xf32> -> vector<128x128xf32>
    %59 = arith.addf %52, %58 : vector<128x128xf32>
    %60 = vector.extract_strided_slice %10 {offsets = [0, 2, 1, 0], sizes = [2, 8, 8, 32], strides = [1, 1, 1, 1]} : vector<2x10x10x32xf32> to vector<2x8x8x32xf32>
    %61 = vector.shape_cast %60 : vector<2x8x8x32xf32> to vector<128x32xf32>
    %62 = arith.truncf %61 : vector<128x32xf32> to vector<128x32xbf16>
    %c7 = arith.constant 7 : index
    %c0_33 = arith.constant 0 : index
    %c0_34 = arith.constant 0 : index
    %63 = vector.load %arg3[%c7, %c0_33, %c0_34] : memref<9x32x128xbf16, #tpu.memory_space<vmem>>, vector<1x32x128xbf16>
    %64 = vector.shape_cast %63 : vector<1x32x128xbf16> to vector<32x128xbf16>
    %cst_35 = arith.constant dense<0.000000e+00> : vector<128x128xf32>
    %65 = tpu.matmul %62, %64, %cst_35 {dimension_numbers = #tpu.dot_dimension_numbers<[1], [0], [0], [1], [0, 0, 1, 1], [], []>} : vector<128x32xbf16>, vector<32x128xbf16>, vector<128x128xf32> -> vector<128x128xf32>
    %66 = arith.addf %59, %65 : vector<128x128xf32>
    %67 = vector.extract_strided_slice %10 {offsets = [0, 2, 2, 0], sizes = [2, 8, 8, 32], strides = [1, 1, 1, 1]} : vector<2x10x10x32xf32> to vector<2x8x8x32xf32>
    %68 = vector.shape_cast %67 : vector<2x8x8x32xf32> to vector<128x32xf32>
    %69 = arith.truncf %68 : vector<128x32xf32> to vector<128x32xbf16>
    %c8 = arith.constant 8 : index
    %c0_36 = arith.constant 0 : index
    %c0_37 = arith.constant 0 : index
    %70 = vector.load %arg3[%c8, %c0_36, %c0_37] : memref<9x32x128xbf16, #tpu.memory_space<vmem>>, vector<1x32x128xbf16>
    %71 = vector.shape_cast %70 : vector<1x32x128xbf16> to vector<32x128xbf16>
    %cst_38 = arith.constant dense<0.000000e+00> : vector<128x128xf32>
    %72 = tpu.matmul %69, %71, %cst_38 {dimension_numbers = #tpu.dot_dimension_numbers<[1], [0], [0], [1], [0, 0, 1, 1], [], []>} : vector<128x32xbf16>, vector<32x128xbf16>, vector<128x128xf32> -> vector<128x128xf32>
    %73 = arith.addf %66, %72 : vector<128x128xf32>
    %74 = vector.extract_strided_slice %73 {offsets = [0, 0], sizes = [128, 32], strides = [1, 1]} : vector<128x128xf32> to vector<128x32xf32>
    %75 = arith.negf %74 : vector<128x32xf32>
    %76 = math.exp %75 : vector<128x32xf32>
    %cst_39 = arith.constant 1.000000e+00 : f32
    %77 = vector.broadcast %cst_39 : f32 to vector<128x32xf32>
    %78 = arith.addf %77, %76 : vector<128x32xf32>
    %79 = arith.divf %77, %78 : vector<128x32xf32>
    %80 = vector.extract_strided_slice %73 {offsets = [0, 32], sizes = [128, 32], strides = [1, 1]} : vector<128x128xf32> to vector<128x32xf32>
    %81 = arith.negf %80 : vector<128x32xf32>
    %82 = math.exp %81 : vector<128x32xf32>
    %cst_40 = arith.constant 1.000000e+00 : f32
    %83 = vector.broadcast %cst_40 : f32 to vector<128x32xf32>
    %84 = arith.addf %83, %82 : vector<128x32xf32>
    %85 = arith.divf %83, %84 : vector<128x32xf32>
    %86 = vector.extract_strided_slice %73 {offsets = [0, 64], sizes = [128, 32], strides = [1, 1]} : vector<128x128xf32> to vector<128x32xf32>
    %87 = arith.negf %86 : vector<128x32xf32>
    %88 = math.exp %87 : vector<128x32xf32>
    %cst_41 = arith.constant 1.000000e+00 : f32
    %89 = vector.broadcast %cst_41 : f32 to vector<128x32xf32>
    %90 = arith.addf %89, %88 : vector<128x32xf32>
    %91 = arith.divf %89, %90 : vector<128x32xf32>
    %92 = vector.extract_strided_slice %73 {offsets = [0, 96], sizes = [128, 32], strides = [1, 1]} : vector<128x128xf32> to vector<128x32xf32>
    %93 = math.tanh %92 : vector<128x32xf32>
    %c0_42 = arith.constant 0 : index
    %c0_43 = arith.constant 0 : index
    %94 = vector.load %arg10[%c0_42, %c0_43] : memref<128x32xf32, #tpu.memory_space<vmem>>, vector<128x32xf32>
    %95 = arith.mulf %85, %94 : vector<128x32xf32>
    %96 = arith.mulf %79, %93 : vector<128x32xf32>
    %97 = arith.addf %95, %96 : vector<128x32xf32>
    %98 = math.tanh %97 : vector<128x32xf32>
    %99 = arith.mulf %91, %98 : vector<128x32xf32>
    %c0_44 = arith.constant 0 : index
    %c0_45 = arith.constant 0 : index
    %100 = vector.load %arg10[%c0_44, %c0_45] : memref<128x32xf32, #tpu.memory_space<vmem>>, vector<128x32xf32>
    tpu.vector_store %arg10[%c0_44, %c0_45], %97 {strides = array<i32>} : memref<128x32xf32, #tpu.memory_space<vmem>>, vector<128x32xf32>,
    %101 = vector.shape_cast %99 : vector<128x32xf32> to vector<2x8x8x32xf32>
    %c0_46 = arith.constant 0 : index
    %c1_47 = arith.constant 1 : index
    %c1_48 = arith.constant 1 : index
    %c0_49 = arith.constant 0 : index
    %102 = vector.load %arg9[%c0_46, %c1_47, %c1_48, %c0_49] : memref<2x10x10x64xf32, #tpu.memory_space<vmem>>, vector<2x8x8x32xf32>
    tpu.vector_store %arg9[%c0_46, %c1_47, %c1_48, %c0_49], %101 {strides = array<i32>} : memref<2x10x10x64xf32, #tpu.memory_space<vmem>>, vector<2x8x8x32xf32>,
    %c0_50 = arith.constant 0 : index
    %c0_51 = arith.constant 0 : index
    %c0_52 = arith.constant 0 : index
    %c0_53 = arith.constant 0 : index
    %103 = vector.load %arg9[%c0_50, %c0_51, %c0_52, %c0_53] : memref<2x10x10x64xf32, #tpu.memory_space<vmem>>, vector<2x10x10x64xf32>
    %c0_54 = arith.constant 0 : index
    %c0_55 = arith.constant 0 : index
    %104 = vector.load %arg6[%c0_54, %c0_55] : memref<1x128xf32, #tpu.memory_space<vmem>>, vector<1x128xf32>
    %105 = vector.extract_strided_slice %103 {offsets = [0, 0, 0, 0], sizes = [2, 8, 8, 64], strides = [1, 1, 1, 1]} : vector<2x10x10x64xf32> to vector<2x8x8x64xf32>
    %106 = vector.shape_cast %105 : vector<2x8x8x64xf32> to vector<128x64xf32>
    %107 = arith.truncf %106 : vector<128x64xf32> to vector<128x64xbf16>
    %c0_56 = arith.constant 0 : index
    %c0_57 = arith.constant 0 : index
    %c0_58 = arith.constant 0 : index
    %108 = vector.load %arg5[%c0_56, %c0_57, %c0_58] : memref<9x64x128xbf16, #tpu.memory_space<vmem>>, vector<1x64x128xbf16>
    %109 = vector.shape_cast %108 : vector<1x64x128xbf16> to vector<64x128xbf16>
    %cst_59 = arith.constant dense<0.000000e+00> : vector<128x128xf32>
    %110 = tpu.matmul %107, %109, %cst_59 {dimension_numbers = #tpu.dot_dimension_numbers<[1], [0], [0], [1], [0, 0, 1, 1], [], []>} : vector<128x64xbf16>, vector<64x128xbf16>, vector<128x128xf32> -> vector<128x128xf32>
    %111 = vector.broadcast %104 : vector<1x128xf32> to vector<128x128xf32>
    %112 = arith.addf %111, %110 : vector<128x128xf32>
    %113 = vector.extract_strided_slice %103 {offsets = [0, 0, 1, 0], sizes = [2, 8, 8, 64], strides = [1, 1, 1, 1]} : vector<2x10x10x64xf32> to vector<2x8x8x64xf32>
    %114 = vector.shape_cast %113 : vector<2x8x8x64xf32> to vector<128x64xf32>
    %115 = arith.truncf %114 : vector<128x64xf32> to vector<128x64xbf16>
    %c1_60 = arith.constant 1 : index
    %c0_61 = arith.constant 0 : index
    %c0_62 = arith.constant 0 : index
    %116 = vector.load %arg5[%c1_60, %c0_61, %c0_62] : memref<9x64x128xbf16, #tpu.memory_space<vmem>>, vector<1x64x128xbf16>
    %117 = vector.shape_cast %116 : vector<1x64x128xbf16> to vector<64x128xbf16>
    %cst_63 = arith.constant dense<0.000000e+00> : vector<128x128xf32>
    %118 = tpu.matmul %115, %117, %cst_63 {dimension_numbers = #tpu.dot_dimension_numbers<[1], [0], [0], [1], [0, 0, 1, 1], [], []>} : vector<128x64xbf16>, vector<64x128xbf16>, vector<128x128xf32> -> vector<128x128xf32>
    %119 = arith.addf %112, %118 : vector<128x128xf32>
    %120 = vector.extract_strided_slice %103 {offsets = [0, 0, 2, 0], sizes = [2, 8, 8, 64], strides = [1, 1, 1, 1]} : vector<2x10x10x64xf32> to vector<2x8x8x64xf32>
    %121 = vector.shape_cast %120 : vector<2x8x8x64xf32> to vector<128x64xf32>
    %122 = arith.truncf %121 : vector<128x64xf32> to vector<128x64xbf16>
    %c2_64 = arith.constant 2 : index
    %c0_65 = arith.constant 0 : index
    %c0_66 = arith.constant 0 : index
    %123 = vector.load %arg5[%c2_64, %c0_65, %c0_66] : memref<9x64x128xbf16, #tpu.memory_space<vmem>>, vector<1x64x128xbf16>
    %124 = vector.shape_cast %123 : vector<1x64x128xbf16> to vector<64x128xbf16>
    %cst_67 = arith.constant dense<0.000000e+00> : vector<128x128xf32>
    %125 = tpu.matmul %122, %124, %cst_67 {dimension_numbers = #tpu.dot_dimension_numbers<[1], [0], [0], [1], [0, 0, 1, 1], [], []>} : vector<128x64xbf16>, vector<64x128xbf16>, vector<128x128xf32> -> vector<128x128xf32>
    %126 = arith.addf %119, %125 : vector<128x128xf32>
    %127 = vector.extract_strided_slice %103 {offsets = [0, 1, 0, 0], sizes = [2, 8, 8, 64], strides = [1, 1, 1, 1]} : vector<2x10x10x64xf32> to vector<2x8x8x64xf32>
    %128 = vector.shape_cast %127 : vector<2x8x8x64xf32> to vector<128x64xf32>
    %129 = arith.truncf %128 : vector<128x64xf32> to vector<128x64xbf16>
    %c3_68 = arith.constant 3 : index
    %c0_69 = arith.constant 0 : index
    %c0_70 = arith.constant 0 : index
    %130 = vector.load %arg5[%c3_68, %c0_69, %c0_70] : memref<9x64x128xbf16, #tpu.memory_space<vmem>>, vector<1x64x128xbf16>
    %131 = vector.shape_cast %130 : vector<1x64x128xbf16> to vector<64x128xbf16>
    %cst_71 = arith.constant dense<0.000000e+00> : vector<128x128xf32>
    %132 = tpu.matmul %129, %131, %cst_71 {dimension_numbers = #tpu.dot_dimension_numbers<[1], [0], [0], [1], [0, 0, 1, 1], [], []>} : vector<128x64xbf16>, vector<64x128xbf16>, vector<128x128xf32> -> vector<128x128xf32>
    %133 = arith.addf %126, %132 : vector<128x128xf32>
    %134 = vector.extract_strided_slice %103 {offsets = [0, 1, 1, 0], sizes = [2, 8, 8, 64], strides = [1, 1, 1, 1]} : vector<2x10x10x64xf32> to vector<2x8x8x64xf32>
    %135 = vector.shape_cast %134 : vector<2x8x8x64xf32> to vector<128x64xf32>
    %136 = arith.truncf %135 : vector<128x64xf32> to vector<128x64xbf16>
    %c4_72 = arith.constant 4 : index
    %c0_73 = arith.constant 0 : index
    %c0_74 = arith.constant 0 : index
    %137 = vector.load %arg5[%c4_72, %c0_73, %c0_74] : memref<9x64x128xbf16, #tpu.memory_space<vmem>>, vector<1x64x128xbf16>
    %138 = vector.shape_cast %137 : vector<1x64x128xbf16> to vector<64x128xbf16>
    %cst_75 = arith.constant dense<0.000000e+00> : vector<128x128xf32>
    %139 = tpu.matmul %136, %138, %cst_75 {dimension_numbers = #tpu.dot_dimension_numbers<[1], [0], [0], [1], [0, 0, 1, 1], [], []>} : vector<128x64xbf16>, vector<64x128xbf16>, vector<128x128xf32> -> vector<128x128xf32>
    %140 = arith.addf %133, %139 : vector<128x128xf32>
    %141 = vector.extract_strided_slice %103 {offsets = [0, 1, 2, 0], sizes = [2, 8, 8, 64], strides = [1, 1, 1, 1]} : vector<2x10x10x64xf32> to vector<2x8x8x64xf32>
    %142 = vector.shape_cast %141 : vector<2x8x8x64xf32> to vector<128x64xf32>
    %143 = arith.truncf %142 : vector<128x64xf32> to vector<128x64xbf16>
    %c5_76 = arith.constant 5 : index
    %c0_77 = arith.constant 0 : index
    %c0_78 = arith.constant 0 : index
    %144 = vector.load %arg5[%c5_76, %c0_77, %c0_78] : memref<9x64x128xbf16, #tpu.memory_space<vmem>>, vector<1x64x128xbf16>
    %145 = vector.shape_cast %144 : vector<1x64x128xbf16> to vector<64x128xbf16>
    %cst_79 = arith.constant dense<0.000000e+00> : vector<128x128xf32>
    %146 = tpu.matmul %143, %145, %cst_79 {dimension_numbers = #tpu.dot_dimension_numbers<[1], [0], [0], [1], [0, 0, 1, 1], [], []>} : vector<128x64xbf16>, vector<64x128xbf16>, vector<128x128xf32> -> vector<128x128xf32>
    %147 = arith.addf %140, %146 : vector<128x128xf32>
    %148 = vector.extract_strided_slice %103 {offsets = [0, 2, 0, 0], sizes = [2, 8, 8, 64], strides = [1, 1, 1, 1]} : vector<2x10x10x64xf32> to vector<2x8x8x64xf32>
    %149 = vector.shape_cast %148 : vector<2x8x8x64xf32> to vector<128x64xf32>
    %150 = arith.truncf %149 : vector<128x64xf32> to vector<128x64xbf16>
    %c6_80 = arith.constant 6 : index
    %c0_81 = arith.constant 0 : index
    %c0_82 = arith.constant 0 : index
    %151 = vector.load %arg5[%c6_80, %c0_81, %c0_82] : memref<9x64x128xbf16, #tpu.memory_space<vmem>>, vector<1x64x128xbf16>
    %152 = vector.shape_cast %151 : vector<1x64x128xbf16> to vector<64x128xbf16>
    %cst_83 = arith.constant dense<0.000000e+00> : vector<128x128xf32>
    %153 = tpu.matmul %150, %152, %cst_83 {dimension_numbers = #tpu.dot_dimension_numbers<[1], [0], [0], [1], [0, 0, 1, 1], [], []>} : vector<128x64xbf16>, vector<64x128xbf16>, vector<128x128xf32> -> vector<128x128xf32>
    %154 = arith.addf %147, %153 : vector<128x128xf32>
    %155 = vector.extract_strided_slice %103 {offsets = [0, 2, 1, 0], sizes = [2, 8, 8, 64], strides = [1, 1, 1, 1]} : vector<2x10x10x64xf32> to vector<2x8x8x64xf32>
    %156 = vector.shape_cast %155 : vector<2x8x8x64xf32> to vector<128x64xf32>
    %157 = arith.truncf %156 : vector<128x64xf32> to vector<128x64xbf16>
    %c7_84 = arith.constant 7 : index
    %c0_85 = arith.constant 0 : index
    %c0_86 = arith.constant 0 : index
    %158 = vector.load %arg5[%c7_84, %c0_85, %c0_86] : memref<9x64x128xbf16, #tpu.memory_space<vmem>>, vector<1x64x128xbf16>
    %159 = vector.shape_cast %158 : vector<1x64x128xbf16> to vector<64x128xbf16>
    %cst_87 = arith.constant dense<0.000000e+00> : vector<128x128xf32>
    %160 = tpu.matmul %157, %159, %cst_87 {dimension_numbers = #tpu.dot_dimension_numbers<[1], [0], [0], [1], [0, 0, 1, 1], [], []>} : vector<128x64xbf16>, vector<64x128xbf16>, vector<128x128xf32> -> vector<128x128xf32>
    %161 = arith.addf %154, %160 : vector<128x128xf32>
    %162 = vector.extract_strided_slice %103 {offsets = [0, 2, 2, 0], sizes = [2, 8, 8, 64], strides = [1, 1, 1, 1]} : vector<2x10x10x64xf32> to vector<2x8x8x64xf32>
    %163 = vector.shape_cast %162 : vector<2x8x8x64xf32> to vector<128x64xf32>
    %164 = arith.truncf %163 : vector<128x64xf32> to vector<128x64xbf16>
    %c8_88 = arith.constant 8 : index
    %c0_89 = arith.constant 0 : index
    %c0_90 = arith.constant 0 : index
    %165 = vector.load %arg5[%c8_88, %c0_89, %c0_90] : memref<9x64x128xbf16, #tpu.memory_space<vmem>>, vector<1x64x128xbf16>
    %166 = vector.shape_cast %165 : vector<1x64x128xbf16> to vector<64x128xbf16>
    %cst_91 = arith.constant dense<0.000000e+00> : vector<128x128xf32>
    %167 = tpu.matmul %164, %166, %cst_91 {dimension_numbers = #tpu.dot_dimension_numbers<[1], [0], [0], [1], [0, 0, 1, 1], [], []>} : vector<128x64xbf16>, vector<64x128xbf16>, vector<128x128xf32> -> vector<128x128xf32>
    %168 = arith.addf %161, %167 : vector<128x128xf32>
    %169 = vector.extract_strided_slice %168 {offsets = [0, 0], sizes = [128, 32], strides = [1, 1]} : vector<128x128xf32> to vector<128x32xf32>
    %170 = arith.negf %169 : vector<128x32xf32>
    %171 = math.exp %170 : vector<128x32xf32>
    %cst_92 = arith.constant 1.000000e+00 : f32
    %172 = vector.broadcast %cst_92 : f32 to vector<128x32xf32>
    %173 = arith.addf %172, %171 : vector<128x32xf32>
    %174 = arith.divf %172, %173 : vector<128x32xf32>
    %175 = vector.extract_strided_slice %168 {offsets = [0, 32], sizes = [128, 32], strides = [1, 1]} : vector<128x128xf32> to vector<128x32xf32>
    %176 = arith.negf %175 : vector<128x32xf32>
    %177 = math.exp %176 : vector<128x32xf32>
    %cst_93 = arith.constant 1.000000e+00 : f32
    %178 = vector.broadcast %cst_93 : f32 to vector<128x32xf32>
    %179 = arith.addf %178, %177 : vector<128x32xf32>
    %180 = arith.divf %178, %179 : vector<128x32xf32>
    %181 = vector.extract_strided_slice %168 {offsets = [0, 64], sizes = [128, 32], strides = [1, 1]} : vector<128x128xf32> to vector<128x32xf32>
    %182 = arith.negf %181 : vector<128x32xf32>
    %183 = math.exp %182 : vector<128x32xf32>
    %cst_94 = arith.constant 1.000000e+00 : f32
    %184 = vector.broadcast %cst_94 : f32 to vector<128x32xf32>
    %185 = arith.addf %184, %183 : vector<128x32xf32>
    %186 = arith.divf %184, %185 : vector<128x32xf32>
    %187 = vector.extract_strided_slice %168 {offsets = [0, 96], sizes = [128, 32], strides = [1, 1]} : vector<128x128xf32> to vector<128x32xf32>
    %188 = math.tanh %187 : vector<128x32xf32>
    %c0_95 = arith.constant 0 : index
    %c0_96 = arith.constant 0 : index
    %189 = vector.load %arg11[%c0_95, %c0_96] : memref<128x32xf32, #tpu.memory_space<vmem>>, vector<128x32xf32>
    %190 = arith.mulf %180, %189 : vector<128x32xf32>
    %191 = arith.mulf %174, %188 : vector<128x32xf32>
    %192 = arith.addf %190, %191 : vector<128x32xf32>
    %193 = math.tanh %192 : vector<128x32xf32>
    %194 = arith.mulf %186, %193 : vector<128x32xf32>
    %c0_97 = arith.constant 0 : index
    %c0_98 = arith.constant 0 : index
    %195 = vector.load %arg11[%c0_97, %c0_98] : memref<128x32xf32, #tpu.memory_space<vmem>>, vector<128x32xf32>
    tpu.vector_store %arg11[%c0_97, %c0_98], %192 {strides = array<i32>} : memref<128x32xf32, #tpu.memory_space<vmem>>, vector<128x32xf32>,
    %196 = vector.shape_cast %194 : vector<128x32xf32> to vector<2x8x8x32xf32>
    %c0_99 = arith.constant 0 : index
    %c1_100 = arith.constant 1 : index
    %c1_101 = arith.constant 1 : index
    %c32 = arith.constant 32 : index
    %197 = vector.load %arg9[%c0_99, %c1_100, %c1_101, %c32] : memref<2x10x10x64xf32, #tpu.memory_space<vmem>>, vector<2x8x8x32xf32>
    tpu.vector_store %arg9[%c0_99, %c1_100, %c1_101, %c32], %196 {strides = array<i32>} : memref<2x10x10x64xf32, #tpu.memory_space<vmem>>, vector<2x8x8x32xf32>,
    %c0_102 = arith.constant 0 : index
    %c0_103 = arith.constant 0 : index
    %c0_104 = arith.constant 0 : index
    %198 = vector.load %arg7[%c0_102, %c0_103, %c0_104] : memref<1x128x32xf32, #tpu.memory_space<vmem>>, vector<1x128x32xf32>
    %199 = vector.shape_cast %198 : vector<1x128x32xf32> to vector<128x32xf32>
    %200 = vector.shape_cast %194 : vector<128x32xf32> to vector<1x128x32xf32>
    tpu.vector_store %arg7[%c0_102, %c0_103, %c0_104], %200 {strides = array<i32>} : memref<1x128x32xf32, #tpu.memory_space<vmem>>, vector<1x128x32xf32>,
    %c0_105 = arith.constant 0 : index
    %c0_106 = arith.constant 0 : index
    %201 = vector.load %arg8[%c0_105, %c0_106] : memref<128x32xf32, #tpu.memory_space<vmem>>, vector<128x32xf32>
    tpu.vector_store %arg8[%c0_105, %c0_106], %192 {strides = array<i32>} : memref<128x32xf32, #tpu.memory_space<vmem>>, vector<128x32xf32>,
    return
  }
  func.func @transform_0(%arg0: i32) -> (i32, i32, i32) {
    %c0_i32 = arith.constant 0 : i32
    %c0_i32_0 = arith.constant 0 : i32
    %c0_i32_1 = arith.constant 0 : i32
    return %arg0, %c0_i32, %c0_i32_0 : i32, i32, i32
  }
  func.func @transform_1(%arg0: i32) -> (i32, i32) {
    %c0_i32 = arith.constant 0 : i32
    %c0_i32_0 = arith.constant 0 : i32
    %c0_i32_1 = arith.constant 0 : i32
    return %c0_i32, %c0_i32_0 : i32, i32
  }
  func.func @transform_2(%arg0: i32) -> (i32, i32, i32) {
    %c0_i32 = arith.constant 0 : i32
    %c0_i32_0 = arith.constant 0 : i32
    %c0_i32_1 = arith.constant 0 : i32
    %c0_i32_2 = arith.constant 0 : i32
    return %c0_i32, %c0_i32_0, %c0_i32_1 : i32, i32, i32
  }
  func.func @transform_3(%arg0: i32) -> (i32, i32) {
    %c0_i32 = arith.constant 0 : i32
    %c0_i32_0 = arith.constant 0 : i32
    %c0_i32_1 = arith.constant 0 : i32
    return %c0_i32, %c0_i32_0 : i32, i32
  }
  func.func @transform_4(%arg0: i32) -> (i32, i32, i32) {
    %c0_i32 = arith.constant 0 : i32
    %c0_i32_0 = arith.constant 0 : i32
    %c0_i32_1 = arith.constant 0 : i32
    %c0_i32_2 = arith.constant 0 : i32
    return %c0_i32, %c0_i32_0, %c0_i32_1 : i32, i32, i32
  }
  func.func @transform_5(%arg0: i32) -> (i32, i32) {
    %c0_i32 = arith.constant 0 : i32
    %c0_i32_0 = arith.constant 0 : i32
    %c0_i32_1 = arith.constant 0 : i32
    return %c0_i32, %c0_i32_0 : i32, i32
  }
  func.func @transform_6(%arg0: i32) -> (i32, i32, i32) {
    %c0_i32 = arith.constant 0 : i32
    %c0_i32_0 = arith.constant 0 : i32
    %c0_i32_1 = arith.constant 0 : i32
    return %arg0, %c0_i32, %c0_i32_0 : i32, i32, i32
  }
  func.func @transform_7(%arg0: i32) -> (i32, i32) {
    %c0_i32 = arith.constant 0 : i32
    %c0_i32_0 = arith.constant 0 : i32
    %c0_i32_1 = arith.constant 0 : i32
    return %c0_i32, %c0_i32_0 : i32, i32
  }
}

</mosaic_0001>

<bundles_post_ra>
// kernel: convlstm_forward.1
= control target key start
LH: loop header
LB: loop body
LE: loop exit
PB: predicated region body
PF: predicated region fallthrough
CT: control target
= control target key end

     0   :  { %13 = vsyncpa [#allocation6], 0  ;;  %s7112_s24 = smov 0   ;;  %s9236_s0 = inlined_call_operand.vmem [shape: bf16[4,128,36], index: 0, kind: input, shape index: {}]   ;;  %s9237_s1 = inlined_call_operand.vmem [shape: bf16[36,128], index: 1, kind: input, shape index: {}]   ;;  %s9238_s2 = inlined_call_operand.vmem [shape: bf16[9,32,128], index: 2, kind: input, shape index: {}]   ;;  %s9239_s3 = inlined_call_operand.vmem [shape: f32[1,128], index: 3, kind: input, shape index: {}]   ;;  %s9240_s4 = inlined_call_operand.vmem [shape: bf16[9,64,128], index: 4, kind: input, shape index: {}]   ;;  %s9241_s5 = inlined_call_operand.vmem [shape: f32[1,128], index: 5, kind: input, shape index: {}]   ;;  %s9242_s6 = inlined_call_operand.vmem [shape: f32[4,128,32], index: 6, kind: output, shape index: {0}]   ;;  %s9243_s7 = inlined_call_operand.hbm [shape: f32[128,32], index: 7, kind: output, shape index: {1}]  }
   0x1 LB: > { %s7118_s25 = sadd.s32 4294967295, %s7063_s24   ;;  %p5387_p0 = scmp.ge.s32.totalorder %s7063_s24, 1  ;;  %s7063_s24 = sphi %s7112_s24, %s19_s24  }
   0x2   : > { %p236_p1 = scmp.lt.s32.totalorder %s7063_s24, 5 }
   0x4   : > { %p237_p2 = pnand %p5387_p0, %p236_p1 }
   0x6   : > { %240 = sbr.rel (%p237_p2) target bundleno = 2154 (0x86a), region = 44 }
   0xd   : > { %p268_p3 = scmp.lt.s32.totalorder %s7118_s25, 3  ;;  %p5392_p4 = scmp.ne.s32.totalorder %s7118_s25, 0 }
   0xe   : > { %vm283_vm0 = vcmask (!%p5392_p4), 523264   ;;  %vm285_vm1 = vcmask (!%p5392_p4), 517120   ;;  %vm325_vm2 = vcmask (!%p5392_p4), 261120   ;;  %v7065_v0 = vmov (!%p5392_p4), 0.0  }
   0xf   : > { %s269_s26 = scalar_select %p268_p3, %s7118_s25, 3 }
  0x10   : > { %282 = sbr.rel (%p5392_p4) target bundleno = 52 (0x34), region = 48  ;;  %284 = vst.msk [vmem:[#allocation2] sm:$0xff] (!%p5392_p4), %vm283_vm0, %v7065_v0  ;;  %287 = vst.msk [vmem:[#allocation2 + $0x10] sm:$0xff] (!%p5392_p4), %vm283_vm0, %v7065_v0 }
  0x11   : > { %s5744_s27 = sshll.u32 %s269_s26, 6  ;;  %s5745_s28 = sshll.u32 %s269_s26, 7  ;;  %289 = vst.msk [vmem:[#allocation2 + $0x20] sm:$0xff] (!%p5392_p4), %vm283_vm0, %v7065_v0  ;;  %291 = vst.msk [vmem:[#allocation2 + $0x30] sm:$0xff] (!%p5392_p4), %vm283_vm0, %v7065_v0 }
  0x12   : > { %s7127_s8 = scalar_lea.vmem %s9236_s0, %s5744_s27  ;;  %s7132_s11 = scalar_lea.vmem %s9242_s6, %s5745_s28  ;;  %293 = vst.msk [vmem:[#allocation2 + $0x40] sm:$0xff] (!%p5392_p4), %vm283_vm0, %v7065_v0  ;;  %295 = vst.msk [vmem:[#allocation2 + $0x50] sm:$0xff] (!%p5392_p4), %vm283_vm0, %v7065_v0 }
  0x13   : > { %297 = vst.msk [vmem:[#allocation2 + $0x60] sm:$0xff] (!%p5392_p4), %vm283_vm0, %v7065_v0  ;;  %299 = vst.msk [vmem:[#allocation2 + $0x70] sm:$0xff] (!%p5392_p4), %vm283_vm0, %v7065_v0 }
  0x14   : > { %301 = vst.msk [vmem:[#allocation2 + $0x80] sm:$0xff] (!%p5392_p4), %vm283_vm0, %v7065_v0  ;;  %303 = vst.msk [vmem:[#allocation2 + $0x90] sm:$0xff] (!%p5392_p4), %vm283_vm0, %v7065_v0 }
  0x15   : > { %305 = vst.msk [vmem:[#allocation2 + $0xa0] sm:$0xff] (!%p5392_p4), %vm283_vm0, %v7065_v0  ;;  %307 = vst.msk [vmem:[#allocation2 + $0xb0] sm:$0xff] (!%p5392_p4), %vm283_vm0, %v7065_v0 }
  0x16   : > { %309 = vst.msk [vmem:[#allocation2 + $0xc0] sm:$0xff] (!%p5392_p4), %vm283_vm0, %v7065_v0  ;;  %311 = vst.msk [vmem:[#allocation2 + $0xd0] sm:$0xff] (!%p5392_p4), %vm283_vm0, %v7065_v0 }
  0x17   : > { %313 = vst.msk [vmem:[#allocation2 + $0xe0] sm:$0xff] %vm283_vm0, %v7065_v0  ;;  %315 = vst.msk [vmem:[#allocation2 + $0xf0] sm:$0xff] %vm283_vm0, %v7065_v0 }
  0x18   : > { %317 = vst.msk [vmem:[#allocation2 + $0x100] sm:$0xff] %vm283_vm0, %v7065_v0  ;;  %319 = vst.msk [vmem:[#allocation2 + $0x110] sm:$0xff] %vm283_vm0, %v7065_v0 }
  0x19   : > { %321 = vst.msk [vmem:[#allocation2 + $0x120] sm:$0xff] %vm283_vm0, %v7065_v0  ;;  %323 = vst.msk [vmem:[#allocation2 + $0x130] sm:$0xff] %vm283_vm0, %v7065_v0 }
  0x1a   : > { %286 = vst.msk [vmem:[#allocation2 + $0x8] sm:$0x3] %vm285_vm1, %v7065_v0  ;;  %288 = vst.msk [vmem:[#allocation2 + $0x18] sm:$0x3] %vm285_vm1, %v7065_v0 }
  0x1b   : > { %290 = vst.msk [vmem:[#allocation2 + $0x28] sm:$0x3] %vm285_vm1, %v7065_v0  ;;  %292 = vst.msk [vmem:[#allocation2 + $0x38] sm:$0x3] %vm285_vm1, %v7065_v0 }
  0x1c   : > { %294 = vst.msk [vmem:[#allocation2 + $0x48] sm:$0x3] %vm285_vm1, %v7065_v0  ;;  %296 = vst.msk [vmem:[#allocation2 + $0x58] sm:$0x3] %vm285_vm1, %v7065_v0 }
  0x1d   : > { %298 = vst.msk [vmem:[#allocation2 + $0x68] sm:$0x3] %vm285_vm1, %v7065_v0  ;;  %300 = vst.msk [vmem:[#allocation2 + $0x78] sm:$0x3] %vm285_vm1, %v7065_v0 }
  0x1e   : > { %302 = vst.msk [vmem:[#allocation2 + $0x88] sm:$0x3] %vm285_vm1, %v7065_v0  ;;  %304 = vst.msk [vmem:[#allocation2 + $0x98] sm:$0x3] %vm285_vm1, %v7065_v0 }
  0x1f   : > { %306 = vst.msk [vmem:[#allocation2 + $0xa8] sm:$0x3] %vm285_vm1, %v7065_v0  ;;  %308 = vst.msk [vmem:[#allocation2 + $0xb8] sm:$0x3] %vm285_vm1, %v7065_v0 }
  0x20   : > { %310 = vst.msk [vmem:[#allocation2 + $0xc8] sm:$0x3] %vm285_vm1, %v7065_v0  ;;  %312 = vst.msk [vmem:[#allocation2 + $0xd8] sm:$0x3] %vm285_vm1, %v7065_v0 }
  0x21   : > { %314 = vst.msk [vmem:[#allocation2 + $0xe8] sm:$0x3] %vm285_vm1, %v7065_v0  ;;  %316 = vst.msk [vmem:[#allocation2 + $0xf8] sm:$0x3] %vm285_vm1, %v7065_v0 }
  0x22   : > { %318 = vst.msk [vmem:[#allocation2 + $0x108] sm:$0x3] %vm285_vm1, %v7065_v0  ;;  %320 = vst.msk [vmem:[#allocation2 + $0x118] sm:$0x3] %vm285_vm1, %v7065_v0 }
  0x23   : > { %322 = vst.msk [vmem:[#allocation2 + $0x128] sm:$0x3] %vm285_vm1, %v7065_v0  ;;  %324 = vst.msk [vmem:[#allocation2 + $0x138] sm:$0x3] %vm285_vm1, %v7065_v0 }
  0x24   : > { %326 = vst.msk [vmem:[#allocation3] sm:$0xff] %vm325_vm2, %v7065_v0  ;;  %327 = vst.msk [vmem:[#allocation3 + $0x8] sm:$0xff] %vm325_vm2, %v7065_v0 }
  0x25   : > { %328 = vst.msk [vmem:[#allocation3 + $0x10] sm:$0xff] %vm325_vm2, %v7065_v0  ;;  %329 = vst.msk [vmem:[#allocation3 + $0x18] sm:$0xff] %vm325_vm2, %v7065_v0 }
  0x26   : > { %330 = vst.msk [vmem:[#allocation3 + $0x20] sm:$0xff] %vm325_vm2, %v7065_v0  ;;  %331 = vst.msk [vmem:[#allocation3 + $0x28] sm:$0xff] %vm325_vm2, %v7065_v0 }
  0x27   : > { %332 = vst.msk [vmem:[#allocation3 + $0x30] sm:$0xff] %vm325_vm2, %v7065_v0  ;;  %333 = vst.msk [vmem:[#allocation3 + $0x38] sm:$0xff] %vm325_vm2, %v7065_v0 }
  0x28   : > { %334 = vst.msk [vmem:[#allocation3 + $0x40] sm:$0xff] %vm325_vm2, %v7065_v0  ;;  %335 = vst.msk [vmem:[#allocation3 + $0x48] sm:$0xff] %vm325_vm2, %v7065_v0 }
  0x29   : > { %336 = vst.msk [vmem:[#allocation3 + $0x50] sm:$0xff] %vm325_vm2, %v7065_v0  ;;  %337 = vst.msk [vmem:[#allocation3 + $0x58] sm:$0xff] %vm325_vm2, %v7065_v0 }
  0x2a   : > { %338 = vst.msk [vmem:[#allocation3 + $0x60] sm:$0xff] %vm325_vm2, %v7065_v0  ;;  %339 = vst.msk [vmem:[#allocation3 + $0x68] sm:$0xff] %vm325_vm2, %v7065_v0 }
  0x2b   : > { %340 = vst.msk [vmem:[#allocation3 + $0x70] sm:$0xff] %vm325_vm2, %v7065_v0  ;;  %341 = vst.msk [vmem:[#allocation3 + $0x78] sm:$0xff] %vm325_vm2, %v7065_v0 }
  0x2c   : > { %342 = vst.msk [vmem:[#allocation4] sm:$0xff] %vm325_vm2, %v7065_v0  ;;  %343 = vst.msk [vmem:[#allocation4 + $0x8] sm:$0xff] %vm325_vm2, %v7065_v0 }
  0x2d   : > { %344 = vst.msk [vmem:[#allocation4 + $0x10] sm:$0xff] %vm325_vm2, %v7065_v0  ;;  %345 = vst.msk [vmem:[#allocation4 + $0x18] sm:$0xff] %vm325_vm2, %v7065_v0 }
  0x2e   : > { %346 = vst.msk [vmem:[#allocation4 + $0x20] sm:$0xff] %vm325_vm2, %v7065_v0  ;;  %347 = vst.msk [vmem:[#allocation4 + $0x28] sm:$0xff] %vm325_vm2, %v7065_v0 }
  0x2f   : > { %348 = vst.msk [vmem:[#allocation4 + $0x30] sm:$0xff] %vm325_vm2, %v7065_v0  ;;  %349 = vst.msk [vmem:[#allocation4 + $0x38] sm:$0xff] %vm325_vm2, %v7065_v0 }
  0x30   : > { %350 = vst.msk [vmem:[#allocation4 + $0x40] sm:$0xff] %vm325_vm2, %v7065_v0  ;;  %351 = vst.msk [vmem:[#allocation4 + $0x48] sm:$0xff] %vm325_vm2, %v7065_v0 }
  0x31   : > { %352 = vst.msk [vmem:[#allocation4 + $0x50] sm:$0xff] %vm325_vm2, %v7065_v0  ;;  %353 = vst.msk [vmem:[#allocation4 + $0x58] sm:$0xff] %vm325_vm2, %v7065_v0 }
  0x32   : > { %354 = vst.msk [vmem:[#allocation4 + $0x60] sm:$0xff] %vm325_vm2, %v7065_v0  ;;  %355 = vst.msk [vmem:[#allocation4 + $0x68] sm:$0xff] %vm325_vm2, %v7065_v0 }
  0x33   : > { %356 = vst.msk [vmem:[#allocation4 + $0x70] sm:$0xff] %vm325_vm2, %v7065_v0  ;;  %357 = vst.msk [vmem:[#allocation4 + $0x78] sm:$0xff] %vm325_vm2, %v7065_v0 }
  0x34 PF: > { %v6706_v1 = vld [vmem:[%s9237_s1] sm:$0xff]   ;;  %v6707_v2 = vld [vmem:[%s9237_s1 + $0x8] sm:$0xff]   ;;  %vm441_vm3 = vcmask 293888   ;;  %v6708_v3 = vld [vmem:[%s9237_s1 + $0x10] ss:$0 sps:$4 sm:$0x33]  }
  0x35   : > { %5955 = vmatprep.subr.bf16.mxu0 %v6706_v1  ;;  %v6709_v4 = vld [vmem:[%s7127_s8] sm:$0xff]   ;;  %6373 = vmatprep.subr.bf16.mxu1 %v6706_v1  ;;  %vm466_vm4 = vcmask 1041408   ;;  %v6710_v7 = vld [vmem:[%s7127_s8 + $0x8] sm:$0xff]   ;;  %v6712_v8 = vld [vmem:[%s7127_s8 + $0x10] sm:$0xff]   ;;  %vm801_vm5 = vcmask 1046528   ;;  %vm631_vm6 = vcmask 261120  }
  0x36   : > { %5956 = vmatpush3.bf16.msra.mxu0 %v6706_v1  ;;  %6376 = vmatpush3.bf16.msra.mxu1 %v6706_v1  ;;  %v468_v5 = vsel %vm466_vm4, %v6708_v3, 0  ;;  %v6711_v6 = vld [vmem:[%s9238_s2] sm:$0xff]   ;;  %v6714_v9 = vld [vmem:[%s9238_s2 + $0x8] sm:$0xff]   ;;  %v7302_v11 = vld [vmem:[#allocation2 + $0x10] sm:$0xff]  ;;  %vm1028_vm7 = vcmask 1045504   ;;  %s7066_s17 = smov 32  }
  0x37   : > { %5957 = vmatprep.subr.bf16.mxu0 %v6707_v2  ;;  %5961 = vmatprep.mubr.msk.bf16.mxu0 %vm441_vm3, %v6709_v4  ;;  %v7300_v10 = vld [vmem:[#allocation2] sm:$0xff]  ;;  %v7304_v12 = vld [vmem:[#allocation2 + $0x30] sm:$0xff]  ;;  %v6713_v14 = vld [vmem:[%s7127_s8 + $0x18] sm:$0xff]   ;;  %v805_v29 = vrot.slane %v7302_v11, 1  ;;  %s7067_s27 = smov 64   ;;  %vm2901_vm8 = vcmask 523264  }
  0x38   : > { %6374 = vmatprep.subr.bf16.mxu1 %v6707_v2  ;;  %v6715_v13 = vld [vmem:[%s9238_s2 + $0x10] sm:$0xff]   ;;  %v7310_v15 = vld [vmem:[#allocation2 + $0x40] sm:$0xff]  ;;  %v7312_v16 = vld [vmem:[#allocation2 + $0x38] sm:$0x3]  ;;  %v811_v17 = vrot.slane %v7304_v12, 1  ;;  %v607_v20 = vpack.c.bf16 %v7302_v11, %v7300_v10  ;;  %v802_v23 = vrot.slane %v7300_v10, 1 }
  0x39   : > { %v812_v18 = vrot.slane %v7312_v16, 1  ;;  %v814_v19 = vrot.slane %v7310_v15, 1  ;;  %v576_v21 = vld [vmem:[#allocation2 + $0x48] sm:$0x3]  ;;  %v7320_v24 = vld [vmem:[#allocation2 + $0x20] sm:$0xff]  ;;  %v7322_v25 = vld [vmem:[#allocation2 + $0x50] sm:$0xff] }
  0x3a   : > { %5958 = vmatpush3.bf16.msra.mxu0 %v6707_v2  ;;  %6377 = vmatpush3.bf16.msra.mxu1 %v6707_v2  ;;  %v815_v22 = vrot.slane %v576_v21, 1  ;;  %v7325_v26 = vld [vmem:[#allocation2 + $0x60] sm:$0xff]  ;;  %v7327_v27 = vld [vmem:[#allocation2 + $0x70] sm:$0xff]  ;;  %v7329_v28 = vld [vmem:[#allocation2 + $0x8] sm:$0x3]  ;;  %v808_v30 = vrot.slane %v7320_v24, 1  ;;  %v7346_v35 = vpack.c.bf16 %v7304_v12, %v7320_v24  ;;  %v7374_v53 = vpack.c.bf16 %v7322_v25, %v7310_v15 }
  0x3b   : > { %6683 = vmatprep.subr.msk.bf16.mxu0 %vm466_vm4, %v6708_v3  ;;  %6684 = vmatprep.subr.msk.bf16.mxu1 %vm466_vm4, %v6708_v3  ;;  %v7334_v31 = vsel %vm801_vm5, %v811_v17, %v812_v18  ;;  %v7340_v33 = vld [vmem:[#allocation2 + $0x18] sm:$0x3]  ;;  %v7348_v36 = vld [vmem:[#allocation2 + $0xa0] sm:$0xff]  ;;  %v7350_v37 = vld [vmem:[#allocation2 + $0xb0] sm:$0xff]  ;;  %v817_v39 = vrot.slane %v7322_v25, 1  ;;  %v820_v40 = vrot.slane %v7325_v26, 1 }
  0x3c   : > { %v7337_v32 = vsel %vm801_vm5, %v814_v19, %v815_v22  ;;  %v7352_v38 = vld [vmem:[#allocation2 + $0xc0] sm:$0xff]  ;;  %v7358_v43 = vld [vmem:[#allocation2 + $0xd0] sm:$0xff]  ;;  %v829_v46 = vrot.slane %v7350_v37, 1  ;;  %v6716_v48 = vld [vmem:[%s9238_s2 + $0x18] sm:$0xff]   ;;  %v803_v49 = vrot.slane %v7329_v28, 1  ;;  %v806_v50 = vrot.slane %v7340_v33, 1 }
  0x3d   : > { %v7360_v44 = vld [vmem:[#allocation2 + $0xe0] sm:$0xff]  ;;  %v832_v47 = vrot.slane %v7352_v38, 1  ;;  %v835_v51 = vrot.slane %v7358_v43, 1  ;;  %v7376_v54 = vld [vmem:[#allocation2 + $0x28] sm:$0x3]  ;;  %v1038_v60 = vrot.slane %v7304_v12, 2  ;;  %v611_v17 = vpack.c.bf16 %v7350_v37, %v7348_v36 }
  0x3e   : > { %5960 = vmatpush3.bf16.msra.mxu0 %v468_v5  ;;  %6378 = vmatpush3.bf16.msra.mxu1 %v468_v5  ;;  %v838_v52 = vrot.slane %v7360_v44, 1  ;;  %v7378_v55 = vld [vmem:[#allocation2 + $0x58] sm:$0x3]  ;;  %v7380_v56 = vld [vmem:[#allocation2 + $0x68] sm:$0x3]  ;;  %v1039_v61 = vrot.slane %v7312_v16, 2  ;;  %v7453_v34 = vsel %vm801_vm5, %v805_v29, %v806_v50 }
  0x3f   : > { %5977 = vmatprep.subr.bf16.mxu0 %v6711_v6  ;;  %v7382_v57 = vld [vmem:[#allocation2 + $0x78] sm:$0x3]  ;;  %v7384_v58 = vld [vmem:[#allocation2 + $0xa8] sm:$0x3]  ;;  %v1041_v62 = vrot.slane %v7310_v15, 2  ;;  %v1042_v63 = vrot.slane %v576_v21, 2 }
  0x40   : > { %v7386_v59 = vld [vmem:[#allocation2 + $0xb8] sm:$0x3]  ;;  %v809_v0 = vrot.slane %v7376_v54, 1  ;;  %v7399_v1 = vld [vmem:[%s9238_s2 + $0x20] sm:$0xff]   ;;  %v818_v2 = vrot.slane %v7378_v55, 1  ;;  %v821_v3 = vrot.slane %v7380_v56, 1 }
  0x41   : > { %5962 = vmatmul.mubr.msk.bf16.vlgmr.msra.gmra.mrb[0].mxu0 %vm441_vm3, %v6710_v7  ;;  %v7407_v7 = vsel %vm1028_vm7, %v1038_v60, %v1039_v61  ;;  %v7424_v18 = vld [vmem:[#allocation2 + $0xd8] sm:$0x3]  ;;  %v7427_v19 = vld [vmem:[#allocation2 + $0xe8] sm:$0x3]  ;;  %v7431_v21 = vld [vmem:[#allocation2 + $0x100] sm:$0xff]  ;;  %v1033_v50 = vrot.slane %v7340_v33, 2 }
  0x42   : > { %5978 = vmatpush3.bf16.msra.mxu0 %v6711_v6  ;;  %5965 = vmatprep.mubr.msk.bf16.mxu0 %vm441_vm3, %v6712_v8  ;;  %v830_v6 = vrot.slane %v7386_v59, 1  ;;  %v7410_v8 = vsel %vm1028_vm7, %v1041_v62, %v1042_v63  ;;  %v7433_v22 = vld [vmem:[#allocation2 + $0x108] sm:$0x3]  ;;  %v836_v61 = vrot.slane %v7424_v18, 1  ;;  %v839_v63 = vrot.slane %v7427_v19, 1  ;;  %s7068_s22 = smov 96  }
  0x43   : > { %5979 = vmatprep.subr.bf16.mxu0 %v6714_v9  ;;  %v844_v5 = vrot.slane %v7431_v21, 1  ;;  %v7465_v45 = vsel %vm801_vm5, %v817_v39, %v818_v2  ;;  %v7470_v4 = vsel %vm801_vm5, %v820_v40, %v821_v3  ;;  %v845_v29 = vrot.slane %v7433_v22, 1  ;;  %p6689_p5 = scmp.eq.s32.totalorder %s7118_s25, 3 }
  0x44   : > { %v7481_v41 = vsel %vm801_vm5, %v835_v51, %v836_v61  ;;  %v7486_v2 = vsel %vm801_vm5, %v838_v52, %v839_v63  ;;  %v1035_v40 = vrot.slane %v7320_v24, 2  ;;  %v1036_v3 = vrot.slane %v7376_v54, 2  ;;  %v7496_v51 = vld [vmem:[#allocation2 + $0x110] sm:$0xff] }
  0x45   : > { %v7502_v52 = vsel %vm801_vm5, %v844_v5, %v845_v29  ;;  %v1044_v54 = vrot.slane %v7322_v25, 2  ;;  %v1047_v63 = vrot.slane %v7325_v26, 2  ;;  %v1056_v5 = vrot.slane %v7350_v37, 2 }
  0x46   : > { %5980 = vmatpush3.bf16.msra.mxu0 %v6714_v9  ;;  %v7414_v9 = vpack.c.bf16 %v7327_v27, %v7325_v26  ;;  %v1059_v29 = vrot.slane %v7352_v38, 2  ;;  %v7534_v33 = vsel %vm1028_vm7, %v1035_v40, %v1036_v3  ;;  %v6719_v40 = vld [vmem:[%s9238_s2 + $0x30] sm:$0xff]   ;;  %v9265_v39 = vrot.slane %v7327_v27, 1 }
  0x47   : > { %5997 = vmatprep.subr.bf16.mxu0 %v6715_v13 }
  0x49   : > { %5966 = vmatmul.mubr.msk.bf16.gmra.mrb[4].mxu0 %vm441_vm3, %v6713_v14  ;;  %v7418_v14 = vld [vmem:[#allocation2 + $0xc8] sm:$0x3] }
  0x4a   : > { %5981 = vmatprep.mubr.msk.bf16.mxu0 %vm631_vm6, %v607_v20  ;;  %v7429_v20 = vld [vmem:[#allocation2 + $0xf8] sm:$0x3]  ;;  %v833_v60 = vrot.slane %v7418_v14, 1  ;;  %v1060_v61 = vrot.slane %v7418_v14, 2  ;;  %v6718_v14 = vld [vmem:[%s9238_s2 + $0x28] sm:$0xff]  }
  0x4b   : > { %v842_v42 = vrot.slane %v7429_v20, 1 }
  0x51   : > { %5982 = vmatmul.mubr.msk.bf16.vlgmr.msra.gmra.mrb[0].mxu0 %vm631_vm6, %v7346_v35 }
  0x52   : > { %5998 = vmatpush3.bf16.msra.mxu0 %v6715_v13  ;;  %5985 = vmatprep.mubr.msk.bf16.mxu0 %vm631_vm6, %v7374_v53  ;;  %v7416_v13 = vld [vmem:[#allocation2 + $0xf0] sm:$0xff] }
  0x53   : > { %5999 = vmatprep.subr.bf16.mxu0 %v6716_v48  ;;  %v7446_v62 = vpack.c.bf16 %v7416_v13, %v7360_v44  ;;  %v841_v16 = vrot.slane %v7416_v13, 1 }
  0x56   : > { %6000 = vmatpush3.bf16.msra.mxu0 %v6716_v48  ;;  %v7442_v48 = vpack.c.bf16 %v7358_v43, %v7352_v38 }
  0x57   : > { %6017 = vmatprep.subr.bf16.mxu0 %v7399_v1 }
  0x59   : > { %5986 = vmatmul.mubr.msk.bf16.gmra.mrb[4].mxu0 %vm631_vm6, %v7414_v9 }
  0x5a   : > { %5989 = vmatprep.mubr.msk.bf16.mxu0 %vm631_vm6, %v611_v17  ;;  %v7458_v17 = vsel %vm801_vm5, %v808_v30, %v809_v0  ;;  %v7475_v30 = vsel %vm801_vm5, %v829_v46, %v830_v6  ;;  %v7478_v0 = vsel %vm801_vm5, %v832_v47, %v833_v60  ;;  %v7499_v6 = vsel %vm801_vm5, %v841_v16, %v842_v42 }
  0x5b   : > { %v1045_v60 = vrot.slane %v7378_v55, 2  ;;  %v1048_v42 = vrot.slane %v7380_v56, 2  ;;  %v1057_v16 = vrot.slane %v7386_v59, 2  ;;  %v804_v55 = vsel %vm801_vm5, %v802_v23, %v803_v49 }
  0x5c   : > { %v7525_v47 = vpack.c.bf16 %v7496_v51, %v7431_v21  ;;  %v866_v56 = vpack.c.bf16 %v7453_v34, %v804_v55  ;;  %v9261_v46 = vrot.slane %v7302_v11, 2  ;;  %v7543_v49 = vpack.c.bf16 %v7334_v31, %v7458_v17 }
  0x5d   : > { %v7558_v3 = vsel %vm1028_vm7, %v1044_v54, %v1045_v60  ;;  %v1062_v55 = vrot.slane %v7358_v43, 2  ;;  %v9264_v23 = vrot.slane %v7382_v57, 1  ;;  %v1065_v54 = vrot.slane %v7360_v44, 2 }
  0x5e   : > { %v7531_v59 = vsel %vm1028_vm7, %v9261_v46, %v1033_v50  ;;  %9262 = vst [vmem:[#allocation8_spill] sm:$0xff] %v7543_v49  ;;  %v7550_v50 = vpack.c.bf16 %v7465_v45, %v7337_v32  ;;  %v7561_v46 = vsel %vm1028_vm7, %v1047_v63, %v1048_v42  ;;  %v1066_v60 = vrot.slane %v7427_v19, 2 }
  0x5f   : > { %v7590_v19 = vsel %vm1028_vm7, %v1056_v5, %v1057_v16  ;;  %v602_v16 = vld [vmem:[#allocation2 + $0x118] sm:$0x3]  ;;  %v1029_v5 = vrot.slane %v7300_v10, 2 }
  0x60   : > { %9263 = vst [vmem:[#allocation9_spill] sm:$0xff] %v7550_v50 }
  0x61   : > { %5990 = vmatmul.mubr.msk.bf16.gmra.mrb[8].mxu0 %vm631_vm6, %v7442_v48 }
  0x62   : > { %5993 = vmatprep.mubr.msk.bf16.mxu0 %vm631_vm6, %v7446_v62 }
  0x69   : > { %5994 = vmatmul.mubr.msk.bf16.gmra.mrb[12].mxu0 %vm631_vm6, %v7525_v47 }
  0x6a   : > { %6001 = vmatprep.mubr.msk.bf16.mxu0 %vm631_vm6, %v866_v56  ;;  %v1063_v56 = vrot.slane %v7424_v18, 2  ;;  %v9266_v18 = vrot.slane %v7384_v58, 1 }
  0x71   : > { %6002 = vmatmul.mubr.msk.bf16.vlgmr.msra.gmra.mrb[0].mxu0 %vm631_vm6, %v7543_v49  ;;  %v7573_v49 = vsel %vm801_vm5, %v9265_v39, %v9264_v23  ;;  %v7593_v23 = vsel %vm1028_vm7, %v1059_v29, %v1060_v61  ;;  %v1068_v61 = vrot.slane %v7416_v13, 2  ;;  %v1069_v29 = vrot.slane %v7429_v20, 2 }
  0x72   : > { %6018 = vmatpush3.bf16.msra.mxu0 %v7399_v1  ;;  %6005 = vmatprep.mubr.msk.bf16.mxu0 %vm631_vm6, %v7550_v50  ;;  %v9267_v1 = vrot.slane %v7348_v36, 1  ;;  %v7586_v50 = vpack.c.bf16 %v7573_v49, %v7470_v4 }
  0x73   : > { %6019 = vmatprep.subr.bf16.mxu0 %v6718_v14  ;;  %v7624_v20 = vsel %vm1028_vm7, %v1068_v61, %v1069_v29  ;;  %v7649_v29 = vpack.c.bf16 %v7407_v7, %v7534_v33 }
  0x74   : > { %v828_v42 = vsel %vm801_vm5, %v9267_v1, %v9266_v18  ;;  %9268 = vst [vmem:[#allocation10_spill] sm:$0xff] %v7586_v50  ;;  %v7598_v18 = vsel %vm1028_vm7, %v1062_v55, %v1063_v56  ;;  %v7601_v1 = vsel %vm1028_vm7, %v1065_v54, %v1066_v60  ;;  %v1072_v55 = vrot.slane %v7433_v22, 2 }
  0x75   : > { %v870_v39 = vpack.c.bf16 %v7475_v30, %v828_v42  ;;  %v7614_v56 = vpack.c.bf16 %v7481_v41, %v7478_v0  ;;  %v7618_v54 = vpack.c.bf16 %v7499_v6, %v7486_v2  ;;  %v847_v60 = vrot.slane %v7496_v51, 1 }
  0x76   : > { %6020 = vmatpush3.bf16.msra.mxu0 %v6718_v14  ;;  %v1071_v14 = vrot.slane %v7431_v21, 2  ;;  %v1030_v42 = vrot.slane %v7329_v28, 2 }
  0x77   : > { %6037 = vmatprep.subr.bf16.mxu0 %v6719_v40 }
  0x78   : > { %v7627_v22 = vsel %vm1028_vm7, %v1071_v14, %v1072_v55  ;;  %v1031_v10 = vsel %vm1028_vm7, %v1029_v5, %v1030_v42  ;;  %v7653_v14 = vpack.c.bf16 %v7558_v3, %v7410_v8  ;;  %v1050_v42 = vrot.slane %v7327_v27, 2 }
  0x79   : > { %6006 = vmatmul.mubr.msk.bf16.gmra.mrb[4].mxu0 %vm631_vm6, %v7586_v50  ;;  %v1605_v63 = vpack.c.bf16 %v7627_v22, %v7624_v20  ;;  %v1093_v61 = vpack.c.bf16 %v7531_v59, %v1031_v10  ;;  %v1051_v5 = vrot.slane %v7382_v57, 2  ;;  %v1053_v55 = vrot.slane %v7348_v36, 2  ;;  %v6721_v36 = vld [vmem:[%s9238_s2 + $0x40] sm:$0xff]  }
  0x7a   : > { %6009 = vmatprep.mubr.msk.bf16.mxu0 %vm631_vm6, %v870_v39  ;;  %v848_v39 = vrot.slane %v602_v16, 1 }
  0x7b   : > { %v7667_v10 = vsel %vm1028_vm7, %v1050_v42, %v1051_v5  ;;  %v7687_v42 = vpack.c.bf16 %v7624_v20, %v7601_v1  ;;  %v1074_v5 = vrot.slane %v7496_v51, 2 }
  0x7c   : > { %v7636_v50 = vsel %vm801_vm5, %v847_v60, %v848_v39  ;;  %v1054_v60 = vrot.slane %v7384_v58, 2  ;;  %v6720_v39 = vld [vmem:[%s9238_s2 + $0x38] sm:$0xff]   ;;  %v7675_v58 = vpack.c.bf16 %v7667_v10, %v7561_v46 }
  0x7d   : > { %v7641_v28 = vpack.c.bf16 %v7636_v50, %v7502_v52 }
  0x7e   : > { %v1055_v57 = vsel %vm1028_vm7, %v1053_v55, %v1054_v60  ;;  %v1075_v55 = vrot.slane %v602_v16, 2  ;;  %v1256_v16 = vpack.c.bf16 %v7310_v15, %v7304_v12  ;;  %v1259_v15 = vpack.c.bf16 %v7352_v38, %v7350_v37 }
  0x7f   : > { %v9269_v38 = vpack.c.bf16 %v7458_v17, %v7453_v34  ;;  %v9271_v34 = vpack.c.bf16 %v7470_v4, %v7465_v45  ;;  %v6732_v45 = vld [vmem:[%s7127_s8 + $0x28] sm:$0xff]   ;;  %v9272_v4 = vpack.c.bf16 %v7478_v0, %v7475_v30  ;;  %v9274_v30 = vpack.c.bf16 %v7502_v52, %v7499_v6 }
  0x80   : > { %v7695_v60 = vsel %vm1028_vm7, %v1074_v5, %v1075_v55  ;;  %v6722_v5 = vld [vmem:[%s9238_s2 + $0x48] sm:$0xff]  }
  0x81   : > { %6010 = vmatmul.mubr.msk.bf16.gmra.mrb[8].mxu0 %vm631_vm6, %v7614_v56  ;;  %v604_v55 = vld [vmem:[#allocation2 + $0x128] sm:$0x3] }
  0x82   : > { %6013 = vmatprep.mubr.msk.bf16.mxu0 %vm631_vm6, %v7618_v54  ;;  %v6726_v52 = vld [vmem:[%s9238_s2 + $0x68] sm:$0xff]  }
  0x89   : > { %6014 = vmatmul.mubr.msk.bf16.gmra.mrb[12].mxu0 %vm631_vm6, %v7641_v28 }
  0x8a   : > { %6021 = vmatprep.mubr.msk.bf16.mxu0 %vm631_vm6, %v1093_v61  ;;  %v1097_v61 = vpack.c.bf16 %v7590_v19, %v1055_v57  ;;  %v1255_v57 = vpack.c.bf16 %v7320_v24, %v7302_v11  ;;  %v7715_v11 = vld [vmem:[#allocation2 + $0x80] sm:$0xff]  ;;  %v6723_v24 = vld [vmem:[%s9238_s2 + $0x50] sm:$0xff]  }
  0x8b   : > { %v1258_v12 = vpack.c.bf16 %v7715_v11, %v7327_v27  ;;  %v7732_v27 = vld [vmem:[#allocation2 + $0x120] sm:$0xff] }
  0x8c   : > { %v1262_v37 = vpack.c.bf16 %v7732_v27, %v7496_v51  ;;  %v9270_v51 = vpack.c.bf16 %v7337_v32, %v7334_v31  ;;  %v6731_v32 = vld [vmem:[%s7127_s8 + $0x20] sm:$0xff]  }
  0x8d   : > { %5969 = vmatprep.mubr.msk.bf16.mxu1 %vm441_vm3, %v6731_v32 }
  0x8e   : > { %5970 = vmatmul.mubr.msk.bf16.vlgmr.msra.gmra.mrb[0].mxu1 %vm441_vm3, %v6732_v45 }
  0x91   : > { %6022 = vmatmul.mubr.msk.bf16.vlgmr.msra.gmra.mrb[0].mxu0 %vm631_vm6, %v7649_v29 }
  0x92   : > { %6038 = vmatpush3.bf16.msra.mxu0 %v6719_v40  ;;  %6025 = vmatprep.mubr.msk.bf16.mxu0 %vm631_vm6, %v7653_v14  ;;  %v7683_v40 = vpack.c.bf16 %v7598_v18, %v7593_v23 }
  0x93   : > { %6039 = vmatprep.subr.bf16.mxu0 %v6720_v39 }
  0x96   : > { %6040 = vmatpush3.bf16.msra.mxu0 %v6720_v39  ;;  %v7699_v39 = vpack.c.bf16 %v7695_v60, %v7627_v22 }
  0x97   : > { %6057 = vmatprep.subr.bf16.mxu0 %v6721_v36 }
  0x99   : > { %6026 = vmatmul.mubr.msk.bf16.gmra.mrb[4].mxu0 %vm631_vm6, %v7675_v58 }
  0x9a   : > { %6029 = vmatprep.mubr.msk.bf16.mxu0 %vm631_vm6, %v1097_v61  ;;  %v1257_v61 = vpack.c.bf16 %v7325_v26, %v7322_v25  ;;  %v1260_v25 = vpack.c.bf16 %v7360_v44, %v7358_v43  ;;  %v1261_v26 = vpack.c.bf16 %v7431_v21, %v7416_v13  ;;  %v584_v43 = vld [vmem:[#allocation2 + $0x88] sm:$0x3]  ;;  %v1421_v44 = vrot.slane %v7715_v11, 1  ;;  %v6724_v21 = vld [vmem:[%s9238_s2 + $0x58] sm:$0xff]  }
  0x9b   : > { %v1422_v13 = vrot.slane %v584_v43, 1  ;;  %v1592_v6 = vrot.slane %v584_v43, 2 }
  0x9d   : > { %v7754_v17 = vsel %vm801_vm5, %v1421_v44, %v1422_v13 }
  0x9e   : > { %v1432_v31 = vpack.c.bf16 %v7754_v17, %v7573_v49  ;;  %v9273_v49 = vpack.c.bf16 %v7486_v2, %v7481_v41  ;;  %v9275_v41 = vpack.c.bf16 %v7534_v33, %v7531_v59  ;;  %v1591_v2 = vrot.slane %v7715_v11, 2  ;;  %v6727_v59 = vld [vmem:[%s9238_s2 + $0x70] sm:$0xff]  }
  0xa0   : > { %v7806_v33 = vsel %vm1028_vm7, %v1591_v2, %v1592_v6 }
  0xa1   : > { %6030 = vmatmul.mubr.msk.bf16.gmra.mrb[8].mxu0 %vm631_vm6, %v7683_v40 }
  0xa2   : > { %6033 = vmatprep.mubr.msk.bf16.mxu0 %vm631_vm6, %v7687_v42 }
  0xa9   : > { %6034 = vmatmul.mubr.msk.bf16.gmra.mrb[12].mxu0 %vm631_vm6, %v7699_v39 }
  0xaa   : > { %6041 = vmatprep.mubr.msk.bf16.mxu0 %vm631_vm6, %v1255_v57  ;;  %v1424_v57 = vrot.slane %v7732_v27, 1 }
  0xb1   : > { %6042 = vmatmul.mubr.msk.bf16.vlgmr.msra.gmra.mrb[0].mxu0 %vm631_vm6, %v1256_v16  ;;  %v1425_v16 = vrot.slane %v604_v55, 1 }
  0xb2   : > { %6058 = vmatpush3.bf16.msra.mxu0 %v6721_v36  ;;  %6045 = vmatprep.mubr.msk.bf16.mxu0 %vm631_vm6, %v1257_v61  ;;  %v6725_v36 = vld [vmem:[%s9238_s2 + $0x60] sm:$0xff]   ;;  %v6733_v61 = vld [vmem:[%s7127_s8 + $0x30] sm:$0xff]  }
  0xb3   : > { %6059 = vmatprep.subr.bf16.mxu0 %v6722_v5  ;;  %v7782_v0 = vsel %vm801_vm5, %v1424_v57, %v1425_v16  ;;  %5973 = vmatprep.mubr.msk.bf16.mxu1 %vm441_vm3, %v6733_v61 }
  0xb6   : > { %6060 = vmatpush3.bf16.msra.mxu0 %v6722_v5  ;;  %v6734_v5 = vld [vmem:[%s7127_s8 + $0x38] sm:$0xff]  }
  0xb7   : > { %6077 = vmatprep.subr.bf16.mxu0 %v6723_v24  ;;  %5974 = vmatmul.mubr.msk.bf16.gmra.mrb[4].mxu1 %vm441_vm3, %v6734_v5 }
  0xb9   : > { %6046 = vmatmul.mubr.msk.bf16.gmra.mrb[4].mxu0 %vm631_vm6, %v1258_v12  ;;  %v9276_v12 = vpack.c.bf16 %v7410_v8, %v7407_v7  ;;  %v9278_v7 = vpack.c.bf16 %v7593_v23, %v7590_v19  ;;  %v1594_v8 = vrot.slane %v7732_v27, 2  ;;  %v6728_v19 = vld [vmem:[%s9238_s2 + $0x78] sm:$0xff]   ;;  %v6729_v23 = vld [vmem:[%s9238_s2 + $0x80] sm:$0xff]  }
  0xba   : > { %6049 = vmatprep.mubr.msk.bf16.mxu0 %vm631_vm6, %v1259_v15  ;;  %v1602_v15 = vpack.c.bf16 %v7806_v33, %v7667_v10 }
  0xc1   : > { %6050 = vmatmul.mubr.msk.bf16.gmra.mrb[8].mxu0 %vm631_vm6, %v1260_v25 }
  0xc2   : > { %6053 = vmatprep.mubr.msk.bf16.mxu0 %vm631_vm6, %v1261_v26  ;;  %v606_v26 = vld [vmem:[#allocation2 + $0x138] sm:$0x3] }
  0xc9   : > { %6054 = vmatmul.mubr.msk.bf16.gmra.mrb[12].mxu0 %vm631_vm6, %v1262_v37  ;;  %v1907_v37 = vrot.slane %v606_v26, 1 }
  0xca   : > { %6061 = vmatprep.mubr.msk.bf16.mxu0 %vm631_vm6, %v9269_v38 }
  0xd1   : > { %6062 = vmatmul.mubr.msk.bf16.vlgmr.msra.gmra.mrb[0].mxu0 %vm631_vm6, %v9270_v51 }
  0xd2   : > { %6078 = vmatpush3.bf16.msra.mxu0 %v6723_v24  ;;  %6065 = vmatprep.mubr.msk.bf16.mxu0 %vm631_vm6, %v9271_v34  ;;  %v1436_v24 = vpack.c.bf16 %v7782_v0, %v7636_v50  ;;  %v9277_v50 = vpack.c.bf16 %v7561_v46, %v7558_v3  ;;  %v1595_v3 = vrot.slane %v604_v55, 2  ;;  %v9279_v46 = vpack.c.bf16 %v7601_v1, %v7598_v18  ;;  %v586_v1 = vld [vmem:[#allocation2 + $0x98] sm:$0x3] }
  0xd3   : > { %6079 = vmatprep.subr.bf16.mxu0 %v6724_v21  ;;  %v1904_v22 = vrot.slane %v586_v1, 1 }
  0xd4   : > { %v1596_v10 = vsel %vm1028_vm7, %v1594_v8, %v1595_v3 }
  0xd5   : > { %v1606_v25 = vpack.c.bf16 %v1596_v10, %v7695_v60  ;;  %v9281_v60 = vld [vmem:[#allocation9_spill] sm:$0xff] }
  0xd6   : > { %6080 = vmatpush3.bf16.msra.mxu0 %v6724_v21  ;;  %v2053_v21 = vrot.slane %v606_v26, 2 }
  0xd7   : > { %6097 = vmatprep.subr.bf16.mxu0 %v6725_v36 }
  0xd9   : > { %6066 = vmatmul.mubr.msk.bf16.gmra.mrb[4].mxu0 %vm631_vm6, %v1432_v31 }
  0xda   : > { %6069 = vmatprep.mubr.msk.bf16.mxu0 %vm631_vm6, %v9272_v4 }
  0xe1   : > { %6070 = vmatmul.mubr.msk.bf16.gmra.mrb[8].mxu0 %vm631_vm6, %v9273_v49 }
  0xe2   : > { %6073 = vmatprep.mubr.msk.bf16.mxu0 %vm631_vm6, %v9274_v30 }
  0xe9   : > { %6074 = vmatmul.mubr.msk.bf16.gmra.mrb[12].mxu0 %vm631_vm6, %v1436_v24 }
  0xea   : > { %6081 = vmatprep.mubr.msk.bf16.mxu0 %vm631_vm6, %v9275_v41 }
  0xf1   : > { %6082 = vmatmul.mubr.msk.bf16.vlgmr.msra.gmra.mrb[0].mxu0 %vm631_vm6, %v9276_v12 }
  0xf2   : > { %6098 = vmatpush3.bf16.msra.mxu0 %v6725_v36  ;;  %6085 = vmatprep.mubr.msk.bf16.mxu0 %vm631_vm6, %v9277_v50 }
  0xf3   : > { %6099 = vmatprep.subr.bf16.mxu0 %v6726_v52 }
  0xf6   : > { %6100 = vmatpush3.bf16.msra.mxu0 %v6726_v52 }
  0xf7   : > { %6117 = vmatprep.subr.bf16.mxu0 %v6727_v59 }
  0xf9   : > { %6086 = vmatmul.mubr.msk.bf16.gmra.mrb[4].mxu0 %vm631_vm6, %v1602_v15 }
  0xfa   : > { %6089 = vmatprep.mubr.msk.bf16.mxu0 %vm631_vm6, %v9278_v7 }
 0x101   : > { %6090 = vmatmul.mubr.msk.bf16.gmra.mrb[8].mxu0 %vm631_vm6, %v9279_v46 }
 0x102   : > { %6093 = vmatprep.mubr.msk.bf16.mxu0 %vm631_vm6, %v1605_v63  ;;  %v585_v63 = vld [vmem:[#allocation2 + $0x90] sm:$0xff] }
 0x103   : > { %v1761_v18 = vpack.c.bf16 %v585_v63, %v7715_v11  ;;  %v1903_v20 = vrot.slane %v585_v63, 1  ;;  %v2049_v44 = vrot.slane %v585_v63, 2 }
 0x109   : > { %6094 = vmatmul.mubr.msk.bf16.gmra.mrb[12].mxu0 %vm631_vm6, %v1606_v25 }
 0x10a   : > { %6101 = vmatprep.mubr.msk.bf16.mxu0 %vm631_vm6, %v7346_v35  ;;  %v605_v35 = vld [vmem:[#allocation2 + $0x130] sm:$0xff] }
 0x10b   : > { %v2052_v13 = vrot.slane %v605_v35, 2 }
 0x111   : > { %6102 = vmatmul.mubr.msk.bf16.vlgmr.msra.gmra.mrb[0].mxu0 %vm631_vm6, %v7374_v53  ;;  %v1762_v53 = vpack.c.bf16 %v605_v35, %v7732_v27  ;;  %v1906_v27 = vrot.slane %v605_v35, 1 }
 0x112   : > { %6118 = vmatpush3.bf16.msra.mxu0 %v6727_v59  ;;  %6105 = vmatprep.mubr.msk.bf16.mxu0 %vm631_vm6, %v7414_v9  ;;  %v9280_v9 = vld [vmem:[#allocation8_spill] sm:$0xff] }
 0x113   : > { %6119 = vmatprep.subr.bf16.mxu0 %v6728_v19  ;;  %v1908_v38 = vsel %vm801_vm5, %v1906_v27, %v1907_v37 }
 0x114   : > { %v1912_v43 = vpack.c.bf16 %v1908_v38, %v7782_v0 }
 0x116   : > { %6120 = vmatpush3.bf16.msra.mxu0 %v6728_v19 }
 0x117   : > { %6137 = vmatprep.subr.bf16.mxu0 %v6729_v23 }
 0x119   : > { %6106 = vmatmul.mubr.msk.bf16.gmra.mrb[4].mxu0 %vm631_vm6, %v1761_v18 }
 0x11a   : > { %6109 = vmatprep.mubr.msk.bf16.mxu0 %vm631_vm6, %v7442_v48  ;;  %v6730_v48 = vld [vmem:[%s9238_s2 + $0x88] sm:$0xff]  }
 0x121   : > { %6110 = vmatmul.mubr.msk.bf16.gmra.mrb[8].mxu0 %vm631_vm6, %v7446_v62  ;;  %v9282_v62 = vld [vmem:[#allocation10_spill] sm:$0xff] }
 0x122   : > { %6113 = vmatprep.mubr.msk.bf16.mxu0 %vm631_vm6, %v7525_v47  ;;  %v1905_v47 = vsel %vm801_vm5, %v1903_v20, %v1904_v22 }
 0x123   : > { %v1911_v11 = vpack.c.bf16 %v1905_v47, %v7754_v17 }
 0x129   : > { %6114 = vmatmul.mubr.msk.bf16.gmra.mrb[12].mxu0 %vm631_vm6, %v1762_v53 }
 0x12a   : > { %6121 = vmatprep.mubr.msk.bf16.mxu0 %vm631_vm6, %v9280_v9 }
 0x131   : > { %6122 = vmatmul.mubr.msk.bf16.vlgmr.msra.gmra.mrb[0].mxu0 %vm631_vm6, %v9281_v60 }
 0x132   : > { %6138 = vmatpush3.bf16.msra.mxu0 %v6729_v23  ;;  %6125 = vmatprep.mubr.msk.bf16.mxu0 %vm631_vm6, %v9282_v62 }
 0x133   : > { %6139 = vmatprep.subr.bf16.mxu0 %v6730_v48 }
 0x136   : > { %6140 = vmatpush3.bf16.msra.mxu0 %v6730_v48 }
 0x139   : > { %6126 = vmatmul.mubr.msk.bf16.gmra.mrb[4].mxu0 %vm631_vm6, %v1911_v11 }
 0x13a   : > { %6129 = vmatprep.mubr.msk.bf16.mxu0 %vm631_vm6, %v7614_v56  ;;  %v2050_v56 = vrot.slane %v586_v1, 2 }
 0x141   : > { %6130 = vmatmul.mubr.msk.bf16.gmra.mrb[8].mxu0 %vm631_vm6, %v7618_v54  ;;  %v2051_v54 = vsel %vm1028_vm7, %v2049_v44, %v2050_v56 }
 0x142   : > { %6133 = vmatprep.mubr.msk.bf16.mxu0 %vm631_vm6, %v7641_v28  ;;  %v2057_v28 = vpack.c.bf16 %v2051_v54, %v7806_v33 }
 0x149   : > { %6134 = vmatmul.mubr.msk.bf16.gmra.mrb[12].mxu0 %vm631_vm6, %v1912_v43 }
 0x14a   : > { %6141 = vmatprep.mubr.msk.bf16.mxu0 %vm631_vm6, %v7649_v29  ;;  %v2054_v29 = vsel %vm1028_vm7, %v2052_v13, %v2053_v21 }
 0x151   : > { %6142 = vmatmul.mubr.msk.bf16.vlgmr.msra.gmra.mrb[0].mxu0 %vm631_vm6, %v7653_v14  ;;  %v2058_v14 = vpack.c.bf16 %v2054_v29, %v1596_v10  ;;  %v2308_v29 = vld [vmem:[#allocation3 + $0x8] sm:$0xff] }
 0x152   : > { %6145 = vmatprep.mubr.msk.bf16.mxu0 %vm631_vm6, %v7675_v58 }
 0x159   : > { %6146 = vmatmul.mubr.msk.bf16.gmra.mrb[4].mxu0 %vm631_vm6, %v2057_v28 }
 0x15a   : > { %6149 = vmatprep.mubr.msk.bf16.mxu0 %vm631_vm6, %v7683_v40 }
 0x161   : > { %6150 = vmatmul.mubr.msk.bf16.gmra.mrb[8].mxu0 %vm631_vm6, %v7687_v42  ;;  %v5971_v58 = vpop.f32.mrb[0].mxu1  ;;  %v7893_v42 = vld [vmem:[%s9239_s3] ss:$0 sm:$0xff] }
 0x162   : > { %6153 = vmatprep.mubr.msk.bf16.mxu0 %vm631_vm6, %v7699_v39  ;;  %v536_v51 = vpop.f32.mrb[1].mxu1  ;;  %v545_v6 = vadd.f32 %v5971_v58, %v7893_v42  ;;  %v2311_v58 = vld [vmem:[#allocation3 + $0x20] sm:$0xff] }
 0x163   : > { %v5972_v34 = vpop.f32.mrb[2].mxu1  ;;  %v537_v50 = vadd.f32 %v7893_v42, %v536_v51  ;;  %v2309_v51 = vld [vmem:[#allocation3 + $0x10] sm:$0xff] }
 0x164   : > { %v539_v17 = vpop.f32.mrb[3].mxu1  ;;  %v548_v15 = vadd.f32 %v5972_v34, %v7893_v42  ;;  %v2313_v34 = vld [vmem:[#allocation3 + $0x30] sm:$0xff] }
 0x165   : > { %v540_v46 = vadd.f32 %v7893_v42, %v539_v17  ;;  %v2310_v17 = vld [vmem:[#allocation3 + $0x18] sm:$0xff] }
 0x169   : > { %6154 = vmatmul.mubr.msk.bf16.gmra.mrb[12].mxu0 %vm631_vm6, %v2058_v14  ;;  %v2307_v14 = vld [vmem:[#allocation3] sm:$0xff] }
 0x18a   : > { %v5975_v36 = vpop.f32.mrb[4].mxu1 }
 0x18b   : > { %v552_v31 = vpop.f32.mrb[5].mxu1  ;;  %v561_v35 = vadd.f32 %v5975_v36, %v7893_v42  ;;  %v2316_v36 = vld [vmem:[#allocation3 + $0x48] sm:$0xff] }
 0x18c   : > { %v5976_v40 = vpop.f32.mrb[6].mxu1  ;;  %v553_v9 = vadd.f32 %v7893_v42, %v552_v31  ;;  %v2312_v31 = vld [vmem:[#allocation3 + $0x28] sm:$0xff] }
 0x18d   : > { %v555_v32 = vpop.f32.mrb[7].mxu1  ;;  %v564_v1 = vadd.f32 %v5976_v40, %v7893_v42  ;;  %v2315_v40 = vld [vmem:[#allocation3 + $0x40] sm:$0xff] }
 0x18e   : > { %v556_v22 = vadd.f32 %v7893_v42, %v555_v32  ;;  %v2317_v32 = vld [vmem:[#allocation3 + $0x50] sm:$0xff] }
 0x224   : > { %v6143_v45 = vpop.f32.mrb[0].mxu0 }
 0x225   : > { %v7896_v39 = vadd.f32 %v6143_v45, %v7893_v42  ;;  %v2116_v4 = vpop.f32.mrb[1].mxu0 }
 0x226   : > { %v7899_v55 = vadd.f32 %v7893_v42, %v2116_v4  ;;  %v6144_v57 = vpop.f32.mrb[2].mxu0 }
 0x227   : > { %6771 = vtanh.f32 %v7896_v39  ;;  %v2119_v16 = vpop.f32.mrb[3].mxu0  ;;  %v7904_v49 = vadd.f32 %v6144_v57, %v7893_v42  ;;  %v5537_v45 = vmul.f32 -1.442695, %v7896_v39 }
 0x228   : > { %6773 = vtanh.f32 %v7899_v55  ;;  %v7907_v61 = vadd.f32 %v7893_v42, %v2119_v16  ;;  %v5535_v4 = vmul.f32 -1.442695, %v7899_v55 }
 0x229   : > { %6775 = vtanh.f32 %v7904_v49  ;;  %v5538_v57 = vmul.f32 -1.442695, %v7904_v49 }
 0x22a   : > { %6777 = vtanh.f32 %v7907_v61  ;;  %v5536_v16 = vmul.f32 -1.442695, %v7907_v61 }
 0x22c   : > { %v6147_v5 = vpop.f32.mrb[4].mxu0 }
 0x22d   : > { %v2132_v30 = vpop.f32.mrb[5].mxu0  ;;  %v7919_v12 = vadd.f32 %v6147_v5, %v7893_v42 }
 0x22e   : > { %v7912_v0 = vadd.f32 %v7893_v42, %v2132_v30  ;;  %v7914_v24 = vpop.f32.mrb[6].mxu0 }
 0x22f   : > { %v2135_v41 = vpop.f32.mrb[7].mxu0  ;;  %v5541_v30 = vmul.f32 -1.442695, %v7919_v12 }
 0x230   : > { %6779 = vtanh.f32 %v7912_v0  ;;  %v7925_v59 = vadd.f32 %v7893_v42, %v2135_v41  ;;  %v5539_v39 = vmul.f32 -1.442695, %v7912_v0 }
 0x231   : > { %v6772_v2 = vpop.eup %6771  ;;  %6781 = vtanh.f32 %v7919_v12 }
 0x232   : > { %v6774_v52 = vpop.eup %6773  ;;  %2423 = vrot.lane.b32.xlu1 %v6772_v2, %s7066_s17  ;;  %6783 = vtanh.f32 %v7925_v59  ;;  %v5540_v41 = vmul.f32 -1.442695, %v7925_v59 }
 0x233   : > { %2419 = vrot.lane.b32.xlu0 %v6774_v52, %s7066_s17  ;;  %v6776_v3 = vpop.eup %6775 }
 0x234   : > { %v6151_v33 = vpop.f32.mrb[8].mxu0  ;;  %v6778_v23 = vpop.eup %6777 }
 0x235   : > { %v7928_v7 = vadd.f32 %v6151_v33, %v545_v6  ;;  %v2148_v8 = vpop.f32.mrb[9].mxu0 }
 0x236   : > { %v7932_v10 = vadd.f32 %v2148_v8, %v537_v50  ;;  %v6152_v25 = vpop.f32.mrb[10].mxu0  ;;  %2425 = vrot.lane.b32.xlu1 %v6776_v3, %s7066_s17 }
 0x237   : > { %v7935_v19 = vadd.f32 %v6152_v25, %v548_v15  ;;  %v2151_v63 = vpop.f32.mrb[11].mxu0  ;;  %2421 = vrot.lane.b32.xlu0 %v6778_v23, %s7066_s17  ;;  %v5545_v12 = vmul.f32 -1.442695, %v7928_v7 }
 0x238   : > { %v7937_v18 = vadd.f32 %v2151_v63, %v540_v46  ;;  %6785 = vtanh.f32 %v7932_v10  ;;  %v5543_v23 = vmul.f32 -1.442695, %v7932_v10 }
 0x239   : > { %6787 = vtanh.f32 %v7928_v7  ;;  %v5546_v7 = vmul.f32 -1.442695, %v7935_v19 }
 0x23a   : > { %v6780_v53 = vpop.eup %6779  ;;  %6789 = vtanh.f32 %v7937_v18  ;;  %v5544_v8 = vmul.f32 -1.442695, %v7937_v18 }
 0x23b   : > { %2427 = vrot.lane.b32.xlu0 %v6780_v53, %s7066_s17  ;;  %v6782_v27 = vpop.eup %6781  ;;  %6791 = vtanh.f32 %v7935_v19 }
 0x23c   : > { %v6155_v20 = vpop.f32.mrb[12].mxu0  ;;  %v6784_v38 = vpop.eup %6783 }
 0x23d   : > { %v7946_v48 = vadd.f32 %v6155_v20, %v561_v35  ;;  %v2164_v60 = vpop.f32.mrb[13].mxu0  ;;  %2429 = vrot.lane.b32.xlu1 %v6784_v38, %s7066_s17 }
 0x23e   : > { %v7948_v62 = vadd.f32 %v2164_v60, %v553_v9  ;;  %v6156_v47 = vpop.f32.mrb[14].mxu0  ;;  %v2319_v60 = vld [vmem:[#allocation3 + $0x60] sm:$0xff] }
 0x23f   : > { %v7950_v11 = vadd.f32 %v6156_v47, %v564_v1  ;;  %v2167_v26 = vpop.f32.mrb[15].mxu0  ;;  %2431 = vrot.lane.b32.xlu0 %v6782_v27, %s7066_s17 }
 0x240   : > { %v7952_v37 = vadd.f32 %v2167_v26, %v556_v22  ;;  %6793 = vtanh.f32 %v7948_v62  ;;  %v5547_v47 = vmul.f32 -1.442695, %v7948_v62 }
 0x241   : > { %6795 = vtanh.f32 %v7946_v48 }
 0x242   : > { %v6786_v43 = vpop.eup %6785  ;;  %6797 = vtanh.f32 %v7952_v37  ;;  %v5548_v27 = vmul.f32 -1.442695, %v7952_v37 }
 0x243   : > { %2435 = vrot.lane.b32.xlu1 %v6786_v43, %s7066_s17  ;;  %v6788_v44 = vpop.eup %6787  ;;  %6799 = vpow2.f32 %v5537_v45 }
 0x244   : > { %v6790_v56 = vpop.eup %6789  ;;  %6801 = vpow2.f32 %v5535_v4 }
 0x245   : > { %2437 = vrot.lane.b32.xlu0 %v6790_v56, %s7066_s17  ;;  %v6792_v54 = vpop.eup %6791  ;;  %6803 = vpow2.f32 %v5538_v57 }
 0x246   : > { %6805 = vpow2.f32 %v5536_v16 }
 0x247   : > { %2439 = vrot.lane.b32.xlu1 %v6788_v44, %s7066_s17  ;;  %6807 = vpow2.f32 %v5541_v30  ;;  %v2318_v44 = vld [vmem:[#allocation3 + $0x58] sm:$0xff] }
 0x248   : > { %6809 = vpow2.f32 %v5540_v41 }
 0x249   : > { %2441 = vrot.lane.b32.xlu0 %v6792_v54, %s7066_s17 }
 0x24a   : > { %v6794_v28 = vpop.eup %6793 }
 0x24b   : > { %2443 = vrot.lane.b32.xlu1 %v6794_v28, %s7066_s17  ;;  %v6796_v13 = vpop.eup %6795  ;;  %v5549_v28 = vmul.f32 -1.442695, %v7946_v48 }
 0x24c   : > { %v6798_v21 = vpop.eup %6797 }
 0x24d   : > { %2445 = vrot.lane.b32.xlu0 %v6798_v21, %s7066_s17  ;;  %v6800_v5 = vpop.eup %6799 }
 0x24e   : > { %v2245_v2 = vadd.f32 1.0, %v6800_v5  ;;  %v6802_v6 = vpop.eup %6801 }
 0x24f   : > { %2447 = vrot.lane.b32.xlu1 %v6796_v13, %s7066_s17  ;;  %v6804_v52 = vpop.eup %6803  ;;  %v2243_v55 = vadd.f32 1.0, %v6802_v6 }
 0x250   : > { %6811 = vrcp.f32 %v2245_v2  ;;  %v2246_v49 = vadd.f32 1.0, %v6804_v52  ;;  %v6806_v50 = vpop.eup %6805 }
 0x251   : > { %2339 = vrot.lane.b32.xlu0 %v2307_v14, %s7066_s17  ;;  %6813 = vpow2.f32 %v5539_v39  ;;  %v2244_v61 = vadd.f32 1.0, %v6806_v50  ;;  %v6808_v33 = vpop.eup %6807  ;;  %v8036_v50 = vadd.f32 %v7914_v24, %v7893_v42 }
 0x252   : > { %6815 = vrcp.f32 %v2243_v55  ;;  %v6810_v15 = vpop.eup %6809  ;;  %v2249_v0 = vadd.f32 1.0, %v6808_v33 }
 0x253   : > { %2341 = vrot.lane.b32.xlu1 %v2308_v29, %s7066_s17  ;;  %6817 = vrcp.f32 %v2246_v49  ;;  %v2248_v35 = vadd.f32 1.0, %v6810_v15 }
 0x254   : > { %6819 = vrcp.f32 %v2244_v61 }
 0x255   : > { %2343 = vrot.lane.b32.xlu0 %v2309_v51, %s7066_s17  ;;  %6821 = vpow2.f32 %v5545_v12 }
 0x256   : > { %6823 = vpow2.f32 %v5544_v8 }
 0x257   : > { %2347 = vrot.lane.b32.xlu1 %v2311_v58, %s7066_s17  ;;  %6825 = vrcp.f32 %v2249_v0 }
 0x258   : > { %6827 = vpow2.f32 %v5543_v23 }
 0x259   : > { %2345 = vrot.lane.b32.xlu0 %v2310_v17, %s7066_s17  ;;  %6829 = vrcp.f32 %v2248_v35 }
 0x25a   : > { %v7988_v59 = vpop.eup %6811  ;;  %6831 = vpow2.f32 %v5546_v7 }
 0x25b   : > { %2351 = vrot.lane.b32.xlu1 %v2313_v34, %s7066_s17  ;;  %v6814_v63 = vpop.eup %6813 }
 0x25c   : > { %v7994_v53 = vpop.eup %6815  ;;  %v2247_v18 = vadd.f32 1.0, %v6814_v63 }
 0x25d   : > { %2349 = vrot.lane.b32.xlu0 %v2312_v31, %s7066_s17  ;;  %v7997_v9 = vpop.eup %6817 }
 0x25e   : > { %v8003_v19 = vpop.eup %6819  ;;  %6833 = vrcp.f32 %v2247_v18 }
 0x25f   : > { %2357 = vrot.lane.b32.xlu1 %v2316_v36, %s7066_s17  ;;  %v6822_v43 = vpop.eup %6821  ;;  %6835 = vpow2.f32 %v5547_v47 }
 0x260   : > { %v6824_v56 = vpop.eup %6823  ;;  %6837 = vpow2.f32 %v5548_v27  ;;  %v2253_v21 = vadd.f32 1.0, %v6822_v43 }
 0x261   : > { %2355 = vrot.lane.b32.xlu0 %v2315_v40, %s7066_s17  ;;  %v8010_v54 = vpop.eup %6825  ;;  %v2252_v14 = vadd.f32 1.0, %v6824_v56  ;;  %6839 = vpow2.f32 %v5549_v28  ;;  %v2320_v40 = vld [vmem:[#allocation3 + $0x68] sm:$0xff] }
 0x262   : > { %v6828_v62 = vpop.eup %6827  ;;  %6841 = vrcp.f32 %v2253_v21 }
 0x263   : > { %v8015_v37 = vpop.eup %6829  ;;  %v2251_v17 = vadd.f32 1.0, %v6828_v62  ;;  %6843 = vrcp.f32 %v2252_v14 }
 0x264   : > { %v6832_v58 = vpop.eup %6831 }
 0x265   : > { %2359 = vrot.lane.b32.xlu0 %v2317_v32, %s7066_s17  ;;  %v2254_v31 = vadd.f32 1.0, %v6832_v58  ;;  %6845 = vrcp.f32 %v2251_v17 }
 0x267   : > { %6847 = vrcp.f32 %v2254_v31 }
 0x268   : > { %v8018_v34 = vpop.eup %6833 }
 0x269   : > { %v6836_v32 = vpop.eup %6835 }
 0x26a   : > { %v6838_v45 = vpop.eup %6837  ;;  %v2255_v57 = vadd.f32 1.0, %v6836_v32 }
 0x26b   : > { %v2256_v16 = vadd.f32 1.0, %v6838_v45  ;;  %v6840_v5 = vpop.eup %6839 }
 0x26c   : > { %v8025_v30 = vpop.eup %6841  ;;  %6849 = vrcp.f32 %v2255_v57  ;;  %v2257_v39 = vadd.f32 1.0, %v6840_v5 }
 0x26d   : > { %v8027_v2 = vpop.eup %6843  ;;  %6851 = vrcp.f32 %v2256_v16 }
 0x26e   : > { %6853 = vrcp.f32 %v2257_v39 }
 0x26f   : > { %v8032_v49 = vpop.eup %6845  ;;  %6855 = vtanh.f32 %v8036_v50 }
 0x270   : > { %6857 = vtanh.f32 %v7950_v11 }
 0x271   : > { %v8039_v61 = vpop.eup %6847 }
 0x276   : > { %v8046_v42 = vpop.eup %6849 }
 0x277   : > { %v8049_v24 = vpop.eup %6851 }
 0x278   : > { %v8056_v23 = vpop.eup %6853 }
 0x279   : > { %v6856_v7 = vpop.eup %6855 }
 0x27a   : > { %v6858_v18 = vpop.eup %6857 }
 0x2a4   : > { %v2424_v3 = vpop.permute.xlu1 %2423 }
 0x2a5   : > { %v2469_v46 = vmul.f32 %v7988_v59, %v2424_v3  ;;  %v2420_v25 = vpop.permute.xlu0 %2419  ;;  %v2321_v3 = vld [vmem:[#allocation3 + $0x70] sm:$0xff] }
 0x2a6   : > { %v2467_v1 = vmul.f32 %v7994_v53, %v2420_v25 }
 0x2a7   : > { %2503 = vrot.lane.b32.xlu1 %v2469_v46, %s7066_s17 }
 0x2a8   : > { %v2426_v20 = vpop.permute.xlu1 %2425 }
 0x2a9   : > { %v2470_v22 = vmul.f32 %v7997_v9, %v2426_v20  ;;  %v2422_v10 = vpop.permute.xlu0 %2421 }
 0x2aa   : > { %v2468_v26 = vmul.f32 %v8003_v19, %v2422_v10 }
 0x2ab   : > { %2499 = vrot.lane.b32.xlu1 %v2467_v1, %s7066_s17  ;;  %2505 = vrot.lane.b32.xlu0 %v2470_v22, %s7066_s17 }
 0x2ad   : > { %v2428_v38 = vpop.permute.xlu0 %2427 }
 0x2ae   : > { %v2471_v36 = vmul.f32 %v8018_v34, %v2428_v38 }
 0x2af   : > { %2363 = vrot.lane.b32.xlu1 %v2319_v60, %s7066_s17  ;;  %2501 = vrot.lane.b32.xlu0 %v2468_v26, %s7066_s17  ;;  %v2430_v51 = vpop.permute.xlu1 %2429 }
 0x2b0   : > { %v2472_v48 = vmul.f32 %v8015_v37, %v2430_v51 }
 0x2b1   : > { %v2432_v13 = vpop.permute.xlu0 %2431 }
 0x2b2   : > { %v2473_v29 = vmul.f32 %v8010_v54, %v2432_v13 }
 0x2b3   : > { %2361 = vrot.lane.b32.xlu0 %v2318_v44, %s7066_s17 }
 0x2b4   : > { %2511 = vrot.lane.b32.xlu1 %v2473_v29, %s7066_s17 }
 0x2b5   : > { %v2436_v4 = vpop.permute.xlu1 %2435 }
 0x2b6   : > { %v2475_v33 = vmul.f32 %v8032_v49, %v2436_v4 }
 0x2b7   : > { %2509 = vrot.lane.b32.xlu0 %v2472_v48, %s7066_s17  ;;  %v2438_v6 = vpop.permute.xlu0 %2437 }
 0x2b8   : > { %2507 = vrot.lane.b32.xlu1 %v2471_v36, %s7066_s17  ;;  %v2476_v55 = vmul.f32 %v8027_v2, %v2438_v6 }
 0x2b9   : > { %v2440_v41 = vpop.permute.xlu1 %2439 }
 0x2ba   : > { %v2477_v52 = vmul.f32 %v8025_v30, %v2440_v41 }
 0x2bb   : > { %2365 = vrot.lane.b32.xlu0 %v2320_v40, %s7066_s17  ;;  %v2442_v15 = vpop.permute.xlu0 %2441 }
 0x2bc   : > { %2519 = vrot.lane.b32.xlu1 %v2477_v52, %s7066_s17  ;;  %v2478_v12 = vmul.f32 %v8039_v61, %v2442_v15 }
 0x2bd   : > { %v2444_v8 = vpop.permute.xlu1 %2443 }
 0x2be   : > { %v2479_v46 = vmul.f32 %v8046_v42, %v2444_v8 }
 0x2bf   : > { %2517 = vrot.lane.b32.xlu0 %v2476_v55, %s7066_s17  ;;  %v2446_v0 = vpop.permute.xlu0 %2445 }
 0x2c0   : > { %2515 = vrot.lane.b32.xlu1 %v2475_v33, %s7066_s17  ;;  %v2480_v25 = vmul.f32 %v8049_v24, %v2446_v0  ;;  %v5542_v0 = vmul.f32 -1.442695, %v8036_v50 }
 0x2c1   : > { %v2448_v63 = vpop.permute.xlu1 %2447 }
 0x2c2   : > { %v2481_v35 = vmul.f32 %v8056_v23, %v2448_v63 }
 0x2c3   : > { %2521 = vrot.lane.b32.xlu0 %v2478_v12, %s7066_s17  ;;  %v2340_v1 = vpop.permute.xlu0 %2339 }
 0x2c4   : > { %2367 = vrot.lane.b32.xlu1 %v2321_v3, %s7066_s17  ;;  %v2387_v56 = vmul.f32 %v7994_v53, %v2340_v1  ;;  %v5550_v1 = vmul.f32 -1.442695, %v7950_v11 }
 0x2c5   : > { %v2342_v22 = vpop.permute.xlu1 %2341 }
 0x2c6   : > { %v2388_v14 = vmul.f32 %v8003_v19, %v2342_v22 }
 0x2c7   : > { %2525 = vrot.lane.b32.xlu0 %v2480_v25, %s7066_s17  ;;  %v2344_v20 = vpop.permute.xlu0 %2343 }
 0x2c8   : > { %2523 = vrot.lane.b32.xlu1 %v2479_v46, %s7066_s17  ;;  %v2389_v13 = vmul.f32 %v7988_v59, %v2344_v20 }
 0x2c9   : > { %v2348_v60 = vpop.permute.xlu1 %2347 }
 0x2ca   : > { %v2391_v4 = vmul.f32 %v8018_v34, %v2348_v60 }
 0x2cb   : > { %2433 = vrot.lane.b32.xlu0 %v6856_v7, %s7066_s17  ;;  %v2346_v10 = vpop.permute.xlu0 %2345 }
 0x2cc   : > { %2527 = vrot.lane.b32.xlu1 %v2481_v35, %s7066_s17  ;;  %v2390_v48 = vmul.f32 %v7997_v9, %v2346_v10 }
 0x2cd   : > { %v2352_v26 = vpop.permute.xlu1 %2351 }
 0x2ce   : > { %v2393_v41 = vmul.f32 %v8010_v54, %v2352_v26 }
 0x2cf   : > { %v2350_v47 = vpop.permute.xlu0 %2349 }
 0x2d0   : > { %2449 = vrot.lane.b32.xlu1 %v6858_v18, %s7066_s17  ;;  %v2392_v45 = vmul.f32 %v8015_v37, %v2350_v47 }
 0x2d1   : > { %v2358_v38 = vpop.permute.xlu1 %2357 }
 0x2d2   : > { %v2396_v12 = vmul.f32 %v8027_v2, %v2358_v38 }
 0x2d3   : > { %v2356_v27 = vpop.permute.xlu0 %2355 }
 0x2d4   : > { %v2395_v35 = vmul.f32 %v8032_v49, %v2356_v27 }
 0x2d7   : > { %v2360_v44 = vpop.permute.xlu0 %2359 }
 0x2d8   : > { %v2397_v50 = vmul.f32 %v8025_v30, %v2360_v44 }
 0x319   : > { %v2504_v43 = vpop.permute.xlu1 %2503 }
 0x31a   : > { %v8066_v29 = vadd.f32 %v2504_v43, %v2389_v13 }
 0x31d   : > { %v2500_v28 = vpop.permute.xlu1 %2499  ;;  %v2506_v21 = vpop.permute.xlu0 %2505 }
 0x31e   : > { %v8064_v62 = vadd.f32 %v2500_v28, %v2387_v56  ;;  %v8074_v36 = vadd.f32 %v2506_v21, %v2390_v48 }
 0x320   : > { %6859 = vtanh.f32 %v8064_v62 }
 0x321   : > { %v2364_v58 = vpop.permute.xlu1 %2363  ;;  %v2502_v51 = vpop.permute.xlu0 %2501  ;;  %6861 = vtanh.f32 %v8066_v29 }
 0x322   : > { %v8071_v17 = vadd.f32 %v2502_v51, %v2388_v14  ;;  %v2399_v11 = vmul.f32 %v8046_v42, %v2364_v58 }
 0x324   : > { %6863 = vtanh.f32 %v8071_v17 }
 0x325   : > { %v2362_v31 = vpop.permute.xlu0 %2361  ;;  %6865 = vtanh.f32 %v8074_v36 }
 0x326   : > { %v2512_v40 = vpop.permute.xlu1 %2511  ;;  %v2398_v7 = vmul.f32 %v8039_v61, %v2362_v31 }
 0x327   : > { %v8087_v55 = vadd.f32 %v2512_v40, %v2393_v41 }
 0x329   : > { %v2510_v57 = vpop.permute.xlu0 %2509 }
 0x32a   : > { %v6860_v32 = vpop.eup %6859  ;;  %v8081_v16 = vadd.f32 %v2510_v57, %v2392_v45  ;;  %v2508_v5 = vpop.permute.xlu1 %2507 }
 0x32b   : > { %2595 = vrot.lane.b32.xlu0 %v6860_v32, %s7066_s17  ;;  %v8084_v6 = vadd.f32 %v2508_v5, %v2391_v4  ;;  %v6862_v52 = vpop.eup %6861  ;;  %v2314_v5 = vld [vmem:[#allocation3 + $0x38] sm:$0xff] }
 0x32c   : > { %6867 = vtanh.f32 %v8081_v16 }
 0x32d   : > { %6869 = vtanh.f32 %v8084_v6  ;;  %v2366_v33 = vpop.permute.xlu0 %2365 }
 0x32e   : > { %v6864_v39 = vpop.eup %6863  ;;  %6871 = vtanh.f32 %v8087_v55  ;;  %v2520_v8 = vpop.permute.xlu1 %2519  ;;  %v2400_v27 = vmul.f32 %v8049_v24, %v2366_v33 }
 0x32f   : > { %2599 = vrot.lane.b32.xlu0 %v6862_v52, %s7066_s17  ;;  %2597 = vrot.lane.b32.xlu1 %v6864_v39, %s7066_s17  ;;  %v6866_v15 = vpop.eup %6865  ;;  %v8109_v47 = vadd.f32 %v2520_v8, %v2397_v50  ;;  %v2322_v39 = vld [vmem:[#allocation3 + $0x78] sm:$0xff] }
 0x331   : > { %v2518_v46 = vpop.permute.xlu0 %2517 }
 0x332   : > { %v8096_v63 = vadd.f32 %v2518_v46, %v2396_v12  ;;  %v2516_v18 = vpop.permute.xlu1 %2515  ;;  %v6736_v46 = vld [vmem:[%s9240_s4 + $0x8] sm:$0xff]  }
 0x333   : > { %2601 = vrot.lane.b32.xlu1 %v6866_v15, %s7066_s17  ;;  %v8105_v20 = vadd.f32 %v2516_v18, %v2395_v35  ;;  %v6738_v35 = vld [vmem:[%s9240_s4 + $0x18] sm:$0xff]  }
 0x334   : > { %6873 = vtanh.f32 %v8096_v63 }
 0x335   : > { %6875 = vpow2.f32 %v5542_v0  ;;  %v2522_v22 = vpop.permute.xlu0 %2521  ;;  %v6735_v0 = vld [vmem:[%s9240_s4] sm:$0xff]  }
 0x336   : > { %v6868_v3 = vpop.eup %6867  ;;  %v8107_v60 = vadd.f32 %v2522_v22, %v2398_v7  ;;  %6877 = vtanh.f32 %v8105_v20  ;;  %v2368_v26 = vpop.permute.xlu1 %2367  ;;  %6157 = vmatprep.subr.bf16.mxu1 %v6735_v0 }
 0x337   : > { %v6870_v25 = vpop.eup %6869  ;;  %2605 = vrot.lane.b32.xlu1 %v6868_v3, %s7066_s17  ;;  %v2401_v21 = vmul.f32 %v8056_v23, %v2368_v26  ;;  %6158 = vmatpush3.bf16.msra.mxu1 %v6735_v0 }
 0x338   : > { %2603 = vrot.lane.b32.xlu0 %v6870_v25, %s7066_s17  ;;  %v6872_v10 = vpop.eup %6871  ;;  %6879 = vtanh.f32 %v8107_v60  ;;  %6159 = vmatprep.subr.bf16.mxu1 %v6736_v46  ;;  %v6737_v25 = vld [vmem:[%s9240_s4 + $0x10] sm:$0xff]  }
 0x339   : > { %6881 = vpow2.f32 %v5550_v1  ;;  %v2526_v38 = vpop.permute.xlu0 %2525 }
 0x33a   : > { %6883 = vtanh.f32 %v8109_v47  ;;  %v2524_v43 = vpop.permute.xlu1 %2523  ;;  %v8117_v44 = vadd.f32 %v2526_v38, %v2400_v27 }
 0x33b   : > { %v8119_v56 = vadd.f32 %v2524_v43, %v2399_v11  ;;  %6160 = vmatpush3.bf16.msra.mxu1 %v6736_v46 }
 0x33c   : > { %2607 = vrot.lane.b32.xlu0 %v6872_v10, %s7066_s17  ;;  %6885 = vtanh.f32 %v8117_v44  ;;  %6161 = vmatprep.subr.bf16.mxu1 %v6737_v25 }
 0x33d   : > { %6887 = vtanh.f32 %v8119_v56  ;;  %v2434_v52 = vpop.permute.xlu0 %2433 }
 0x33e   : > { %v6874_v28 = vpop.eup %6873  ;;  %v2528_v14 = vpop.permute.xlu1 %2527 }
 0x33f   : > { %v6876_v13 = vpop.eup %6875  ;;  %v8125_v51 = vadd.f32 %v2528_v14, %v2401_v21  ;;  %6162 = vmatpush3.bf16.msra.mxu1 %v6737_v25 }
 0x340   : > { %2613 = vrot.lane.b32.xlu0 %v6874_v28, %s7066_s17  ;;  %v6878_v58 = vpop.eup %6877  ;;  %v2250_v31 = vadd.f32 1.0, %v6876_v13  ;;  %6163 = vmatprep.subr.bf16.mxu1 %v6738_v35 }
 0x341   : > { %2611 = vrot.lane.b32.xlu1 %v6878_v58, %s7066_s17  ;;  %6889 = vtanh.f32 %v8125_v51 }
 0x342   : > { %v6880_v48 = vpop.eup %6879  ;;  %6891 = vrcp.f32 %v2250_v31  ;;  %v2450_v12 = vpop.permute.xlu1 %2449 }
 0x343   : > { %v6882_v40 = vpop.eup %6881  ;;  %6164 = vmatpush3.bf16.msra.mxu1 %v6738_v35 }
 0x344   : > { %2617 = vrot.lane.b32.xlu0 %v6880_v48, %s7066_s17  ;;  %v6884_v32 = vpop.eup %6883  ;;  %v2258_v45 = vadd.f32 1.0, %v6882_v40 }
 0x345   : > { %2615 = vrot.lane.b32.xlu1 %v6884_v32, %s7066_s17 }
 0x346   : > { %v6886_v4 = vpop.eup %6885  ;;  %6893 = vrcp.f32 %v2258_v45 }
 0x347   : > { %v6888_v57 = vpop.eup %6887 }
 0x348   : > { %2621 = vrot.lane.b32.xlu0 %v6886_v4, %s7066_s17 }
 0x349   : > { %2619 = vrot.lane.b32.xlu1 %v6888_v57, %s7066_s17 }
 0x34b   : > { %v6890_v41 = vpop.eup %6889 }
 0x34c   : > { %2353 = vrot.lane.b32.xlu0 %v2314_v5, %s7066_s17  ;;  %v8135_v33 = vpop.eup %6891 }
 0x34d   : > { %2623 = vrot.lane.b32.xlu1 %v6890_v41, %s7066_s17  ;;  %v2474_v15 = vmul.f32 %v8135_v33, %v2434_v52 }
 0x350   : > { %2369 = vrot.lane.b32.xlu0 %v2322_v39, %s7066_s17  ;;  %v8140_v8 = vpop.eup %6893 }
 0x351   : > { %2513 = vrot.lane.b32.xlu1 %v2474_v15, %s7066_s17  ;;  %v2482_v3 = vmul.f32 %v8140_v8, %v2450_v12  ;;  %v8203_v12 = vld [vmem:[#allocation2] sm:$0xff] }
 0x355   : > { %2529 = vrot.lane.b32.xlu1 %v2482_v3, %s7066_s17 }
 0x39d   : > { %v2596_v7 = vpop.permute.xlu0 %2595 }
 0x39e   : > { %v2643_v18 = vmul.f32 %v7994_v53, %v2596_v7 }
 0x3a0   : > { %2755 = vrot.lane.b32.xlu0 %v2643_v18, %s7067_s27 }
 0x3a1   : > { %v2600_v1 = vpop.permute.xlu0 %2599  ;;  %v2598_v50 = vpop.permute.xlu1 %2597 }
 0x3a2   : > { %v2645_v22 = vmul.f32 %v7988_v59, %v2600_v1  ;;  %v2644_v10 = vmul.f32 %v8003_v19, %v2598_v50 }
 0x3a4   : > { %2759 = vrot.lane.b32.xlu0 %v2645_v22, %s7067_s27  ;;  %2757 = vrot.lane.b32.xlu1 %v2644_v10, %s7067_s27 }
 0x3a5   : > { %v2602_v26 = vpop.permute.xlu1 %2601 }
 0x3a6   : > { %v2646_v11 = vmul.f32 %v7997_v9, %v2602_v26 }
 0x3a8   : > { %2761 = vrot.lane.b32.xlu1 %v2646_v11, %s7067_s27 }
 0x3a9   : > { %v2606_v53 = vpop.permute.xlu1 %2605 }
 0x3aa   : > { %v2648_v27 = vmul.f32 %v8015_v37, %v2606_v53  ;;  %v2604_v38 = vpop.permute.xlu0 %2603 }
 0x3ab   : > { %v2647_v43 = vmul.f32 %v8018_v34, %v2604_v38 }
 0x3ac   : > { %2765 = vrot.lane.b32.xlu1 %v2648_v27, %s7067_s27  ;;  %v6740_v27 = vld [vmem:[%s9240_s4 + $0x28] sm:$0xff]  }
 0x3ad   : > { %2763 = vrot.lane.b32.xlu0 %v2647_v43, %s7067_s27 }
 0x3ae   : > { %v2608_v59 = vpop.permute.xlu0 %2607 }
 0x3af   : > { %v2649_v19 = vmul.f32 %v8010_v54, %v2608_v59  ;;  %v8179_v54 = vld [vmem:[%s9240_s4 + $0x20] sm:$0xff]  }
 0x3b0   : > { %6181 = vmatprep.subr.bf16.mxu1 %v8179_v54 }
 0x3b1   : > { %2767 = vrot.lane.b32.xlu0 %v2649_v19, %s7067_s27 }
 0x3b2   : > { %v2614_v28 = vpop.permute.xlu0 %2613 }
 0x3b3   : > { %v2652_v9 = vmul.f32 %v8027_v2, %v2614_v28  ;;  %v2612_v13 = vpop.permute.xlu1 %2611 }
 0x3b4   : > { %v2651_v37 = vmul.f32 %v8032_v49, %v2612_v13 }
 0x3b5   : > { %2773 = vrot.lane.b32.xlu0 %v2652_v9, %s7067_s27 }
 0x3b6   : > { %v2618_v21 = vpop.permute.xlu0 %2617  ;;  %2771 = vrot.lane.b32.xlu1 %v2651_v37, %s7067_s27 }
 0x3b7   : > { %v2654_v34 = vmul.f32 %v8039_v61, %v2618_v21  ;;  %v2616_v14 = vpop.permute.xlu1 %2615 }
 0x3b8   : > { %v2653_v2 = vmul.f32 %v8025_v30, %v2616_v14 }
 0x3b9   : > { %2777 = vrot.lane.b32.xlu0 %v2654_v34, %s7067_s27 }
 0x3ba   : > { %2775 = vrot.lane.b32.xlu1 %v2653_v2, %s7067_s27  ;;  %v2622_v49 = vpop.permute.xlu0 %2621 }
 0x3bb   : > { %v2620_v58 = vpop.permute.xlu1 %2619  ;;  %v2656_v61 = vmul.f32 %v8049_v24, %v2622_v49 }
 0x3bc   : > { %v2655_v48 = vmul.f32 %v8046_v42, %v2620_v58 }
 0x3bd   : > { %2781 = vrot.lane.b32.xlu0 %v2656_v61, %s7067_s27 }
 0x3be   : > { %2779 = vrot.lane.b32.xlu1 %v2655_v48, %s7067_s27  ;;  %v2354_v31 = vpop.permute.xlu0 %2353  ;;  %v6741_v48 = vld [vmem:[%s9240_s4 + $0x30] sm:$0xff]  }
 0x3bf   : > { %v2624_v40 = vpop.permute.xlu1 %2623  ;;  %v2394_v30 = vmul.f32 %v8135_v33, %v2354_v31 }
 0x3c0   : > { %v2657_v32 = vmul.f32 %v8056_v23, %v2624_v40 }
 0x3c2   : > { %2783 = vrot.lane.b32.xlu1 %v2657_v32, %s7067_s27  ;;  %v2370_v4 = vpop.permute.xlu0 %2369 }
 0x3c3   : > { %v2514_v45 = vpop.permute.xlu1 %2513  ;;  %v2402_v42 = vmul.f32 %v8140_v8, %v2370_v4 }
 0x3c4   : > { %v8191_v57 = vadd.f32 %v2514_v45, %v2394_v30 }
 0x3c6   : > { %6895 = vtanh.f32 %v8191_v57 }
 0x3c7   : > { %v2530_v24 = vpop.permute.xlu1 %2529 }
 0x3c8   : > { %v8195_v5 = vadd.f32 %v2530_v24, %v2402_v42 }
 0x3ca   : > { %6897 = vtanh.f32 %v8195_v5 }
 0x3d0   : > { %v6896_v41 = vpop.eup %6895 }
 0x3d1   : > { %2609 = vrot.lane.b32.xlu0 %v6896_v41, %s7066_s17 }
 0x3d4   : > { %v6898_v23 = vpop.eup %6897 }
 0x3d5   : > { %2625 = vrot.lane.b32.xlu1 %v6898_v23, %s7066_s17 }
 0x412   : > { %v2756_v52 = vpop.permute.xlu0 %2755 }
 0x413   : > { %2804 = vst.msk [vmem:[#allocation2 + $0x11] sm:$0xff] %vm631_vm6, %v2756_v52 }
 0x416   : > { %v2760_v39 = vpop.permute.xlu0 %2759  ;;  %v2758_v15 = vpop.permute.xlu1 %2757 }
 0x417   : > { %2806 = vst.msk [vmem:[#allocation2 + $0x31] sm:$0xff] %vm631_vm6, %v2760_v39  ;;  %2805 = vst.msk [vmem:[#allocation2 + $0x21] sm:$0xff] %vm631_vm6, %v2758_v15  ;;  %v6742_v15 = vld [vmem:[%s9240_s4 + $0x38] sm:$0xff]  }
 0x41a   : > { %v8205_v3 = vld [vmem:[#allocation2 + $0x10] sm:$0xff]  ;;  %v2762_v0 = vpop.permute.xlu1 %2761  ;;  %v2823_v25 = vld [vmem:[#allocation2 + $0x18] sm:$0x3] }
 0x41b   : > { %v2861_v46 = vpack.c.bf16 %v8205_v3, %v8203_v12  ;;  %2807 = vst.msk [vmem:[#allocation2 + $0x41] sm:$0xff] %vm631_vm6, %v2762_v0  ;;  %v3080_v7 = vrot.slane %v8205_v3, 1  ;;  %v3081_v18 = vrot.slane %v2823_v25, 1  ;;  %v3322_v1 = vrot.slane %v8205_v3, 2 }
 0x41c   : > { %v3323_v26 = vrot.slane %v2823_v25, 2 }
 0x41d   : > { %6165 = vmatprep.mubr.msk.bf16.mxu1 %vm2901_vm8, %v2861_v46  ;;  %v8231_v9 = vsel %vm801_vm5, %v3080_v7, %v3081_v18 }
 0x41e   : > { %v8211_v35 = vld [vmem:[#allocation2 + $0x30] sm:$0xff]  ;;  %v8215_v50 = vld [vmem:[#allocation2 + $0x20] sm:$0xff]  ;;  %v2825_v22 = vld [vmem:[#allocation2 + $0x28] sm:$0x3]  ;;  %v2766_v11 = vpop.permute.xlu1 %2765 }
 0x41f   : > { %9283 = vst [vmem:[#allocation8_spill] sm:$0xff] %v8211_v35  ;;  %9284 = vst [vmem:[#allocation9_spill] sm:$0xff] %v8215_v50  ;;  %v2827_v10 = vld [vmem:[#allocation2 + $0x38] sm:$0x3]  ;;  %v8219_v53 = vpack.c.bf16 %v8211_v35, %v8215_v50  ;;  %v3083_v38 = vrot.slane %v8215_v50, 1  ;;  %v3084_v43 = vrot.slane %v2825_v22, 1  ;;  %v2764_v19 = vpop.permute.xlu0 %2763 }
 0x420   : > { %v3325_v59 = vrot.slane %v8215_v50, 2  ;;  %2809 = vst.msk [vmem:[#allocation2 + $0x61] sm:$0xff] %vm631_vm6, %v2766_v11  ;;  %v3326_v28 = vrot.slane %v2825_v22, 2  ;;  %2808 = vst.msk [vmem:[#allocation2 + $0x51] sm:$0xff] %vm631_vm6, %v2764_v19  ;;  %v3086_v37 = vrot.slane %v8211_v35, 1  ;;  %v3087_v21 = vrot.slane %v2827_v10, 1 }
 0x421   : > { %9285 = vst [vmem:[#allocation10_spill] sm:$0xff] %v8219_v53  ;;  %6166 = vmatmul.mubr.msk.bf16.vlgmr.msra.gmra.mrb[8].mxu1 %vm2901_vm8, %v8219_v53  ;;  %v8234_v13 = vsel %vm801_vm5, %v3083_v38, %v3084_v43  ;;  %v3328_v49 = vrot.slane %v8211_v35, 2  ;;  %v3329_v58 = vrot.slane %v2827_v10, 2  ;;  %v3077_v53 = vrot.slane %v8203_v12, 1 }
 0x422   : > { %v8237_v34 = vld [vmem:[#allocation2 + $0x40] sm:$0xff]  ;;  %6182 = vmatpush3.bf16.msra.mxu1 %v8179_v54  ;;  %v2829_v14 = vld [vmem:[#allocation2 + $0x48] sm:$0x3]  ;;  %v8241_v2 = vsel %vm1028_vm7, %v3325_v59, %v3326_v28  ;;  %v8251_v54 = vsel %vm1028_vm7, %v3322_v1, %v3323_v26  ;;  %v8258_v42 = vsel %vm801_vm5, %v3086_v37, %v3087_v21 }
 0x423   : > { %9286 = vst [vmem:[#allocation11_spill] sm:$0xff] %v8237_v34  ;;  %6183 = vmatprep.subr.bf16.mxu1 %v6740_v27  ;;  %v3089_v31 = vrot.slane %v8237_v34, 1  ;;  %v3090_v40 = vrot.slane %v2829_v14, 1  ;;  %v3331_v32 = vrot.slane %v8237_v34, 2  ;;  %v2768_v30 = vpop.permute.xlu0 %2767  ;;  %v3332_v45 = vrot.slane %v2829_v14, 2  ;;  %v8299_v28 = vld [vmem:[%s9240_s4 + $0x40] sm:$0xff]  }
 0x424   : > { %2810 = vst.msk [vmem:[#allocation2 + $0x71] sm:$0xff] %vm631_vm6, %v2768_v30  ;;  %v8266_v23 = vsel %vm1028_vm7, %v3328_v49, %v3329_v58 }
 0x425   : > { %v8261_v24 = vsel %vm801_vm5, %v3089_v31, %v3090_v40  ;;  %v8269_v52 = vsel %vm1028_vm7, %v3331_v32, %v3332_v45 }
 0x426   : > { %6184 = vmatpush3.bf16.msra.mxu1 %v6740_v27 }
 0x427   : > { %v8271_v39 = vld [vmem:[#allocation2 + $0x60] sm:$0xff]  ;;  %6185 = vmatprep.subr.bf16.mxu1 %v6741_v48  ;;  %v2833_v0 = vld [vmem:[#allocation2 + $0x68] sm:$0x3]  ;;  %v8278_v25 = vld [vmem:[#allocation2 + $0x50] sm:$0xff]  ;;  %v2774_v37 = vpop.permute.xlu0 %2773 }
 0x428   : > { %9287 = vst [vmem:[#allocation12_spill] sm:$0xff] %v8271_v39  ;;  %9288 = vst [vmem:[#allocation13_spill] sm:$0xff] %v8278_v25  ;;  %v2831_v7 = vld [vmem:[#allocation2 + $0x58] sm:$0x3]  ;;  %v3095_v18 = vrot.slane %v8271_v39, 1  ;;  %v3096_v1 = vrot.slane %v2833_v0, 1  ;;  %v8284_v10 = vpack.c.bf16 %v8278_v25, %v8237_v34  ;;  %v2772_v40 = vpop.permute.xlu1 %2771 }
 0x429   : > { %v3337_v22 = vrot.slane %v8271_v39, 2  ;;  %v3092_v26 = vrot.slane %v8278_v25, 1  ;;  %v3093_v11 = vrot.slane %v2831_v7, 1  ;;  %v3334_v27 = vrot.slane %v8278_v25, 2  ;;  %2813 = vst.msk [vmem:[#allocation2 + $0xc1] sm:$0xff] %vm631_vm6, %v2774_v37  ;;  %2812 = vst.msk [vmem:[#allocation2 + $0xb1] sm:$0xff] %vm631_vm6, %v2772_v40 }
 0x42a   : > { %9289 = vst [vmem:[#allocation14_spill] sm:$0xff] %v8284_v10  ;;  %6186 = vmatpush3.bf16.msra.mxu1 %v6741_v48  ;;  %v8289_v38 = vsel %vm801_vm5, %v3095_v18, %v3096_v1  ;;  %v3335_v43 = vrot.slane %v2831_v7, 2  ;;  %v3338_v59 = vrot.slane %v2833_v0, 2  ;;  %6169 = vmatprep.mubr.msk.bf16.mxu1 %vm2901_vm8, %v8284_v10  ;;  %v8326_v0 = vld [vmem:[#allocation2 + $0xa0] sm:$0xff] }
 0x42b   : > { %6187 = vmatprep.subr.bf16.mxu1 %v6742_v15  ;;  %v8294_v19 = vsel %vm801_vm5, %v3092_v26, %v3093_v11  ;;  %v8301_v21 = vld [vmem:[#allocation2 + $0x70] sm:$0xff]  ;;  %v2778_v32 = vpop.permute.xlu0 %2777 }
 0x42c   : > { %v8304_v14 = vsel %vm1028_vm7, %v3334_v27, %v3335_v43  ;;  %v8307_v49 = vsel %vm1028_vm7, %v3337_v22, %v3338_v59  ;;  %v8314_v48 = vpack.c.bf16 %v8301_v21, %v8271_v39  ;;  %2815 = vst.msk [vmem:[#allocation2 + $0xe1] sm:$0xff] %vm631_vm6, %v2778_v32  ;;  %v2776_v30 = vpop.permute.xlu1 %2775 }
 0x42d   : > { %2814 = vst.msk [vmem:[#allocation2 + $0xd1] sm:$0xff] %vm631_vm6, %v2776_v30 }
 0x42e   : > { %9290 = vst [vmem:[#allocation15_spill] sm:$0xff] %v8314_v48  ;;  %6188 = vmatpush3.bf16.msra.mxu1 %v6742_v15 }
 0x42f   : > { %6170 = vmatmul.mubr.msk.bf16.gmra.mrb[12].mxu1 %vm2901_vm8, %v8314_v48  ;;  %6205 = vmatprep.subr.bf16.mxu1 %v8299_v28  ;;  %v2782_v26 = vpop.permute.xlu0 %2781 }
 0x430   : > { %v8324_v45 = vld [vmem:[#allocation2 + $0xc0] sm:$0xff]  ;;  %v2845_v15 = vld [vmem:[#allocation2 + $0xc8] sm:$0x3]  ;;  %v8330_v11 = vld [vmem:[#allocation2 + $0xb0] sm:$0xff]  ;;  %v2780_v59 = vpop.permute.xlu1 %2779  ;;  %2817 = vst.msk [vmem:[#allocation2 + $0x101] sm:$0xff] %vm631_vm6, %v2782_v26 }
 0x431   : > { %9291 = vst [vmem:[#allocation16_spill] sm:$0xff] %v8324_v45  ;;  %v3107_v7 = vrot.slane %v8324_v45, 1  ;;  %v3108_v18 = vrot.slane %v2845_v15, 1  ;;  %v3349_v1 = vrot.slane %v8324_v45, 2  ;;  %v3350_v22 = vrot.slane %v2845_v15, 2  ;;  %9292 = vst [vmem:[#allocation17_spill] sm:$0xff] %v8330_v11 }
 0x432   : > { %v2843_v27 = vld [vmem:[#allocation2 + $0xb8] sm:$0x3]  ;;  %v2865_v37 = vpack.c.bf16 %v8330_v11, %v8326_v0  ;;  %v3104_v32 = vrot.slane %v8330_v11, 1  ;;  %v3346_v15 = vrot.slane %v8330_v11, 2  ;;  %2816 = vst.msk [vmem:[#allocation2 + $0xf1] sm:$0xff] %vm631_vm6, %v2780_v59 }
 0x433   : > { %v8333_v43 = vsel %vm801_vm5, %v3107_v7, %v3108_v18  ;;  %v8338_v40 = vld [vmem:[#allocation2 + $0xe0] sm:$0xff]  ;;  %v3105_v30 = vrot.slane %v2843_v27, 1  ;;  %v2849_v31 = vld [vmem:[#allocation2 + $0xe8] sm:$0x3]  ;;  %v3347_v18 = vrot.slane %v2843_v27, 2  ;;  %v8349_v4 = vsel %vm1028_vm7, %v3349_v1, %v3350_v22 }
 0x434   : > { %9293 = vst [vmem:[#allocation18_spill] sm:$0xff] %v8338_v40  ;;  %v3113_v46 = vrot.slane %v8338_v40, 1  ;;  %v3114_v7 = vrot.slane %v2849_v31, 1  ;;  %6173 = vmatprep.mubr.msk.bf16.mxu1 %vm2901_vm8, %v2865_v37  ;;  %v8351_v58 = vld [vmem:[#allocation2 + $0xd0] sm:$0xff]  ;;  %v2847_v41 = vld [vmem:[#allocation2 + $0xd8] sm:$0x3]  ;;  %v2784_v10 = vpop.permute.xlu1 %2783 }
 0x435   : > { %v8346_v26 = vsel %vm801_vm5, %v3104_v32, %v3105_v30  ;;  %9294 = vst [vmem:[#allocation19_spill] sm:$0xff] %v8351_v58  ;;  %v8354_v61 = vsel %vm1028_vm7, %v3346_v15, %v3347_v18  ;;  %v3355_v59 = vrot.slane %v8338_v40, 2  ;;  %v3356_v48 = vrot.slane %v2849_v31, 2  ;;  %v8363_v32 = vld [vmem:[#allocation2 + $0x8] sm:$0x3]  ;;  %2818 = vst.msk [vmem:[#allocation2 + $0x111] sm:$0xff] %vm631_vm6, %v2784_v10 }
 0x436   : > { %v8361_v37 = vpack.c.bf16 %v8351_v58, %v8324_v45  ;;  %v3110_v1 = vrot.slane %v8351_v58, 1  ;;  %v3111_v22 = vrot.slane %v2847_v41, 1  ;;  %v8367_v30 = vsel %vm801_vm5, %v3113_v46, %v3114_v7 }
 0x437   : > { %v3352_v31 = vrot.slane %v8351_v58, 2  ;;  %v3353_v15 = vrot.slane %v2847_v41, 2  ;;  %v8379_v45 = vld [vmem:[#allocation2 + $0x100] sm:$0xff]  ;;  %v3078_v46 = vrot.slane %v8363_v32, 1  ;;  %v2853_v7 = vld [vmem:[#allocation2 + $0x108] sm:$0x3]  ;;  %v8383_v10 = vsel %vm1028_vm7, %v3355_v59, %v3356_v48 }
 0x438   : > { %9295 = vst [vmem:[#allocation20_spill] sm:$0xff] %v8361_v37  ;;  %6174 = vmatmul.mubr.msk.bf16.gmra.mrb[16].mxu1 %vm2901_vm8, %v8361_v37  ;;  %v8374_v18 = vsel %vm801_vm5, %v3110_v1, %v3111_v22  ;;  %v3119_v22 = vrot.slane %v8379_v45, 1  ;;  %v3120_v58 = vrot.slane %v2853_v7, 1  ;;  %v3361_v11 = vrot.slane %v8379_v45, 2 }
 0x439   : > { %v8387_v37 = vld [vmem:[#allocation2 + $0xf0] sm:$0xff]  ;;  %v2851_v1 = vld [vmem:[#allocation2 + $0xf8] sm:$0x3]  ;;  %v8391_v27 = vsel %vm1028_vm7, %v3352_v31, %v3353_v15  ;;  %v3362_v35 = vrot.slane %v2853_v7, 2  ;;  %v3079_v31 = vsel %vm801_vm5, %v3077_v53, %v3078_v46 }
 0x43a   : > { %9296 = vst [vmem:[#allocation21_spill] sm:$0xff] %v8387_v37  ;;  %v8396_v39 = vpack.c.bf16 %v8387_v37, %v8338_v40  ;;  %v3116_v48 = vrot.slane %v8387_v37, 1  ;;  %v3117_v59 = vrot.slane %v2851_v1, 1  ;;  %v3358_v41 = vrot.slane %v8387_v37, 2 }
 0x43b   : > { %v8401_v25 = vsel %vm801_vm5, %v3119_v22, %v3120_v58  ;;  %v3359_v34 = vrot.slane %v2851_v1, 2  ;;  %v8417_v58 = vsel %vm1028_vm7, %v3361_v11, %v3362_v35  ;;  %v3141_v46 = vpack.c.bf16 %v8231_v9, %v3079_v31  ;;  %v8431_v35 = vld [vmem:[#allocation2 + $0x78] sm:$0x3] }
 0x43c   : > { %6177 = vmatprep.mubr.msk.bf16.mxu1 %vm2901_vm8, %v8396_v39  ;;  %v8407_v15 = vsel %vm801_vm5, %v3116_v48, %v3117_v59  ;;  %v8411_v50 = vld [vmem:[#allocation2 + $0x110] sm:$0xff]  ;;  %v8438_v22 = vpack.c.bf16 %v8258_v42, %v8234_v13  ;;  %v6744_v48 = vld [vmem:[%s9240_s4 + $0x48] sm:$0xff]   ;;  %v8446_v59 = vpack.c.bf16 %v8294_v19, %v8261_v24  ;;  %v3098_v31 = vrot.slane %v8301_v21, 1 }
 0x43d   : > { %v8414_v37 = vsel %vm1028_vm7, %v3358_v41, %v3359_v34  ;;  %v8423_v53 = vpack.c.bf16 %v8411_v50, %v8379_v45  ;;  %v8434_v41 = vld [vmem:[#allocation2 + $0xa8] sm:$0x3] }
 0x43e   : > { %v3102_v1 = vrot.slane %v8434_v41, 1 }
 0x440   : > { %6178 = vmatmul.mubr.msk.bf16.gmra.mrb[20].mxu1 %vm2901_vm8, %v8423_v53 }
 0x441   : > { %6189 = vmatprep.mubr.msk.bf16.mxu1 %vm2901_vm8, %v3141_v46  ;;  %v3101_v46 = vrot.slane %v8326_v0, 1 }
 0x443   : > { %v2610_v34 = vpop.permute.xlu0 %2609 }
 0x444   : > { %v2650_v11 = vmul.f32 %v8135_v33, %v2610_v34  ;;  %v3099_v33 = vrot.slane %v8431_v35, 1 }
 0x446   : > { %2769 = vrot.lane.b32.xlu0 %v2650_v11, %s7067_s27  ;;  %v6745_v11 = vld [vmem:[%s9240_s4 + $0x50] sm:$0xff]   ;;  %v8465_v7 = vsel %vm801_vm5, %v3098_v31, %v3099_v33  ;;  %v3320_v31 = vrot.slane %v8363_v32, 2  ;;  %v3343_v32 = vrot.slane %v8326_v0, 2  ;;  %v3344_v33 = vrot.slane %v8434_v41, 2  ;;  %v6750_v41 = vld [vmem:[%s9240_s4 + $0x78] sm:$0xff]  }
 0x447   : > { %v2626_v34 = vpop.permute.xlu1 %2625 }
 0x448   : > { %6190 = vmatmul.mubr.msk.bf16.vlgmr.msra.gmra.mrb[8].mxu1 %vm2901_vm8, %v8438_v22  ;;  %v2658_v40 = vmul.f32 %v8140_v8, %v2626_v34  ;;  %v3103_v8 = vsel %vm801_vm5, %v3101_v46, %v3102_v1  ;;  %v6746_v34 = vld [vmem:[%s9240_s4 + $0x58] sm:$0xff]   ;;  %v8500_v1 = vpack.c.bf16 %v8407_v15, %v8367_v30  ;;  %v3345_v0 = vsel %vm1028_vm7, %v3343_v32, %v3344_v33  ;;  %v6755_v33 = vld [vmem:[%s9240_s4 + $0xa0] sm:$0xff]  }
 0x449   : > { %6193 = vmatprep.mubr.msk.bf16.mxu1 %vm2901_vm8, %v8446_v59  ;;  %6206 = vmatpush3.bf16.msra.mxu1 %v8299_v28  ;;  %v8470_v28 = vpack.c.bf16 %v8465_v7, %v8289_v38  ;;  %v3387_v46 = vpack.c.bf16 %v8354_v61, %v3345_v0  ;;  %v6754_v32 = vld [vmem:[%s9240_s4 + $0x98] sm:$0xff]  }
 0x44a   : > { %6207 = vmatprep.subr.bf16.mxu1 %v6744_v48  ;;  %2785 = vrot.lane.b32.xlu1 %v2658_v40, %s7067_s27  ;;  %v6747_v40 = vld [vmem:[%s9240_s4 + $0x60] sm:$0xff]  }
 0x44b   : > { %2675 = vrot.lane.b32.xlu0 %v8064_v62, %s7068_s22  ;;  %v3145_v62 = vpack.c.bf16 %v8346_v26, %v3103_v8  ;;  %v8585_v8 = vpack.c.bf16 %v8414_v37, %v8383_v10 }
 0x44d   : > { %6208 = vmatpush3.bf16.msra.mxu1 %v6744_v48  ;;  %v3319_v48 = vrot.slane %v8203_v12, 2 }
 0x44e   : > { %6209 = vmatprep.subr.bf16.mxu1 %v6745_v11  ;;  %2677 = vrot.lane.b32.xlu1 %v8071_v17, %s7068_s22  ;;  %v8492_v17 = vpack.c.bf16 %v8374_v18, %v8333_v43 }
 0x44f   : > { %2679 = vrot.lane.b32.xlu0 %v8066_v29, %s7068_s22  ;;  %v2855_v29 = vld [vmem:[#allocation2 + $0x118] sm:$0x3] }
 0x450   : > { %6194 = vmatmul.mubr.msk.bf16.gmra.mrb[12].mxu1 %vm2901_vm8, %v8470_v28 }
 0x451   : > { %6197 = vmatprep.mubr.msk.bf16.mxu1 %vm2901_vm8, %v3145_v62  ;;  %6210 = vmatpush3.bf16.msra.mxu1 %v6745_v11  ;;  %v8581_v11 = vpack.c.bf16 %v8391_v27, %v8349_v4  ;;  %v3365_v62 = vrot.slane %v2855_v29, 2 }
 0x452   : > { %6211 = vmatprep.subr.bf16.mxu1 %v6746_v34  ;;  %2681 = vrot.lane.b32.xlu1 %v8074_v36, %s7068_s22  ;;  %v3122_v36 = vrot.slane %v8411_v50, 1 }
 0x453   : > { %2683 = vrot.lane.b32.xlu0 %v8084_v6, %s7068_s22  ;;  %v3123_v6 = vrot.slane %v2855_v29, 1  ;;  %v9298_v29 = vld [vmem:[#allocation8_spill] sm:$0xff] }
 0x455   : > { %6212 = vmatpush3.bf16.msra.mxu1 %v6746_v34  ;;  %v3364_v34 = vrot.slane %v8411_v50, 2 }
 0x456   : > { %6229 = vmatprep.subr.bf16.mxu1 %v6747_v40  ;;  %2685 = vrot.lane.b32.xlu1 %v8081_v16, %s7068_s22  ;;  %v8514_v16 = vsel %vm801_vm5, %v3122_v36, %v3123_v6  ;;  %v9297_v6 = vld [vmem:[#allocation9_spill] sm:$0xff] }
 0x457   : > { %2687 = vrot.lane.b32.xlu0 %v8087_v55, %s7068_s22  ;;  %v3321_v55 = vsel %vm1028_vm7, %v3319_v48, %v3320_v31  ;;  %v8519_v12 = vpack.c.bf16 %v8514_v16, %v8401_v25  ;;  %v3561_v48 = vpack.c.bf16 %v9297_v6, %v8205_v3  ;;  %v9299_v31 = vld [vmem:[#allocation11_spill] sm:$0xff]  ;;  %v6753_v3 = vld [vmem:[%s9240_s4 + $0x90] sm:$0xff]   ;;  %v9302_v6 = vld [vmem:[#allocation17_spill] sm:$0xff] }
 0x458   : > { %6198 = vmatmul.mubr.msk.bf16.gmra.mrb[16].mxu1 %vm2901_vm8, %v8492_v17 }
 0x459   : > { %6201 = vmatprep.mubr.msk.bf16.mxu1 %vm2901_vm8, %v8500_v1 }
 0x45a   : > { %2689 = vrot.lane.b32.xlu1 %v8191_v57, %s7068_s22  ;;  %v3383_v57 = vpack.c.bf16 %v8251_v54, %v3321_v55  ;;  %v3562_v55 = vpack.c.bf16 %v9299_v31, %v9298_v29 }
 0x45b   : > { %2691 = vrot.lane.b32.xlu0 %v8105_v20, %s7068_s22  ;;  %v8535_v20 = vpack.c.bf16 %v8266_v23, %v8241_v2 }
 0x45e   : > { %2693 = vrot.lane.b32.xlu1 %v8096_v63, %s7068_s22  ;;  %v6748_v63 = vld [vmem:[%s9240_s4 + $0x68] sm:$0xff]  }
 0x45f   : > { %2695 = vrot.lane.b32.xlu0 %v8109_v47, %s7068_s22  ;;  %v3340_v47 = vrot.slane %v8301_v21, 2 }
 0x460   : > { %6202 = vmatmul.mubr.msk.bf16.gmra.mrb[20].mxu1 %vm2901_vm8, %v8519_v12 }
 0x461   : > { %6213 = vmatprep.mubr.msk.bf16.mxu1 %vm2901_vm8, %v3383_v57  ;;  %v6752_v57 = vld [vmem:[%s9240_s4 + $0x88] sm:$0xff]  }
 0x462   : > { %2697 = vrot.lane.b32.xlu1 %v8107_v60, %s7068_s22  ;;  %v8546_v60 = vpack.c.bf16 %v8304_v14, %v8269_v52 }
 0x463   : > { %2699 = vrot.lane.b32.xlu0 %v8119_v56, %s7068_s22  ;;  %v3341_v56 = vrot.slane %v8431_v35, 2 }
 0x466   : > { %2701 = vrot.lane.b32.xlu1 %v8117_v44, %s7068_s22  ;;  %v6749_v44 = vld [vmem:[%s9240_s4 + $0x70] sm:$0xff]  }
 0x467   : > { %2703 = vrot.lane.b32.xlu0 %v8125_v51, %s7068_s22  ;;  %v8562_v51 = vsel %vm1028_vm7, %v3340_v47, %v3341_v56  ;;  %v9301_v47 = vld [vmem:[#allocation12_spill] sm:$0xff] }
 0x468   : > { %6214 = vmatmul.mubr.msk.bf16.vlgmr.msra.gmra.mrb[8].mxu1 %vm2901_vm8, %v8535_v20  ;;  %v8567_v35 = vpack.c.bf16 %v8562_v51, %v8307_v49 }
 0x469   : > { %6217 = vmatprep.mubr.msk.bf16.mxu1 %vm2901_vm8, %v8546_v60  ;;  %6230 = vmatpush3.bf16.msra.mxu1 %v6747_v40  ;;  %v8593_v40 = vsel %vm1028_vm7, %v3364_v34, %v3365_v62 }
 0x46a   : > { %6231 = vmatprep.subr.bf16.mxu1 %v6748_v63  ;;  %2705 = vrot.lane.b32.xlu1 %v8195_v5, %s7068_s22  ;;  %v6751_v5 = vld [vmem:[%s9240_s4 + $0x80] sm:$0xff]   ;;  %v8597_v36 = vpack.c.bf16 %v8593_v40, %v8417_v58 }
 0x46d   : > { %6232 = vmatpush3.bf16.msra.mxu1 %v6748_v63  ;;  %v9300_v63 = vld [vmem:[#allocation13_spill] sm:$0xff] }
 0x46e   : > { %6233 = vmatprep.subr.bf16.mxu1 %v6749_v44  ;;  %v3563_v56 = vpack.c.bf16 %v9301_v47, %v9300_v63  ;;  %v9305_v47 = vld [vmem:[#allocation18_spill] sm:$0xff] }
 0x470   : > { %6218 = vmatmul.mubr.msk.bf16.gmra.mrb[12].mxu1 %vm2901_vm8, %v8567_v35 }
 0x471   : > { %6221 = vmatprep.mubr.msk.bf16.mxu1 %vm2901_vm8, %v3387_v46  ;;  %6234 = vmatpush3.bf16.msra.mxu1 %v6749_v44 }
 0x472   : > { %6235 = vmatprep.subr.bf16.mxu1 %v6750_v41 }
 0x475   : > { %6236 = vmatpush3.bf16.msra.mxu1 %v6750_v41 }
 0x476   : > { %6253 = vmatprep.subr.bf16.mxu1 %v6751_v5 }
 0x478   : > { %6222 = vmatmul.mubr.msk.bf16.gmra.mrb[16].mxu1 %vm2901_vm8, %v8581_v11 }
 0x479   : > { %6225 = vmatprep.mubr.msk.bf16.mxu1 %vm2901_vm8, %v8585_v8 }
 0x480   : > { %6226 = vmatmul.mubr.msk.bf16.gmra.mrb[20].mxu1 %vm2901_vm8, %v8597_v36 }
 0x481   : > { %6237 = vmatprep.mubr.msk.bf16.mxu1 %vm2901_vm8, %v3561_v48  ;;  %v9303_v48 = vld [vmem:[#allocation16_spill] sm:$0xff] }
 0x482   : > { %v3565_v29 = vpack.c.bf16 %v9303_v48, %v9302_v6  ;;  %v9307_v6 = vpack.c.bf16 %v8234_v13, %v8231_v9 }
 0x488   : > { %6238 = vmatmul.mubr.msk.bf16.vlgmr.msra.gmra.mrb[8].mxu1 %vm2901_vm8, %v3562_v55 }
 0x489   : > { %6241 = vmatprep.mubr.msk.bf16.mxu1 %vm2901_vm8, %v3563_v56  ;;  %6254 = vmatpush3.bf16.msra.mxu1 %v6751_v5 }
 0x48a   : > { %6255 = vmatprep.subr.bf16.mxu1 %v6752_v57 }
 0x48d   : > { %6256 = vmatpush3.bf16.msra.mxu1 %v6752_v57 }
 0x48e   : > { %6257 = vmatprep.subr.bf16.mxu1 %v6753_v3 }
 0x491   : > { %6258 = vmatpush3.bf16.msra.mxu1 %v6753_v3  ;;  %v9306_v3 = vld [vmem:[#allocation21_spill] sm:$0xff] }
 0x492   : > { %6259 = vmatprep.subr.bf16.mxu1 %v6754_v32 }
 0x495   : > { %6260 = vmatpush3.bf16.msra.mxu1 %v6754_v32  ;;  %v3567_v32 = vpack.c.bf16 %v8379_v45, %v9306_v3 }
 0x496   : > { %6277 = vmatprep.subr.bf16.mxu1 %v6755_v33 }
 0x4b8   : > { %v2770_v44 = vpop.permute.xlu0 %2769 }
 0x4b9   : > { %2811 = vst.msk [vmem:[#allocation2 + $0x81] sm:$0xff] %vm631_vm6, %v2770_v44 }
 0x4bc   : > { %v2786_v0 = vpop.permute.xlu1 %2785 }
 0x4bd   : > { %v2676_v41 = vpop.permute.xlu0 %2675  ;;  %2819 = vst.msk [vmem:[#allocation2 + $0x121] sm:$0xff] %vm631_vm6, %v2786_v0 }
 0x4be   : > { %2723 = vst.msk [vmem:[#allocation3] sm:$0xff] %vm631_vm6, %v2676_v41 }
 0x4c0   : > { %v2678_v46 = vpop.permute.xlu1 %2677  ;;  %v8625_v34 = vld [vmem:[#allocation2 + $0x80] sm:$0xff] }
 0x4c1   : > { %v2680_v5 = vpop.permute.xlu0 %2679  ;;  %2724 = vst.msk [vmem:[#allocation3 + $0x8] sm:$0xff] %vm631_vm6, %v2678_v46  ;;  %v3564_v62 = vpack.c.bf16 %v8625_v34, %v8301_v21  ;;  %v9304_v21 = vld [vmem:[#allocation19_spill] sm:$0xff]  ;;  %v3743_v9 = vrot.slane %v8625_v34, 1 }
 0x4c2   : > { %2725 = vst.msk [vmem:[#allocation3 + $0x10] sm:$0xff] %vm631_vm6, %v2680_v5  ;;  %v3566_v56 = vpack.c.bf16 %v9305_v47, %v9304_v21  ;;  %v9309_v21 = vpack.c.bf16 %v8289_v38, %v8294_v19  ;;  %v6757_v47 = vld [vmem:[%s9240_s4 + $0xb0] sm:$0xff]   ;;  %v9310_v38 = vpack.c.bf16 %v8333_v43, %v8346_v26  ;;  %v6759_v19 = vld [vmem:[%s9240_s4 + $0xc0] sm:$0xff]   ;;  %v9312_v43 = vpack.c.bf16 %v8401_v25, %v8407_v15  ;;  %v6760_v25 = vld [vmem:[%s9240_s4 + $0xc8] sm:$0xff]  }
 0x4c3   : > { %6242 = vmatmul.mubr.msk.bf16.gmra.mrb[12].mxu1 %vm2901_vm8, %v3564_v62 }
 0x4c4   : > { %v2682_v31 = vpop.permute.xlu1 %2681  ;;  %6245 = vmatprep.mubr.msk.bf16.mxu1 %vm2901_vm8, %v3565_v29  ;;  %v8647_v41 = vld [vmem:[#allocation2 + $0x120] sm:$0xff]  ;;  %v2837_v29 = vld [vmem:[#allocation2 + $0x88] sm:$0x3] }
 0x4c5   : > { %v2684_v55 = vpop.permute.xlu0 %2683  ;;  %2726 = vst.msk [vmem:[#allocation3 + $0x18] sm:$0xff] %vm631_vm6, %v2682_v31  ;;  %v3568_v45 = vpack.c.bf16 %v8647_v41, %v8411_v50  ;;  %v6756_v50 = vld [vmem:[%s9240_s4 + $0xa8] sm:$0xff]   ;;  %v3744_v13 = vrot.slane %v2837_v29, 1  ;;  %v3930_v15 = vrot.slane %v2837_v29, 2 }
 0x4c6   : > { %2727 = vst.msk [vmem:[#allocation3 + $0x20] sm:$0xff] %vm631_vm6, %v2684_v55 }
 0x4c8   : > { %v2686_v57 = vpop.permute.xlu1 %2685 }
 0x4c9   : > { %v2688_v63 = vpop.permute.xlu0 %2687  ;;  %2728 = vst.msk [vmem:[#allocation3 + $0x28] sm:$0xff] %vm631_vm6, %v2686_v57  ;;  %v9308_v57 = vpack.c.bf16 %v8261_v24, %v8258_v42  ;;  %v6758_v24 = vld [vmem:[%s9240_s4 + $0xb8] sm:$0xff]  }
 0x4ca   : > { %2729 = vst.msk [vmem:[#allocation3 + $0x30] sm:$0xff] %vm631_vm6, %v2688_v63 }
 0x4cb   : > { %6246 = vmatmul.mubr.msk.bf16.gmra.mrb[16].mxu1 %vm2901_vm8, %v3566_v56  ;;  %v8679_v56 = vsel %vm801_vm5, %v3743_v9, %v3744_v13  ;;  %v2839_v13 = vld [vmem:[#allocation2 + $0x98] sm:$0x3] }
 0x4cc   : > { %v2690_v44 = vpop.permute.xlu1 %2689  ;;  %6249 = vmatprep.mubr.msk.bf16.mxu1 %vm2901_vm8, %v3567_v32  ;;  %v3754_v42 = vpack.c.bf16 %v8679_v56, %v8465_v7  ;;  %v3746_v7 = vrot.slane %v8647_v41, 1  ;;  %v9311_v32 = vpack.c.bf16 %v8367_v30, %v8374_v18  ;;  %v9313_v30 = vpack.c.bf16 %v8241_v2, %v8251_v54  ;;  %v6761_v54 = vld [vmem:[%s9240_s4 + $0xd0] sm:$0xff]  }
 0x4cd   : > { %v2692_v0 = vpop.permute.xlu0 %2691  ;;  %2730 = vst.msk [vmem:[#allocation3 + $0x38] sm:$0xff] %vm631_vm6, %v2690_v44  ;;  %v3929_v18 = vrot.slane %v8625_v34, 2  ;;  %v9315_v2 = vpack.c.bf16 %v8307_v49, %v8304_v14  ;;  %v9316_v14 = vpack.c.bf16 %v8349_v4, %v8354_v61  ;;  %v6763_v49 = vld [vmem:[%s9240_s4 + $0xe0] sm:$0xff]   ;;  %v9318_v61 = vpack.c.bf16 %v8417_v58, %v8414_v37  ;;  %v9321_v37 = vld [vmem:[#allocation15_spill] sm:$0xff]  ;;  %v6765_v58 = vld [vmem:[%s9240_s4 + $0xf0] sm:$0xff]  }
 0x4ce   : > { %2731 = vst.msk [vmem:[#allocation3 + $0x40] sm:$0xff] %vm631_vm6, %v2692_v0  ;;  %v4709_v0 = vld [vmem:[#allocation4] sm:$0xff] }
 0x4cf   : > { %4741 = vrot.lane.b32.xlu0 %v4709_v0, %s7066_s17 }
 0x4d0   : > { %v2694_v46 = vpop.permute.xlu1 %2693 }
 0x4d1   : > { %v2696_v5 = vpop.permute.xlu0 %2695  ;;  %2732 = vst.msk [vmem:[#allocation3 + $0x48] sm:$0xff] %vm631_vm6, %v2694_v46  ;;  %v4710_v46 = vld [vmem:[#allocation4 + $0x8] sm:$0xff] }
 0x4d2   : > { %2733 = vst.msk [vmem:[#allocation3 + $0x50] sm:$0xff] %vm631_vm6, %v2696_v5  ;;  %4743 = vrot.lane.b32.xlu1 %v4710_v46, %s7066_s17  ;;  %v8731_v5 = vsel %vm1028_vm7, %v3929_v18, %v3930_v15 }
 0x4d3   : > { %6250 = vmatmul.mubr.msk.bf16.gmra.mrb[20].mxu1 %vm2901_vm8, %v3568_v45 }
 0x4d4   : > { %v2698_v62 = vpop.permute.xlu1 %2697  ;;  %6261 = vmatprep.mubr.msk.bf16.mxu1 %vm2901_vm8, %v9307_v6 }
 0x4d5   : > { %v2700_v48 = vpop.permute.xlu0 %2699  ;;  %2734 = vst.msk [vmem:[#allocation3 + $0x58] sm:$0xff] %vm631_vm6, %v2698_v62  ;;  %v9317_v62 = vpack.c.bf16 %v8383_v10, %v8391_v27  ;;  %v6764_v27 = vld [vmem:[%s9240_s4 + $0xe8] sm:$0xff]   ;;  %v9320_v10 = vld [vmem:[#allocation14_spill] sm:$0xff] }
 0x4d6   : > { %2735 = vst.msk [vmem:[#allocation3 + $0x60] sm:$0xff] %vm631_vm6, %v2700_v48  ;;  %v9319_v48 = vld [vmem:[#allocation10_spill] sm:$0xff] }
 0x4d8   : > { %v2702_v31 = vpop.permute.xlu1 %2701 }
 0x4d9   : > { %v2704_v55 = vpop.permute.xlu0 %2703  ;;  %2736 = vst.msk [vmem:[#allocation3 + $0x68] sm:$0xff] %vm631_vm6, %v2702_v31  ;;  %v6766_v31 = vld [vmem:[%s9240_s4 + $0xf8] sm:$0xff]  }
 0x4da   : > { %2737 = vst.msk [vmem:[#allocation3 + $0x70] sm:$0xff] %vm631_vm6, %v2704_v55  ;;  %v9322_v55 = vld [vmem:[#allocation20_spill] sm:$0xff] }
 0x4db   : > { %6262 = vmatmul.mubr.msk.bf16.vlgmr.msra.gmra.mrb[8].mxu1 %vm2901_vm8, %v9308_v57  ;;  %v6768_v57 = vld [vmem:[%s9240_s4 + $0x108] sm:$0xff]  }
 0x4dc   : > { %v2706_v63 = vpop.permute.xlu1 %2705  ;;  %6265 = vmatprep.mubr.msk.bf16.mxu1 %vm2901_vm8, %v9309_v21  ;;  %6278 = vmatpush3.bf16.msra.mxu1 %v6755_v33  ;;  %v2857_v33 = vld [vmem:[#allocation2 + $0x128] sm:$0x3]  ;;  %v4274_v21 = vrot.slane %v2839_v13, 1 }
 0x4dd   : > { %2738 = vst.msk [vmem:[#allocation3 + $0x78] sm:$0xff] %vm631_vm6, %v2706_v63  ;;  %6279 = vmatprep.subr.bf16.mxu1 %v6756_v50  ;;  %v3747_v3 = vrot.slane %v2857_v33, 1  ;;  %v3933_v45 = vrot.slane %v2857_v33, 2 }
 0x4df   : > { %v8704_v26 = vsel %vm801_vm5, %v3746_v7, %v3747_v3 }
 0x4e0   : > { %6280 = vmatpush3.bf16.msra.mxu1 %v6756_v50  ;;  %v3758_v44 = vpack.c.bf16 %v8704_v26, %v8514_v16  ;;  %v9314_v16 = vpack.c.bf16 %v8269_v52, %v8266_v23  ;;  %v3940_v23 = vpack.c.bf16 %v8731_v5, %v8562_v51  ;;  %v6762_v52 = vld [vmem:[%s9240_s4 + $0xd8] sm:$0xff]   ;;  %v3932_v51 = vrot.slane %v8647_v41, 2  ;;  %v6767_v50 = vld [vmem:[%s9240_s4 + $0x100] sm:$0xff]  }
 0x4e1   : > { %6281 = vmatprep.subr.bf16.mxu1 %v6757_v47 }
 0x4e2   : > { %v8756_v4 = vsel %vm1028_vm7, %v3932_v51, %v3933_v45 }
 0x4e3   : > { %6266 = vmatmul.mubr.msk.bf16.gmra.mrb[12].mxu1 %vm2901_vm8, %v3754_v42  ;;  %v3944_v6 = vpack.c.bf16 %v8756_v4, %v8593_v40  ;;  %v2838_v40 = vld [vmem:[#allocation2 + $0x90] sm:$0xff] }
 0x4e4   : > { %6269 = vmatprep.mubr.msk.bf16.mxu1 %vm2901_vm8, %v9310_v38  ;;  %6282 = vmatpush3.bf16.msra.mxu1 %v6757_v47  ;;  %v4115_v29 = vpack.c.bf16 %v2838_v40, %v8625_v34  ;;  %v2858_v34 = vld [vmem:[#allocation2 + $0x130] sm:$0xff]  ;;  %v4273_v63 = vrot.slane %v2838_v40, 1 }
 0x4e5   : > { %6283 = vmatprep.subr.bf16.mxu1 %v6758_v24  ;;  %v4116_v9 = vpack.c.bf16 %v2858_v34, %v8647_v41  ;;  %v6770_v41 = vld [vmem:[%s9240_s4 + $0x118] sm:$0xff]   ;;  %v4438_v38 = vrot.slane %v2858_v34, 2 }
 0x4e8   : > { %6284 = vmatpush3.bf16.msra.mxu1 %v6758_v24  ;;  %v4436_v24 = vrot.slane %v2839_v13, 2 }
 0x4e9   : > { %6301 = vmatprep.subr.bf16.mxu1 %v6759_v19 }
 0x4eb   : > { %6270 = vmatmul.mubr.msk.bf16.gmra.mrb[16].mxu1 %vm2901_vm8, %v9311_v32 }
 0x4ec   : > { %6273 = vmatprep.mubr.msk.bf16.mxu1 %vm2901_vm8, %v9312_v43 }
 0x4f3   : > { %6274 = vmatmul.mubr.msk.bf16.gmra.mrb[20].mxu1 %vm2901_vm8, %v3758_v44 }
 0x4f4   : > { %6285 = vmatprep.mubr.msk.bf16.mxu1 %vm2901_vm8, %v9313_v30 }
 0x4fb   : > { %6286 = vmatmul.mubr.msk.bf16.vlgmr.msra.gmra.mrb[8].mxu1 %vm2901_vm8, %v9314_v16 }
 0x4fc   : > { %6289 = vmatprep.mubr.msk.bf16.mxu1 %vm2901_vm8, %v9315_v2  ;;  %6302 = vmatpush3.bf16.msra.mxu1 %v6759_v19 }
 0x4fd   : > { %6303 = vmatprep.subr.bf16.mxu1 %v6760_v25 }
 0x500   : > { %6304 = vmatpush3.bf16.msra.mxu1 %v6760_v25 }
 0x501   : > { %6305 = vmatprep.subr.bf16.mxu1 %v6761_v54 }
 0x503   : > { %6290 = vmatmul.mubr.msk.bf16.gmra.mrb[12].mxu1 %vm2901_vm8, %v3940_v23 }
 0x504   : > { %6293 = vmatprep.mubr.msk.bf16.mxu1 %vm2901_vm8, %v9316_v14  ;;  %6306 = vmatpush3.bf16.msra.mxu1 %v6761_v54 }
 0x505   : > { %6307 = vmatprep.subr.bf16.mxu1 %v6762_v52 }
 0x508   : > { %6308 = vmatpush3.bf16.msra.mxu1 %v6762_v52 }
 0x509   : > { %6325 = vmatprep.subr.bf16.mxu1 %v6763_v49 }
 0x50b   : > { %6294 = vmatmul.mubr.msk.bf16.gmra.mrb[16].mxu1 %vm2901_vm8, %v9317_v62 }
 0x50c   : > { %6297 = vmatprep.mubr.msk.bf16.mxu1 %vm2901_vm8, %v9318_v61 }
 0x513   : > { %6298 = vmatmul.mubr.msk.bf16.gmra.mrb[20].mxu1 %vm2901_vm8, %v3944_v6 }
 0x514   : > { %6309 = vmatprep.mubr.msk.bf16.mxu1 %vm2901_vm8, %v9319_v48 }
 0x51b   : > { %6310 = vmatmul.mubr.msk.bf16.vlgmr.msra.gmra.mrb[8].mxu1 %vm2901_vm8, %v9320_v10 }
 0x51c   : > { %6313 = vmatprep.mubr.msk.bf16.mxu1 %vm2901_vm8, %v9321_v37  ;;  %6326 = vmatpush3.bf16.msra.mxu1 %v6763_v49 }
 0x51d   : > { %6327 = vmatprep.subr.bf16.mxu1 %v6764_v27 }
 0x520   : > { %6328 = vmatpush3.bf16.msra.mxu1 %v6764_v27 }
 0x521   : > { %6329 = vmatprep.subr.bf16.mxu1 %v6765_v58 }
 0x523   : > { %6314 = vmatmul.mubr.msk.bf16.gmra.mrb[12].mxu1 %vm2901_vm8, %v4115_v29 }
 0x524   : > { %6317 = vmatprep.mubr.msk.bf16.mxu1 %vm2901_vm8, %v9322_v55  ;;  %6330 = vmatpush3.bf16.msra.mxu1 %v6765_v58 }
 0x525   : > { %6331 = vmatprep.subr.bf16.mxu1 %v6766_v31 }
 0x528   : > { %6332 = vmatpush3.bf16.msra.mxu1 %v6766_v31 }
 0x529   : > { %6349 = vmatprep.subr.bf16.mxu1 %v6767_v50 }
 0x52b   : > { %6318 = vmatmul.mubr.msk.bf16.gmra.mrb[16].mxu1 %vm2901_vm8, %v8396_v39  ;;  %v6769_v39 = vld [vmem:[%s9240_s4 + $0x110] sm:$0xff]  }
 0x52c   : > { %6321 = vmatprep.mubr.msk.bf16.mxu1 %vm2901_vm8, %v8423_v53  ;;  %v4275_v53 = vsel %vm801_vm5, %v4273_v63, %v4274_v21 }
 0x533   : > { %6322 = vmatmul.mubr.msk.bf16.gmra.mrb[20].mxu1 %vm2901_vm8, %v4116_v9 }
 0x534   : > { %6333 = vmatprep.mubr.msk.bf16.mxu1 %vm2901_vm8, %v8438_v22  ;;  %v4281_v22 = vpack.c.bf16 %v4275_v53, %v8679_v56  ;;  %v4711_v53 = vld [vmem:[#allocation4 + $0x10] sm:$0xff] }
 0x53b   : > { %6334 = vmatmul.mubr.msk.bf16.vlgmr.msra.gmra.mrb[8].mxu1 %vm2901_vm8, %v8446_v59  ;;  %v2859_v59 = vld [vmem:[#allocation2 + $0x138] sm:$0x3] }
 0x53c   : > { %6337 = vmatprep.mubr.msk.bf16.mxu1 %vm2901_vm8, %v8470_v28  ;;  %6350 = vmatpush3.bf16.msra.mxu1 %v6767_v50  ;;  %v4276_v28 = vrot.slane %v2858_v34, 1  ;;  %v4277_v47 = vrot.slane %v2859_v59, 1  ;;  %v4439_v19 = vrot.slane %v2859_v59, 2  ;;  %v4712_v59 = vld [vmem:[#allocation4 + $0x18] sm:$0xff] }
 0x53d   : > { %6351 = vmatprep.subr.bf16.mxu1 %v6768_v57 }
 0x53e   : > { %v4278_v56 = vsel %vm801_vm5, %v4276_v28, %v4277_v47  ;;  %v4715_v28 = vld [vmem:[#allocation4 + $0x30] sm:$0xff]  ;;  %v4714_v47 = vld [vmem:[#allocation4 + $0x28] sm:$0xff] }
 0x53f   : > { %v4282_v42 = vpack.c.bf16 %v4278_v56, %v8704_v26  ;;  %v4717_v56 = vld [vmem:[#allocation4 + $0x40] sm:$0xff] }
 0x540   : > { %6352 = vmatpush3.bf16.msra.mxu1 %v6768_v57 }
 0x541   : > { %6353 = vmatprep.subr.bf16.mxu1 %v6769_v39 }
 0x543   : > { %6338 = vmatmul.mubr.msk.bf16.gmra.mrb[12].mxu1 %vm2901_vm8, %v4281_v22 }
 0x544   : > { %6341 = vmatprep.mubr.msk.bf16.mxu1 %vm2901_vm8, %v8492_v17  ;;  %6354 = vmatpush3.bf16.msra.mxu1 %v6769_v39  ;;  %v4435_v17 = vrot.slane %v2838_v40, 2 }
 0x545   : > { %6355 = vmatprep.subr.bf16.mxu1 %v6770_v41 }
 0x548   : > { %6356 = vmatpush3.bf16.msra.mxu1 %v6770_v41  ;;  %v4713_v41 = vld [vmem:[#allocation4 + $0x20] sm:$0xff] }
 0x54b   : > { %6342 = vmatmul.mubr.msk.bf16.gmra.mrb[16].mxu1 %vm2901_vm8, %v8500_v1  ;;  %v4437_v1 = vsel %vm1028_vm7, %v4435_v17, %v4436_v24  ;;  %v4719_v17 = vld [vmem:[#allocation4 + $0x50] sm:$0xff]  ;;  %v4718_v24 = vld [vmem:[#allocation4 + $0x48] sm:$0xff] }
 0x54c   : > { %6345 = vmatprep.mubr.msk.bf16.mxu1 %vm2901_vm8, %v8519_v12  ;;  %v4443_v12 = vpack.c.bf16 %v4437_v1, %v8731_v5  ;;  %v4721_v1 = vld [vmem:[#allocation4 + $0x60] sm:$0xff] }
 0x553   : > { %6346 = vmatmul.mubr.msk.bf16.gmra.mrb[20].mxu1 %vm2901_vm8, %v4282_v42  ;;  %v4716_v42 = vld [vmem:[#allocation4 + $0x38] sm:$0xff] }
 0x554   : > { %6357 = vmatprep.mubr.msk.bf16.mxu1 %vm2901_vm8, %v8535_v20  ;;  %v4440_v20 = vsel %vm1028_vm7, %v4438_v38, %v4439_v19  ;;  %v4723_v38 = vld [vmem:[#allocation4 + $0x70] sm:$0xff]  ;;  %v4722_v19 = vld [vmem:[#allocation4 + $0x68] sm:$0xff] }
 0x55b   : > { %6358 = vmatmul.mubr.msk.bf16.vlgmr.msra.gmra.mrb[8].mxu1 %vm2901_vm8, %v8546_v60  ;;  %v4444_v60 = vpack.c.bf16 %v4440_v20, %v8756_v4  ;;  %v4724_v20 = vld [vmem:[#allocation4 + $0x78] sm:$0xff] }
 0x55c   : > { %6361 = vmatprep.mubr.msk.bf16.mxu1 %vm2901_vm8, %v8567_v35  ;;  %v8837_v35 = vld [vmem:[%s9241_s5] ss:$0 sm:$0xff] }
 0x563   : > { %6362 = vmatmul.mubr.msk.bf16.gmra.mrb[12].mxu1 %vm2901_vm8, %v4443_v12  ;;  %v4720_v12 = vld [vmem:[#allocation4 + $0x58] sm:$0xff] }
 0x564   : > { %6365 = vmatprep.mubr.msk.bf16.mxu1 %vm2901_vm8, %v8581_v11 }
 0x56b   : > { %6366 = vmatmul.mubr.msk.bf16.gmra.mrb[16].mxu1 %vm2901_vm8, %v8585_v8 }
 0x56c   : > { %6369 = vmatprep.mubr.msk.bf16.mxu1 %vm2901_vm8, %v8597_v36 }
 0x573   : > { %6370 = vmatmul.mubr.msk.bf16.gmra.mrb[20].mxu1 %vm2901_vm8, %v4444_v60 }
 0x62e   : > { %v6359_v11 = vpop.f32.mrb[8].mxu1 }
 0x62f   : > { %v8840_v33 = vadd.f32 %v6359_v11, %v8837_v35  ;;  %v4518_v7 = vpop.f32.mrb[9].mxu1 }
 0x630   : > { %v6360_v8 = vpop.f32.mrb[10].mxu1  ;;  %v8844_v36 = vadd.f32 %v8837_v35, %v4518_v7 }
 0x631   : > { %6899 = vtanh.f32 %v8840_v33  ;;  %v4521_v3 = vpop.f32.mrb[11].mxu1  ;;  %v8847_v32 = vadd.f32 %v6360_v8, %v8837_v35  ;;  %v5726_v60 = vmul.f32 -1.442695, %v8840_v33 }
 0x632   : > { %6901 = vtanh.f32 %v8844_v36  ;;  %v8852_v43 = vadd.f32 %v8837_v35, %v4521_v3 }
 0x633   : > { %6903 = vtanh.f32 %v8847_v32  ;;  %v5727_v11 = vmul.f32 -1.442695, %v8847_v32 }
 0x634   : > { %v5725_v8 = vmul.f32 -1.442695, %v8852_v43 }
 0x636   : > { %v6363_v26 = vpop.f32.mrb[12].mxu1 }
 0x637   : > { %v8855_v44 = vadd.f32 %v6363_v26, %v8837_v35  ;;  %v4534_v0 = vpop.f32.mrb[13].mxu1 }
 0x638   : > { %v6364_v46 = vpop.f32.mrb[14].mxu1  ;;  %v8859_v30 = vadd.f32 %v8837_v35, %v4534_v0 }
 0x639   : > { %6905 = vtanh.f32 %v8855_v44  ;;  %v4537_v25 = vpop.f32.mrb[15].mxu1  ;;  %v8863_v18 = vadd.f32 %v6364_v46, %v8837_v35  ;;  %v5730_v7 = vmul.f32 -1.442695, %v8855_v44 }
 0x63a   : > { %6907 = vtanh.f32 %v8852_v43  ;;  %v8869_v54 = vadd.f32 %v8837_v35, %v4537_v25  ;;  %v5728_v3 = vmul.f32 -1.442695, %v8859_v30 }
 0x63b   : > { %v6900_v15 = vpop.eup %6899  ;;  %6909 = vtanh.f32 %v8859_v30  ;;  %v5731_v26 = vmul.f32 -1.442695, %v8863_v18 }
 0x63c   : > { %4825 = vrot.lane.b32.xlu0 %v6900_v15, %s7066_s17  ;;  %6911 = vtanh.f32 %v8863_v18  ;;  %v6902_v2 = vpop.eup %6901 }
 0x63d   : > { %v6904_v23 = vpop.eup %6903  ;;  %6913 = vtanh.f32 %v8869_v54 }
 0x63e   : > { %v6367_v16 = vpop.f32.mrb[16].mxu1  ;;  %4827 = vrot.lane.b32.xlu1 %v6904_v23, %s7066_s17 }
 0x63f   : > { %v4550_v5 = vpop.f32.mrb[17].mxu1  ;;  %v8874_v49 = vadd.f32 %v6367_v16, %v8837_v35 }
 0x640   : > { %4821 = vrot.lane.b32.xlu0 %v6902_v2, %s7066_s17  ;;  %v6368_v52 = vpop.f32.mrb[18].mxu1  ;;  %v8881_v4 = vadd.f32 %v8837_v35, %v4550_v5 }
 0x641   : > { %v4553_v14 = vpop.f32.mrb[19].mxu1  ;;  %6915 = vtanh.f32 %v8874_v49  ;;  %v8886_v37 = vadd.f32 %v6368_v52, %v8837_v35  ;;  %v5734_v25 = vmul.f32 -1.442695, %v8874_v49  ;;  %v8943_v52 = vpop.permute.xlu0 %4741 }
 0x642   : > { %6917 = vtanh.f32 %v8881_v4  ;;  %v8891_v40 = vadd.f32 %v8837_v35, %v4553_v14  ;;  %v5732_v16 = vmul.f32 -1.442695, %v8881_v4 }
 0x643   : > { %v6906_v51 = vpop.eup %6905  ;;  %6919 = vtanh.f32 %v8886_v37  ;;  %v5735_v14 = vmul.f32 -1.442695, %v8886_v37 }
 0x644   : > { %v6908_v45 = vpop.eup %6907  ;;  %4833 = vrot.lane.b32.xlu0 %v6906_v51, %s7066_s17  ;;  %6921 = vtanh.f32 %v8891_v40 }
 0x645   : > { %4823 = vrot.lane.b32.xlu1 %v6908_v45, %s7066_s17  ;;  %v6910_v61 = vpop.eup %6909 }
 0x646   : > { %v6371_v62 = vpop.f32.mrb[20].mxu1  ;;  %v6912_v48 = vpop.eup %6911 }
 0x647   : > { %v4566_v6 = vpop.f32.mrb[21].mxu1  ;;  %v6914_v58 = vpop.eup %6913  ;;  %v8895_v29 = vadd.f32 %v6371_v62, %v8837_v35 }
 0x648   : > { %4829 = vrot.lane.b32.xlu0 %v6910_v61, %s7066_s17  ;;  %v6372_v27 = vpop.f32.mrb[22].mxu1  ;;  %v8901_v55 = vadd.f32 %v8837_v35, %v4566_v6  ;;  %v8948_v61 = vpop.permute.xlu1 %4743  ;;  %v5733_v6 = vmul.f32 -1.442695, %v8891_v40 }
 0x649   : > { %4835 = vrot.lane.b32.xlu1 %v6912_v48, %s7066_s17  ;;  %v4569_v10 = vpop.f32.mrb[23].mxu1  ;;  %6923 = vtanh.f32 %v8895_v29  ;;  %v8904_v50 = vadd.f32 %v6372_v27, %v8837_v35 }
 0x64a   : > { %6925 = vtanh.f32 %v8901_v55  ;;  %v8910_v13 = vadd.f32 %v8837_v35, %v4569_v10  ;;  %v5724_v35 = vmul.f32 -1.442695, %v8844_v36  ;;  %v5729_v36 = vmul.f32 -1.442695, %v8869_v54 }
 0x64b   : > { %v6916_v31 = vpop.eup %6915  ;;  %6927 = vtanh.f32 %v8904_v50  ;;  %v5736_v40 = vmul.f32 -1.442695, %v8901_v55 }
 0x64c   : > { %4841 = vrot.lane.b32.xlu0 %v6916_v31, %s7066_s17  ;;  %v6918_v34 = vpop.eup %6917  ;;  %6929 = vtanh.f32 %v8910_v13 }
 0x64d   : > { %4831 = vrot.lane.b32.xlu1 %v6914_v58, %s7066_s17  ;;  %v6920_v9 = vpop.eup %6919  ;;  %6931 = vpow2.f32 %v5726_v60 }
 0x64e   : > { %v6922_v57 = vpop.eup %6921  ;;  %6933 = vpow2.f32 %v5724_v35 }
 0x64f   : > { %6935 = vpow2.f32 %v5727_v11 }
 0x650   : > { %4837 = vrot.lane.b32.xlu0 %v6918_v34, %s7066_s17  ;;  %6937 = vpow2.f32 %v5730_v7 }
 0x651   : > { %4843 = vrot.lane.b32.xlu1 %v6920_v9, %s7066_s17  ;;  %6939 = vpow2.f32 %v5725_v8 }
 0x652   : > { %6941 = vpow2.f32 %v5728_v3 }
 0x653   : > { %v6924_v63 = vpop.eup %6923  ;;  %6943 = vpow2.f32 %v5731_v26 }
 0x654   : > { %4849 = vrot.lane.b32.xlu0 %v6924_v63, %s7066_s17  ;;  %v6926_v21 = vpop.eup %6925 }
 0x655   : > { %4839 = vrot.lane.b32.xlu1 %v6922_v57, %s7066_s17  ;;  %v6928_v39 = vpop.eup %6927 }
 0x656   : > { %v6930_v22 = vpop.eup %6929 }
 0x657   : > { %v6932_v0 = vpop.eup %6931 }
 0x658   : > { %4845 = vrot.lane.b32.xlu0 %v6926_v21, %s7066_s17  ;;  %v4647_v33 = vadd.f32 1.0, %v6932_v0  ;;  %v6934_v46 = vpop.eup %6933 }
 0x659   : > { %4851 = vrot.lane.b32.xlu1 %v6928_v39, %s7066_s17  ;;  %v6936_v32 = vpop.eup %6935  ;;  %v4645_v44 = vadd.f32 1.0, %v6934_v46 }
 0x65a   : > { %6945 = vrcp.f32 %v4647_v33  ;;  %v6938_v15 = vpop.eup %6937  ;;  %v4648_v43 = vadd.f32 1.0, %v6936_v32 }
 0x65b   : > { %6947 = vpow2.f32 %v5729_v36  ;;  %v6940_v30 = vpop.eup %6939  ;;  %v4651_v2 = vadd.f32 1.0, %v6938_v15 }
 0x65c   : > { %4745 = vrot.lane.b32.xlu0 %v4711_v53, %s7066_s17  ;;  %6949 = vpow2.f32 %v5734_v25  ;;  %v6942_v18 = vpop.eup %6941  ;;  %v4646_v5 = vadd.f32 1.0, %v6940_v30 }
 0x65d   : > { %4847 = vrot.lane.b32.xlu1 %v6930_v22, %s7066_s17  ;;  %6951 = vrcp.f32 %v4645_v44  ;;  %v6944_v23 = vpop.eup %6943  ;;  %v4649_v54 = vadd.f32 1.0, %v6942_v18 }
 0x65e   : > { %6953 = vrcp.f32 %v4648_v43  ;;  %v4652_v49 = vadd.f32 1.0, %v6944_v23 }
 0x65f   : > { %6955 = vpow2.f32 %v5732_v16 }
 0x660   : > { %4749 = vrot.lane.b32.xlu0 %v4713_v41, %s7066_s17  ;;  %6957 = vrcp.f32 %v4651_v2 }
 0x661   : > { %4747 = vrot.lane.b32.xlu1 %v4712_v59, %s7066_s17  ;;  %6959 = vrcp.f32 %v4646_v5  ;;  %v5738_v59 = vmul.f32 -1.442695, %v8895_v29 }
 0x662   : > { %6961 = vrcp.f32 %v4649_v54 }
 0x663   : > { %6963 = vpow2.f32 %v5735_v14 }
 0x664   : > { %4753 = vrot.lane.b32.xlu0 %v4715_v28, %s7066_s17  ;;  %v8946_v51 = vpop.eup %6945  ;;  %6965 = vrcp.f32 %v4652_v49 }
 0x665   : > { %4751 = vrot.lane.b32.xlu1 %v4714_v47, %s7066_s17  ;;  %v6948_v62 = vpop.eup %6947  ;;  %6967 = vpow2.f32 %v5733_v6 }
 0x666   : > { %v6950_v48 = vpop.eup %6949  ;;  %v4650_v10 = vadd.f32 1.0, %v6948_v62 }
 0x667   : > { %v8953_v27 = vpop.eup %6951  ;;  %v4655_v9 = vadd.f32 1.0, %v6950_v48 }
 0x668   : > { %4757 = vrot.lane.b32.xlu0 %v4717_v56, %s7066_s17  ;;  %v8955_v58 = vpop.eup %6953  ;;  %6969 = vrcp.f32 %v4650_v10 }
 0x669   : > { %4755 = vrot.lane.b32.xlu1 %v4716_v42, %s7066_s17  ;;  %v6956_v63 = vpop.eup %6955  ;;  %6971 = vrcp.f32 %v4655_v9  ;;  %v5737_v42 = vmul.f32 -1.442695, %v8910_v13 }
 0x66a   : > { %v8961_v21 = vpop.eup %6957  ;;  %v4653_v55 = vadd.f32 1.0, %v6956_v63  ;;  %6973 = vpow2.f32 %v5736_v40 }
 0x66b   : > { %v8964_v53 = vpop.eup %6959  ;;  %6975 = vpow2.f32 %v5738_v59 }
 0x66c   : > { %4761 = vrot.lane.b32.xlu0 %v4719_v17, %s7066_s17  ;;  %v8969_v47 = vpop.eup %6961  ;;  %6977 = vrcp.f32 %v4653_v55 }
 0x66d   : > { %4759 = vrot.lane.b32.xlu1 %v4718_v24, %s7066_s17  ;;  %v6964_v56 = vpop.eup %6963  ;;  %6979 = vpow2.f32 %v5737_v42 }
 0x66e   : > { %v8974_v24 = vpop.eup %6965 }
 0x670   : > { %4765 = vrot.lane.b32.xlu0 %v4721_v1, %s7066_s17 }
 0x671   : > { %4763 = vrot.lane.b32.xlu1 %v4720_v12, %s7066_s17 }
 0x674   : > { %4769 = vrot.lane.b32.xlu0 %v4723_v38, %s7066_s17  ;;  %v4656_v38 = vadd.f32 1.0, %v6964_v56 }
 0x675   : > { %4767 = vrot.lane.b32.xlu1 %v4722_v19, %s7066_s17  ;;  %v6968_v19 = vpop.eup %6967 }
 0x676   : > { %v8981_v13 = vpop.eup %6969  ;;  %6981 = vrcp.f32 %v4656_v38  ;;  %v4654_v35 = vadd.f32 1.0, %v6968_v19  ;;  %v4789_v19 = vmul.f32 %v8953_v27, %v8943_v52 }
 0x677   : > { %v8984_v7 = vpop.eup %6971 }
 0x678   : > { %v6974_v8 = vpop.eup %6973 }
 0x679   : > { %4771 = vrot.lane.b32.xlu1 %v4724_v20, %s7066_s17  ;;  %v5739_v20 = vmul.f32 -1.442695, %v8904_v50  ;;  %v6976_v50 = vpop.eup %6975  ;;  %v4657_v0 = vadd.f32 1.0, %v6974_v8 }
 0x67a   : > { %v8989_v33 = vpop.eup %6977  ;;  %v4659_v25 = vadd.f32 1.0, %v6976_v50 }
 0x67b   : > { %6983 = vpow2.f32 %v5739_v20  ;;  %v6980_v46 = vpop.eup %6979 }
 0x67c   : > { %6985 = vrcp.f32 %v4654_v35  ;;  %v4658_v15 = vadd.f32 1.0, %v6980_v46 }
 0x67d   : > { %6987 = vrcp.f32 %v4657_v0 }
 0x67e   : > { %6989 = vrcp.f32 %v4659_v25 }
 0x67f   : > { %6991 = vrcp.f32 %v4658_v15 }
 0x680   : > { %v8992_v44 = vpop.eup %6981 }
 0x685   : > { %v6984_v30 = vpop.eup %6983 }
 0x686   : > { %v8997_v18 = vpop.eup %6985  ;;  %v4660_v2 = vadd.f32 1.0, %v6984_v30 }
 0x687   : > { %v9001_v14 = vpop.eup %6987 }
 0x688   : > { %6993 = vrcp.f32 %v4660_v2 }
 0x6ae   : > { %v4826_v45 = vpop.permute.xlu0 %4825 }
 0x6af   : > { %v4871_v4 = vmul.f32 %v8946_v51, %v4826_v45 }
 0x6b0   : > { %v4828_v31 = vpop.permute.xlu1 %4827 }
 0x6b1   : > { %4905 = vrot.lane.b32.xlu0 %v4871_v4, %s7066_s17  ;;  %v4872_v57 = vmul.f32 %v8955_v58, %v4828_v31  ;;  %v9005_v4 = vpop.eup %6989 }
 0x6b2   : > { %v4822_v37 = vpop.permute.xlu0 %4821  ;;  %v9007_v6 = vpop.eup %6991 }
 0x6b3   : > { %v4869_v34 = vmul.f32 %v8953_v27, %v4822_v37  ;;  %4907 = vrot.lane.b32.xlu1 %v4872_v57, %s7066_s17  ;;  %v9013_v31 = vpop.eup %6993 }
 0x6b5   : > { %4901 = vrot.lane.b32.xlu0 %v4869_v34, %s7066_s17 }
 0x6b6   : > { %v4834_v39 = vpop.permute.xlu0 %4833 }
 0x6b7   : > { %v4824_v22 = vpop.permute.xlu1 %4823  ;;  %v4875_v41 = vmul.f32 %v8961_v21, %v4834_v39 }
 0x6b8   : > { %v4870_v28 = vmul.f32 %v8964_v53, %v4824_v22 }
 0x6b9   : > { %4913 = vrot.lane.b32.xlu0 %v4875_v41, %s7066_s17 }
 0x6ba   : > { %4903 = vrot.lane.b32.xlu1 %v4870_v28, %s7066_s17  ;;  %v4830_v17 = vpop.permute.xlu0 %4829 }
 0x6bb   : > { %v4836_v1 = vpop.permute.xlu1 %4835  ;;  %v4873_v12 = vmul.f32 %v8969_v47, %v4830_v17 }
 0x6bc   : > { %v4876_v29 = vmul.f32 %v8974_v24, %v4836_v1 }
 0x6bd   : > { %4909 = vrot.lane.b32.xlu0 %v4873_v12, %s7066_s17 }
 0x6be   : > { %4915 = vrot.lane.b32.xlu1 %v4876_v29, %s7066_s17  ;;  %v4842_v3 = vpop.permute.xlu0 %4841 }
 0x6bf   : > { %v4832_v60 = vpop.permute.xlu1 %4831  ;;  %v4879_v26 = vmul.f32 %v8984_v7, %v4842_v3 }
 0x6c0   : > { %v4874_v11 = vmul.f32 %v8981_v13, %v4832_v60 }
 0x6c1   : > { %4921 = vrot.lane.b32.xlu0 %v4879_v26, %s7066_s17  ;;  %v4790_v26 = vmul.f32 %v8964_v53, %v8948_v61 }
 0x6c2   : > { %4911 = vrot.lane.b32.xlu1 %v4874_v11, %s7066_s17  ;;  %v4838_v36 = vpop.permute.xlu0 %4837 }
 0x6c3   : > { %v4877_v32 = vmul.f32 %v8989_v33, %v4838_v36  ;;  %v4844_v43 = vpop.permute.xlu1 %4843 }
 0x6c4   : > { %v4880_v16 = vmul.f32 %v8992_v44, %v4844_v43 }
 0x6c5   : > { %4917 = vrot.lane.b32.xlu0 %v4877_v32, %s7066_s17 }
 0x6c6   : > { %4923 = vrot.lane.b32.xlu1 %v4880_v16, %s7066_s17  ;;  %v4850_v54 = vpop.permute.xlu0 %4849 }
 0x6c7   : > { %v4840_v5 = vpop.permute.xlu1 %4839  ;;  %v4883_v48 = vmul.f32 %v9005_v4, %v4850_v54 }
 0x6c8   : > { %v4878_v23 = vmul.f32 %v8997_v18, %v4840_v5 }
 0x6ca   : > { %4919 = vrot.lane.b32.xlu1 %v4878_v23, %s7066_s17  ;;  %v4846_v49 = vpop.permute.xlu0 %4845 }
 0x6cb   : > { %v4852_v45 = vpop.permute.xlu1 %4851  ;;  %v4881_v62 = vmul.f32 %v9001_v14, %v4846_v49 }
 0x6cc   : > { %v4884_v34 = vmul.f32 %v9013_v31, %v4852_v45 }
 0x6cd   : > { %4925 = vrot.lane.b32.xlu0 %v4881_v62, %s7066_s17 }
 0x6ce   : > { %v4746_v9 = vpop.permute.xlu0 %4745 }
 0x6cf   : > { %v4848_v10 = vpop.permute.xlu1 %4847  ;;  %v4791_v1 = vmul.f32 %v8946_v51, %v4746_v9 }
 0x6d0   : > { %v4882_v37 = vmul.f32 %v9007_v6, %v4848_v10 }
 0x6d1   : > { %4929 = vrot.lane.b32.xlu0 %v4883_v48, %s7066_s17 }
 0x6d2   : > { %4927 = vrot.lane.b32.xlu1 %v4882_v37, %s7066_s17  ;;  %v4750_v63 = vpop.permute.xlu0 %4749 }
 0x6d3   : > { %v4748_v57 = vpop.permute.xlu1 %4747  ;;  %v4793_v36 = vmul.f32 %v8969_v47, %v4750_v63 }
 0x6d4   : > { %v4792_v20 = vmul.f32 %v8955_v58, %v4748_v57 }
 0x6d6   : > { %4931 = vrot.lane.b32.xlu1 %v4884_v34, %s7066_s17  ;;  %v4754_v39 = vpop.permute.xlu0 %4753 }
 0x6d7   : > { %v4752_v40 = vpop.permute.xlu1 %4751  ;;  %v4795_v3 = vmul.f32 %v8961_v21, %v4754_v39 }
 0x6d8   : > { %v4794_v30 = vmul.f32 %v8981_v13, %v4752_v40 }
 0x6da   : > { %v4758_v41 = vpop.permute.xlu0 %4757 }
 0x6db   : > { %v4756_v22 = vpop.permute.xlu1 %4755  ;;  %v4797_v10 = vmul.f32 %v8989_v33, %v4758_v41 }
 0x6dc   : > { %v4796_v32 = vmul.f32 %v8974_v24, %v4756_v22 }
 0x6de   : > { %v4762_v28 = vpop.permute.xlu0 %4761 }
 0x6df   : > { %v9017_v59 = vpop.permute.xlu1 %4759  ;;  %v4799_v49 = vmul.f32 %v8984_v7, %v4762_v28 }
 0x6e0   : > { %v4798_v40 = vmul.f32 %v8997_v18, %v9017_v59 }
 0x6e2   : > { %v9019_v56 = vpop.permute.xlu0 %4765 }
 0x6e3   : > { %v4764_v55 = vpop.permute.xlu1 %4763 }
 0x6e4   : > { %v4800_v34 = vmul.f32 %v8992_v44, %v4764_v55 }
 0x6e6   : > { %v9023_v17 = vpop.permute.xlu0 %4769 }
 0x6e7   : > { %v9021_v42 = vpop.permute.xlu1 %4767 }
 0x6eb   : > { %v9026_v29 = vpop.permute.xlu1 %4771 }
 0x723   : > { %v4906_v12 = vpop.permute.xlu0 %4905 }
 0x724   : > { %v4951_v38 = vadd.f32 %v4906_v12, %v4791_v1  ;;  %v4803_v12 = vmul.f32 %v9005_v4, %v9023_v17 }
 0x725   : > { %v4908_v35 = vpop.permute.xlu1 %4907 }
 0x726   : > { %5081 = vrot.lane.b32.xlu0 %v4951_v38, %s7068_s22  ;;  %v4952_v8 = vadd.f32 %v4908_v35, %v4792_v20  ;;  %6995 = vtanh.f32 %v4951_v38  ;;  %v4804_v35 = vmul.f32 %v9013_v31, %v9026_v29 }
 0x727   : > { %v4902_v60 = vpop.permute.xlu0 %4901 }
 0x728   : > { %v4949_v11 = vadd.f32 %v4902_v60, %v4789_v19  ;;  %5083 = vrot.lane.b32.xlu1 %v4952_v8, %s7068_s22  ;;  %v4801_v60 = vmul.f32 %v9001_v14, %v9019_v56 }
 0x72a   : > { %5077 = vrot.lane.b32.xlu0 %v4949_v11, %s7068_s22  ;;  %6997 = vtanh.f32 %v4949_v11 }
 0x72b   : > { %v4914_v50 = vpop.permute.xlu0 %4913  ;;  %6999 = vtanh.f32 %v4952_v8 }
 0x72c   : > { %v4904_v52 = vpop.permute.xlu1 %4903  ;;  %v4955_v0 = vadd.f32 %v4914_v50, %v4795_v3  ;;  %v4802_v3 = vmul.f32 %v9007_v6, %v9021_v42 }
 0x72d   : > { %v4950_v46 = vadd.f32 %v4904_v52, %v4790_v26 }
 0x72e   : > { %5089 = vrot.lane.b32.xlu0 %v4955_v0, %s7068_s22 }
 0x72f   : > { %5079 = vrot.lane.b32.xlu1 %v4950_v46, %s7068_s22  ;;  %v4910_v25 = vpop.permute.xlu0 %4909  ;;  %7001 = vtanh.f32 %v4950_v46 }
 0x730   : > { %v4916_v15 = vpop.permute.xlu1 %4915  ;;  %v4953_v43 = vadd.f32 %v4910_v25, %v4793_v36  ;;  %v6996_v16 = vpop.eup %6995  ;;  %7003 = vtanh.f32 %v4955_v0 }
 0x731   : > { %v4956_v61 = vadd.f32 %v4916_v15, %v4796_v32 }
 0x732   : > { %5085 = vrot.lane.b32.xlu0 %v4953_v43, %s7068_s22  ;;  %7005 = vtanh.f32 %v4953_v43 }
 0x733   : > { %5091 = vrot.lane.b32.xlu1 %v4956_v61, %s7068_s22  ;;  %v4922_v23 = vpop.permute.xlu0 %4921  ;;  %7007 = vtanh.f32 %v4956_v61 }
 0x734   : > { %v4912_v2 = vpop.permute.xlu1 %4911  ;;  %v6998_v54 = vpop.eup %6997  ;;  %v4959_v62 = vadd.f32 %v4922_v23, %v4799_v49 }
 0x735   : > { %v4954_v5 = vadd.f32 %v4912_v2, %v4794_v30  ;;  %v7000_v45 = vpop.eup %6999 }
 0x736   : > { %5001 = vrot.lane.b32.xlu0 %v6996_v16, %s7066_s17 }
 0x737   : > { %5087 = vrot.lane.b32.xlu1 %v4954_v5, %s7068_s22  ;;  %v4918_v48 = vpop.permute.xlu0 %4917  ;;  %7009 = vtanh.f32 %v4954_v5 }
 0x738   : > { %v4924_v9 = vpop.permute.xlu1 %4923  ;;  %v4957_v57 = vadd.f32 %v4918_v48, %v4797_v10  ;;  %7011 = vtanh.f32 %v4959_v62 }
 0x739   : > { %v7002_v37 = vpop.eup %7001  ;;  %v4960_v63 = vadd.f32 %v4924_v9, %v4800_v34 }
 0x73a   : > { %4997 = vrot.lane.b32.xlu0 %v6998_v54, %s7066_s17  ;;  %v7004_v22 = vpop.eup %7003  ;;  %7013 = vtanh.f32 %v4957_v57 }
 0x73b   : > { %5003 = vrot.lane.b32.xlu1 %v7000_v45, %s7066_s17  ;;  %7015 = vtanh.f32 %v4960_v63 }
 0x73c   : > { %v4920_v39 = vpop.permute.xlu1 %4919  ;;  %v7006_v28 = vpop.eup %7005 }
 0x73d   : > { %v4958_v41 = vadd.f32 %v4920_v39, %v4798_v40  ;;  %v7008_v1 = vpop.eup %7007 }
 0x73e   : > { %5097 = vrot.lane.b32.xlu0 %v4959_v62, %s7068_s22 }
 0x73f   : > { %4999 = vrot.lane.b32.xlu1 %v7002_v37, %s7066_s17  ;;  %v4926_v55 = vpop.permute.xlu0 %4925 }
 0x740   : > { %v4961_v17 = vadd.f32 %v4926_v55, %v4801_v60 }
 0x741   : > { %v7010_v20 = vpop.eup %7009 }
 0x742   : > { %5093 = vrot.lane.b32.xlu0 %v4957_v57, %s7068_s22  ;;  %v7012_v56 = vpop.eup %7011 }
 0x743   : > { %5099 = vrot.lane.b32.xlu1 %v4960_v63, %s7068_s22  ;;  %v4930_v59 = vpop.permute.xlu0 %4929 }
 0x744   : > { %v4928_v38 = vpop.permute.xlu1 %4927  ;;  %v4963_v19 = vadd.f32 %v4930_v59, %v4803_v12  ;;  %v7014_v29 = vpop.eup %7013 }
 0x745   : > { %v4962_v26 = vadd.f32 %v4928_v38, %v4802_v3  ;;  %v7016_v50 = vpop.eup %7015 }
 0x746   : > { %5009 = vrot.lane.b32.xlu0 %v7004_v22, %s7066_s17  ;;  %7017 = vtanh.f32 %v4963_v19 }
 0x747   : > { %5095 = vrot.lane.b32.xlu1 %v4958_v41, %s7068_s22  ;;  %7019 = vtanh.f32 %v4958_v41 }
 0x748   : > { %v4932_v11 = vpop.permute.xlu1 %4931  ;;  %7021 = vtanh.f32 %v4961_v17 }
 0x749   : > { %v4964_v8 = vadd.f32 %v4932_v11, %v4804_v35 }
 0x74a   : > { %5005 = vrot.lane.b32.xlu0 %v7006_v28, %s7066_s17 }
 0x74b   : > { %5011 = vrot.lane.b32.xlu1 %v7008_v1, %s7066_s17  ;;  %7023 = vtanh.f32 %v4964_v8 }
 0x74c   : > { %7025 = vtanh.f32 %v4962_v26 }
 0x74e   : > { %5105 = vrot.lane.b32.xlu0 %v4963_v19, %s7068_s22 }
 0x74f   : > { %5007 = vrot.lane.b32.xlu1 %v7010_v20, %s7066_s17 }
 0x750   : > { %v7018_v42 = vpop.eup %7017 }
 0x751   : > { %v7020_v52 = vpop.eup %7019 }
 0x752   : > { %5101 = vrot.lane.b32.xlu0 %v4961_v17, %s7068_s22  ;;  %v7022_v0 = vpop.eup %7021 }
 0x753   : > { %5107 = vrot.lane.b32.xlu1 %v4964_v8, %s7068_s22 }
 0x755   : > { %v7024_v46 = vpop.eup %7023 }
 0x756   : > { %5017 = vrot.lane.b32.xlu0 %v7012_v56, %s7066_s17  ;;  %v7026_v36 = vpop.eup %7025 }
 0x757   : > { %5103 = vrot.lane.b32.xlu1 %v4962_v26, %s7068_s22 }
 0x75a   : > { %5013 = vrot.lane.b32.xlu0 %v7014_v29, %s7066_s17 }
 0x75b   : > { %5019 = vrot.lane.b32.xlu1 %v7016_v50, %s7066_s17 }
 0x75e   : > { %5025 = vrot.lane.b32.xlu0 %v7018_v42, %s7066_s17 }
 0x75f   : > { %5015 = vrot.lane.b32.xlu1 %v7020_v52, %s7066_s17 }
 0x762   : > { %5021 = vrot.lane.b32.xlu0 %v7022_v0, %s7066_s17 }
 0x763   : > { %5027 = vrot.lane.b32.xlu1 %v7024_v46, %s7066_s17 }
 0x767   : > { %5023 = vrot.lane.b32.xlu1 %v7026_v36, %s7066_s17  ;;  %s7069_s17 = smov [#allocation5]  }
 0x768   : > { %s5316_s26 = sshll.u32 %s7069_s17, 4  ;;  %s5317_s26 = int_to_ptr.vmem [resolvable:$true] %s5316_s26 }
 0x769   : > { %s7027_s8 = scalar_lea.vmem %s5317_s26, 2048  ;;  %p7034_p9 = scmp.lt.s32.totalorder %s5317_s26, %s5317_s26 }
 0x76a   : > { %p7028_p6 = scmp.ne.s32.totalorder %s5317_s26, %s7027_s8  ;;  %p7035_p10 = scmp.lt.s32.totalorder %s7027_s8, %s7027_s8 }
 0x76c   : > { %p7029_p7 = pnand %p7028_p6, %p6689_p5  ;;  %p7036_p11 = por %p7035_p10, %p7034_p9 }
 0x76e   : > { %p7030_p8 = pneg %p7029_p7 }
 0x770   : > { %p7037_p12 = pnand %p7036_p11, %p7030_p8 }
 0x798   : > { %v5082_v32 = vpop.permute.xlu0 %5081 }
 0x799   : > { %5127 = vst.msk [vmem:[#allocation4 + $0x10] sm:$0xff] %vm631_vm6, %v5082_v32  ;;  %5288 = vst.msk [vmem:[#allocation5 + $0x10] sm:$0xff] %vm631_vm6, %v5082_v32 }
 0x79a   : > { %v5084_v15 = vpop.permute.xlu1 %5083 }
 0x79b   : > { %5128 = vst.msk [vmem:[#allocation4 + $0x18] sm:$0xff] %vm631_vm6, %v5084_v15  ;;  %5289 = vst.msk [vmem:[#allocation5 + $0x18] sm:$0xff] %vm631_vm6, %v5084_v15 }
 0x79c   : > { %v5078_v25 = vpop.permute.xlu0 %5077 }
 0x79d   : > { %5125 = vst.msk [vmem:[#allocation4] sm:$0xff] %vm631_vm6, %v5078_v25  ;;  %5286 = vst.msk [vmem:[#allocation5] sm:$0xff] %vm631_vm6, %v5078_v25 }
 0x7a0   : > { %v5090_v43 = vpop.permute.xlu0 %5089 }
 0x7a1   : > { %v5080_v61 = vpop.permute.xlu1 %5079  ;;  %5131 = vst.msk [vmem:[#allocation4 + $0x30] sm:$0xff] %vm631_vm6, %v5090_v43  ;;  %5292 = vst.msk [vmem:[#allocation5 + $0x30] sm:$0xff] %vm631_vm6, %v5090_v43 }
 0x7a2   : > { %5126 = vst.msk [vmem:[#allocation4 + $0x8] sm:$0xff] %vm631_vm6, %v5080_v61  ;;  %5287 = vst.msk [vmem:[#allocation5 + $0x8] sm:$0xff] %vm631_vm6, %v5080_v61 }
 0x7a4   : > { %v5086_v30 = vpop.permute.xlu0 %5085 }
 0x7a5   : > { %v5092_v16 = vpop.permute.xlu1 %5091  ;;  %5129 = vst.msk [vmem:[#allocation4 + $0x20] sm:$0xff] %vm631_vm6, %v5086_v30  ;;  %5290 = vst.msk [vmem:[#allocation5 + $0x20] sm:$0xff] %vm631_vm6, %v5086_v30 }
 0x7a6   : > { %5132 = vst.msk [vmem:[#allocation4 + $0x38] sm:$0xff] %vm631_vm6, %v5092_v16  ;;  %5293 = vst.msk [vmem:[#allocation5 + $0x38] sm:$0xff] %vm631_vm6, %v5092_v16 }
 0x7a8   : > { %v5002_v2 = vpop.permute.xlu0 %5001 }
 0x7a9   : > { %v5047_v5 = vmul.f32 %v8946_v51, %v5002_v2  ;;  %v5088_v23 = vpop.permute.xlu1 %5087 }
 0x7aa   : > { %5130 = vst.msk [vmem:[#allocation4 + $0x28] sm:$0xff] %vm631_vm6, %v5088_v23  ;;  %5291 = vst.msk [vmem:[#allocation5 + $0x28] sm:$0xff] %vm631_vm6, %v5088_v23 }
 0x7ab   : > { %5161 = vrot.lane.b32.xlu0 %v5047_v5, %s7068_s22 }
 0x7ac   : > { %v4998_v54 = vpop.permute.xlu0 %4997 }
 0x7ad   : > { %v5004_v49 = vpop.permute.xlu1 %5003  ;;  %v5045_v48 = vmul.f32 %v8953_v27, %v4998_v54 }
 0x7ae   : > { %v5048_v45 = vmul.f32 %v8955_v58, %v5004_v49 }
 0x7af   : > { %5226 = vrot.lane.b32.xlu0 %v5047_v5, %s7067_s27 }
 0x7b0   : > { %v5098_v62 = vpop.permute.xlu0 %5097  ;;  %5163 = vrot.lane.b32.xlu1 %v5048_v45, %s7068_s22 }
 0x7b1   : > { %5135 = vst.msk [vmem:[#allocation4 + $0x50] sm:$0xff] %vm631_vm6, %v5098_v62  ;;  %5296 = vst.msk [vmem:[#allocation5 + $0x50] sm:$0xff] %vm631_vm6, %v5098_v62  ;;  %v5000_v51 = vpop.permute.xlu1 %4999 }
 0x7b2   : > { %v5046_v37 = vmul.f32 %v8964_v53, %v5000_v51 }
 0x7b3   : > { %5157 = vrot.lane.b32.xlu0 %v5045_v48, %s7068_s22 }
 0x7b4   : > { %v5094_v10 = vpop.permute.xlu0 %5093  ;;  %5228 = vrot.lane.b32.xlu1 %v5048_v45, %s7067_s27 }
 0x7b5   : > { %5133 = vst.msk [vmem:[#allocation4 + $0x40] sm:$0xff] %vm631_vm6, %v5094_v10  ;;  %5294 = vst.msk [vmem:[#allocation5 + $0x40] sm:$0xff] %vm631_vm6, %v5094_v10  ;;  %v5100_v58 = vpop.permute.xlu1 %5099 }
 0x7b6   : > { %5136 = vst.msk [vmem:[#allocation4 + $0x58] sm:$0xff] %vm631_vm6, %v5100_v58  ;;  %5297 = vst.msk [vmem:[#allocation5 + $0x58] sm:$0xff] %vm631_vm6, %v5100_v58 }
 0x7b7   : > { %5222 = vrot.lane.b32.xlu0 %v5045_v48, %s7067_s27 }
 0x7b8   : > { %v5010_v27 = vpop.permute.xlu0 %5009  ;;  %5159 = vrot.lane.b32.xlu1 %v5046_v37, %s7068_s22 }
 0x7b9   : > { %v5051_v34 = vmul.f32 %v8961_v21, %v5010_v27  ;;  %v5096_v9 = vpop.permute.xlu1 %5095 }
 0x7ba   : > { %5134 = vst.msk [vmem:[#allocation4 + $0x48] sm:$0xff] %vm631_vm6, %v5096_v9  ;;  %5295 = vst.msk [vmem:[#allocation5 + $0x48] sm:$0xff] %vm631_vm6, %v5096_v9 }
 0x7bb   : > { %5169 = vrot.lane.b32.xlu0 %v5051_v34, %s7068_s22 }
 0x7bc   : > { %v5006_v57 = vpop.permute.xlu0 %5005  ;;  %5224 = vrot.lane.b32.xlu1 %v5046_v37, %s7067_s27 }
 0x7bd   : > { %v5012_v53 = vpop.permute.xlu1 %5011  ;;  %v5049_v40 = vmul.f32 %v8969_v47, %v5006_v57 }
 0x7be   : > { %v5052_v63 = vmul.f32 %v8974_v24, %v5012_v53 }
 0x7bf   : > { %5234 = vrot.lane.b32.xlu0 %v5051_v34, %s7067_s27 }
 0x7c0   : > { %5171 = vrot.lane.b32.xlu1 %v5052_v63, %s7068_s22  ;;  %v5106_v39 = vpop.permute.xlu0 %5105 }
 0x7c1   : > { %v5008_v21 = vpop.permute.xlu1 %5007  ;;  %5139 = vst.msk [vmem:[#allocation4 + $0x70] sm:$0xff] %vm631_vm6, %v5106_v39  ;;  %5300 = vst.msk [vmem:[#allocation5 + $0x70] sm:$0xff] %vm631_vm6, %v5106_v39 }
 0x7c2   : > { %v5050_v41 = vmul.f32 %v8981_v13, %v5008_v21 }
 0x7c3   : > { %5165 = vrot.lane.b32.xlu0 %v5049_v40, %s7068_s22 }
 0x7c4   : > { %5236 = vrot.lane.b32.xlu1 %v5052_v63, %s7067_s27  ;;  %v5102_v22 = vpop.permute.xlu0 %5101 }
 0x7c5   : > { %v5108_v24 = vpop.permute.xlu1 %5107  ;;  %5137 = vst.msk [vmem:[#allocation4 + $0x60] sm:$0xff] %vm631_vm6, %v5102_v22  ;;  %5298 = vst.msk [vmem:[#allocation5 + $0x60] sm:$0xff] %vm631_vm6, %v5102_v22 }
 0x7c6   : > { %5140 = vst.msk [vmem:[#allocation4 + $0x78] sm:$0xff] %vm631_vm6, %v5108_v24  ;;  %5301 = vst.msk [vmem:[#allocation5 + $0x78] sm:$0xff] %vm631_vm6, %v5108_v24 }
 0x7c7   : > { %5230 = vrot.lane.b32.xlu0 %v5049_v40, %s7067_s27 }
 0x7c8   : > { %5167 = vrot.lane.b32.xlu1 %v5050_v41, %s7068_s22  ;;  %v5018_v47 = vpop.permute.xlu0 %5017 }
 0x7c9   : > { %v5104_v28 = vpop.permute.xlu1 %5103  ;;  %v5055_v55 = vmul.f32 %v8984_v7, %v5018_v47 }
 0x7ca   : > { %5138 = vst.msk [vmem:[#allocation4 + $0x68] sm:$0xff] %vm631_vm6, %v5104_v28  ;;  %5299 = vst.msk [vmem:[#allocation5 + $0x68] sm:$0xff] %vm631_vm6, %v5104_v28 }
 0x7cb   : > { %5177 = vrot.lane.b32.xlu0 %v5055_v55, %s7068_s22 }
 0x7cc   : > { %5232 = vrot.lane.b32.xlu1 %v5050_v41, %s7067_s27  ;;  %v5014_v12 = vpop.permute.xlu0 %5013 }
 0x7cd   : > { %v5020_v13 = vpop.permute.xlu1 %5019  ;;  %v5053_v59 = vmul.f32 %v8989_v33, %v5014_v12 }
 0x7ce   : > { %v5056_v1 = vmul.f32 %v8992_v44, %v5020_v13 }
 0x7cf   : > { %5242 = vrot.lane.b32.xlu0 %v5055_v55, %s7067_s27 }
 0x7d0   : > { %5179 = vrot.lane.b32.xlu1 %v5056_v1, %s7068_s22  ;;  %v5026_v7 = vpop.permute.xlu0 %5025 }
 0x7d1   : > { %v5016_v38 = vpop.permute.xlu1 %5015  ;;  %v5059_v44 = vmul.f32 %v9005_v4, %v5026_v7 }
 0x7d2   : > { %v5054_v19 = vmul.f32 %v8997_v18, %v5016_v38 }
 0x7d3   : > { %5173 = vrot.lane.b32.xlu0 %v5053_v59, %s7068_s22 }
 0x7d4   : > { %5244 = vrot.lane.b32.xlu1 %v5056_v1, %s7067_s27  ;;  %v5022_v60 = vpop.permute.xlu0 %5021 }
 0x7d5   : > { %v5028_v20 = vpop.permute.xlu1 %5027  ;;  %v5057_v33 = vmul.f32 %v9001_v14, %v5022_v60 }
 0x7d6   : > { %v5060_v35 = vmul.f32 %v9013_v31, %v5028_v20 }
 0x7d7   : > { %5238 = vrot.lane.b32.xlu0 %v5053_v59, %s7067_s27 }
 0x7d8   : > { %5175 = vrot.lane.b32.xlu1 %v5054_v19, %s7068_s22 }
 0x7d9   : > { %v5024_v17 = vpop.permute.xlu1 %5023 }
 0x7da   : > { %v5058_v18 = vmul.f32 %v9007_v6, %v5024_v17 }
 0x7db   : > { %5185 = vrot.lane.b32.xlu0 %v5059_v44, %s7068_s22 }
 0x7dc   : > { %5240 = vrot.lane.b32.xlu1 %v5054_v19, %s7067_s27 }
 0x7df   : > { %5181 = vrot.lane.b32.xlu0 %v5057_v33, %s7068_s22 }
 0x7e0   : > { %5187 = vrot.lane.b32.xlu1 %v5060_v35, %s7068_s22 }
 0x7e1   : > { %7040 = shalt.err (!%p7037_p12)
}
 0x7e2   : > { %s7041_s30 = scalar_lea.hbm %s9243_s7, 2048 }
 0x7e3   : > { %p7042_p13 = scmp.ne.s32.totalorder %s9243_s7, %s7041_s30  ;;  %p7047_p2 = scmp.lt.u32.totalorder %s7041_s30, %s9243_s7 }
 0x7e5   : > { %p7043_p0 = pnand %p7042_p13, %p6689_p5 }
 0x7e7   : > { %p7044_p1 = pneg %p7043_p0 }
 0x7e9   : > { %p7049_p3 = pnand %p7047_p2, %p7044_p1 }
 0x7eb   : > { %7052 = shalt.err (!%p7049_p3)
}
 0x7ec   : > { %s7070_s14 = smov 128   ;;  %s7071_s15 = smov 8   ;;  %5246 = vrot.lane.b32.xlu0 %v5057_v33, %s7067_s27  ;;  %5183 = vrot.lane.b32.xlu1 %v5058_v18, %s7068_s22  ;;  %vm5205_vm9 = vcmask 523520  }
 0x7ed   : > { %6686 = dma.vmem_to_hbm [thread:$0]  (%p6689_p5), %s5317_s26, 2048, %s9243_s7, [#allocation6], %s7070_s14, %s7070_s14, %s7071_s15  }
 0x7f0   : > { %5250 = vrot.lane.b32.xlu0 %v5059_v44, %s7067_s27  ;;  %5248 = vrot.lane.b32.xlu1 %v5058_v18, %s7067_s27 }
 0x7f4   : > { %5252 = vrot.lane.b32.xlu1 %v5060_v35, %s7067_s27 }
 0x81d   : > { %v5162_v14 = vpop.permute.xlu0 %5161 }
 0x81e   : > { %5208 = vst.msk [vmem:[#allocation2 + $0x31] sm:$0xff] %vm5205_vm9, %v5162_v14 }
 0x821   : > { %v5227_v4 = vpop.permute.xlu0 %5226 }
 0x822   : > { %5272 = vst.msk [vmem:[%s7132_s11 + $0x10] sm:$0xff] %vm631_vm6, %v5227_v4  ;;  %v5164_v6 = vpop.permute.xlu1 %5163 }
 0x823   : > { %5209 = vst.msk [vmem:[#allocation2 + $0x41] sm:$0xff] %vm5205_vm9, %v5164_v6 }
 0x825   : > { %v5158_v31 = vpop.permute.xlu0 %5157 }
 0x826   : > { %5206 = vst.msk [vmem:[#allocation2 + $0x11] sm:$0xff] %vm5205_vm9, %v5158_v31  ;;  %v5229_v11 = vpop.permute.xlu1 %5228 }
 0x827   : > { %5273 = vst.msk [vmem:[%s7132_s11 + $0x18] sm:$0xff] %vm631_vm6, %v5229_v11 }
 0x829   : > { %v5223_v8 = vpop.permute.xlu0 %5222 }
 0x82a   : > { %5270 = vst.msk [vmem:[%s7132_s11] sm:$0xff] %vm631_vm6, %v5223_v8  ;;  %v5160_v3 = vpop.permute.xlu1 %5159 }
 0x82b   : > { %5207 = vst.msk [vmem:[#allocation2 + $0x21] sm:$0xff] %vm5205_vm9, %v5160_v3 }
 0x82d   : > { %v5170_v56 = vpop.permute.xlu0 %5169 }
 0x82e   : > { %5212 = vst.msk [vmem:[#allocation2 + $0x71] sm:$0xff] %vm5205_vm9, %v5170_v56  ;;  %v5225_v26 = vpop.permute.xlu1 %5224 }
 0x82f   : > { %5271 = vst.msk [vmem:[%s7132_s11 + $0x8] sm:$0xff] %vm631_vm6, %v5225_v26 }
 0x831   : > { %v5235_v29 = vpop.permute.xlu0 %5234 }
 0x832   : > { %5276 = vst.msk [vmem:[%s7132_s11 + $0x30] sm:$0xff] %vm631_vm6, %v5235_v29  ;;  %v5172_v50 = vpop.permute.xlu1 %5171 }
 0x833   : > { %5213 = vst.msk [vmem:[#allocation2 + $0x81] sm:$0xff] %vm5205_vm9, %v5172_v50 }
 0x835   : > { %v5166_v42 = vpop.permute.xlu0 %5165 }
 0x836   : > { %5210 = vst.msk [vmem:[#allocation2 + $0x51] sm:$0xff] %vm5205_vm9, %v5166_v42  ;;  %v5237_v52 = vpop.permute.xlu1 %5236 }
 0x837   : > { %5277 = vst.msk [vmem:[%s7132_s11 + $0x38] sm:$0xff] %vm631_vm6, %v5237_v52 }
 0x839   : > { %v5231_v0 = vpop.permute.xlu0 %5230 }
 0x83a   : > { %5274 = vst.msk [vmem:[%s7132_s11 + $0x20] sm:$0xff] %vm631_vm6, %v5231_v0  ;;  %v5168_v46 = vpop.permute.xlu1 %5167 }
 0x83b   : > { %5211 = vst.msk [vmem:[#allocation2 + $0x61] sm:$0xff] %vm5205_vm9, %v5168_v46 }
 0x83d   : > { %v5178_v32 = vpop.permute.xlu0 %5177 }
 0x83e   : > { %v5233_v36 = vpop.permute.xlu1 %5232  ;;  %5216 = vst.msk [vmem:[#allocation2 + $0xd1] sm:$0xff] %vm5205_vm9, %v5178_v32 }
 0x83f   : > { %5275 = vst.msk [vmem:[%s7132_s11 + $0x28] sm:$0xff] %vm631_vm6, %v5233_v36 }
 0x841   : > { %v5243_v25 = vpop.permute.xlu0 %5242 }
 0x842   : > { %v5180_v15 = vpop.permute.xlu1 %5179  ;;  %5280 = vst.msk [vmem:[%s7132_s11 + $0x50] sm:$0xff] %vm631_vm6, %v5243_v25 }
 0x843   : > { %5217 = vst.msk [vmem:[#allocation2 + $0xe1] sm:$0xff] %vm5205_vm9, %v5180_v15 }
 0x845   : > { %v5174_v43 = vpop.permute.xlu0 %5173 }
 0x846   : > { %v5245_v61 = vpop.permute.xlu1 %5244  ;;  %5214 = vst.msk [vmem:[#allocation2 + $0xb1] sm:$0xff] %vm5205_vm9, %v5174_v43 }
 0x847   : > { %5281 = vst.msk [vmem:[%s7132_s11 + $0x58] sm:$0xff] %vm631_vm6, %v5245_v61 }
 0x849   : > { %v5239_v30 = vpop.permute.xlu0 %5238 }
 0x84a   : > { %v5176_v16 = vpop.permute.xlu1 %5175  ;;  %5278 = vst.msk [vmem:[%s7132_s11 + $0x40] sm:$0xff] %vm631_vm6, %v5239_v30 }
 0x84b   : > { %5215 = vst.msk [vmem:[#allocation2 + $0xc1] sm:$0xff] %vm5205_vm9, %v5176_v16 }
 0x84d   : > { %v5186_v2 = vpop.permute.xlu0 %5185 }
 0x84e   : > { %v5241_v5 = vpop.permute.xlu1 %5240  ;;  %5220 = vst.msk [vmem:[#allocation2 + $0x111] sm:$0xff] %vm5205_vm9, %v5186_v2 }
 0x84f   : > { %5279 = vst.msk [vmem:[%s7132_s11 + $0x48] sm:$0xff] %vm631_vm6, %v5241_v5 }
 0x851   : > { %v5182_v23 = vpop.permute.xlu0 %5181 }
 0x852   : > { %v5188_v54 = vpop.permute.xlu1 %5187  ;;  %5218 = vst.msk [vmem:[#allocation2 + $0xf1] sm:$0xff] %vm5205_vm9, %v5182_v23 }
 0x853   : > { %5221 = vst.msk [vmem:[#allocation2 + $0x121] sm:$0xff] %vm5205_vm9, %v5188_v54 }
 0x85e   : > { %v5247_v49 = vpop.permute.xlu0 %5246  ;;  %v5184_v45 = vpop.permute.xlu1 %5183 }
 0x85f   : > { %5282 = vst.msk [vmem:[%s7132_s11 + $0x60] sm:$0xff] %vm631_vm6, %v5247_v49 }
 0x860   : > { %5219 = vst.msk [vmem:[#allocation2 + $0x101] sm:$0xff] %vm5205_vm9, %v5184_v45 }
 0x862   : > { %v5251_v62 = vpop.permute.xlu0 %5250  ;;  %v5249_v48 = vpop.permute.xlu1 %5248 }
 0x863   : > { %5284 = vst.msk [vmem:[%s7132_s11 + $0x70] sm:$0xff] %vm631_vm6, %v5251_v62  ;;  %5283 = vst.msk [vmem:[%s7132_s11 + $0x68] sm:$0xff] %vm631_vm6, %v5249_v48 }
 0x866   : > { %v5253_v51 = vpop.permute.xlu1 %5252 }
 0x867   : > { %5285 = vst.msk [vmem:[%s7132_s11 + $0x78] sm:$0xff] %vm631_vm6, %v5253_v51 }
 0x868   : > { %7058 = dma.done.wait (%p6689_p5), [#allocation6], 2048  }
 0x869   : > { %7060 = vsyncadd (%p6689_p5), [#allocation6], 4294965248 }
 0x86a PF: > { %s19_s24 = sadd.s32 1, %s7063_s24  }
 0x86b   : > { %p16_p4 = scmp.ge.s32.totalorder %s19_s24, 6  }
 0x86d   :  { %18 = sbr.rel (!%p16_p4) target bundleno = 1 (0x1), region = 104 }
 0x874   :  { %5340 = vsyncpa [#allocation6], 1 }
 0x875   :  { %5342 = vsyncpa [#allocation6 + $0x1], 1 }

</bundles_post_ra>
